<compile_context>
chip_gen: v7x
topology: tpu7x:2x2x1
jax: 0.10.0
libtpu: 0.0.40
codegen_flags: <defaults>
</compile_context>

<pallas_src>
import functools
import math

import jax
import jax.numpy as jnp
from jax.experimental import pallas as pl
from jax.experimental.pallas import tpu as pltpu

MM_DTYPE = jnp.bfloat16          # matmul operand dtype (f32 accumulation)
ACT_DTYPE = jnp.bfloat16         # inter-kernel activation dtype
LATENT_PAD = 128                 # pad MLP hidden dims to a full lane group
ENC_IN_PAD = 16                  # pad tiny encoder input widths (2 / 3) to 16


def _round_up(x, m):
    return ((x + m - 1) // m) * m


@functools.lru_cache(maxsize=1)
def _hw_config():
    """Returns (vmem_limit_bytes, max_tile_rows), generation-aware.

    v7x (64 MiB physical VMEM, 2 TCs): explicit 44 MiB budget, 1024-row tiles.
    v5e/v6e (128 MiB VMEM, 1 TC):      96 MiB budget, 2048-row tiles.
    Conservative (v7x-like) fallback when detection is unavailable."""
    vmem = None
    try:
        vmem = int(getattr(pltpu.get_tpu_info(), "vmem_capacity_bytes", 0)) or None
    except Exception:
        vmem = None
    if vmem is None:
        vmem = 64 * 1024 * 1024
    if vmem <= 64 * 1024 * 1024:
        return 44 * 1024 * 1024, 1024
    return 96 * 1024 * 1024, 2048


def _pick_tile(rows, max_tile):
    """Row tile size: at least 2 grid steps whenever rows >= 256 so both v7x
    TensorCores get work on 'parallel' axes; capped per generation."""
    if rows >= 256:
        return min(max_tile, _round_up((rows + 1) // 2, 128))
    return 128


# ----------------------------------------------------------------------------
# Pallas kernels
# ----------------------------------------------------------------------------
def _concat_mlp_kernel(num_inputs):
    """Row-wise sigmoid(L3(relu(L2(relu(L1(concat(inputs))))))).
    The concat is folded into `num_inputs` split first-layer weight blocks."""
    def kernel(*refs):
        xs = refs[:num_inputs]
        w1s = refs[num_inputs:2 * num_inputs]
        b1, w2, b2, w3, b3, out = refs[2 * num_inputs:]
        h = b1[...]
        for x, w in zip(xs, w1s):
            h = h + jnp.dot(x[...].astype(MM_DTYPE), w[...],
                            preferred_element_type=jnp.float32)
        h = jnp.maximum(h, 0.0)
        h = jnp.dot(h.astype(MM_DTYPE), w2[...],
                    preferred_element_type=jnp.float32) + b2[...]
        h = jnp.maximum(h, 0.0)
        h = jnp.dot(h.astype(MM_DTYPE), w3[...],
                    preferred_element_type=jnp.float32) + b3[...]
        out[...] = jax.nn.sigmoid(h).astype(out.dtype)
    return kernel


def _gn_node_kernel(ks_ref, cnt_ref, dst_ref, invdeg_ref, eh_ref, nf_ref,
                    w1n, w1a, b1, w2, b2, w3, b3, out_ref, acc_ref):
    """CSR mean-aggregation over the node tile's incident edge tiles + node MLP.

    Edges are dst-sorted, so node tile i's incoming edges occupy edge tiles
    [ks[i], ks[i]+cnt[i]); steps beyond cnt[i] re-map to the same edge tile
    (no DMA) and skip compute."""
    i = pl.program_id(0)
    k = pl.program_id(1)

    @pl.when(k == 0)
    def _():
        acc_ref[...] = jnp.zeros_like(acc_ref)

    @pl.when(k < cnt_ref[i])
    def _():
        tile_n = acc_ref.shape[0]
        tile_e = eh_ref.shape[0]
        # One-hot (tile_n, tile_e) incidence slab built in-kernel (never hits HBM).
        node_ids = (i * tile_n
                    + jax.lax.broadcasted_iota(jnp.int32, (tile_n, tile_e), 0))
        mask = (node_ids == dst_ref[...]).astype(MM_DTYPE)   # dst pad (1<<30) never matches
        acc_ref[...] += jnp.dot(mask, eh_ref[...].astype(MM_DTYPE),
                                preferred_element_type=jnp.float32)

    @pl.when(k == pl.num_programs(1) - 1)
    def _():
        h_N = acc_ref[...] * invdeg_ref[...]                 # mean; 0 for deg-0 nodes
        h = (jnp.dot(nf_ref[...].astype(MM_DTYPE), w1n[...],
                     preferred_element_type=jnp.float32)
             + jnp.dot(h_N.astype(MM_DTYPE), w1a[...],
                       preferred_element_type=jnp.float32)
             + b1[...])
        h = jnp.maximum(h, 0.0)
        h = jnp.dot(h.astype(MM_DTYPE), w2[...],
                    preferred_element_type=jnp.float32) + b2[...]
        h = jnp.maximum(h, 0.0)
        h = jnp.dot(h.astype(MM_DTYPE), w3[...],
                    preferred_element_type=jnp.float32) + b3[...]
        out_ref[...] = jax.nn.sigmoid(h).astype(out_ref.dtype)


# ----------------------------------------------------------------------------
# pallas_call wrappers
# ----------------------------------------------------------------------------
def _row_mlp(row_inputs, p, *, tile_rows, vmem_limit, out_dtype=ACT_DTYPE):
    rows = row_inputs[0].shape[0]
    assert rows % tile_rows == 0
    w1s = p["w1s"]
    assert len(w1s) == len(row_inputs)
    out_dim = p["w3"].shape[1]
    w_args = list(w1s) + [p["b1"], p["w2"], p["b2"], p["w3"], p["b3"]]
    in_specs = ([pl.BlockSpec((tile_rows, x.shape[1]), lambda i: (i, 0))
                 for x in row_inputs]
                + [pl.BlockSpec(w.shape, lambda i: (0, 0)) for w in w_args])
    return pl.pallas_call(
        _concat_mlp_kernel(len(row_inputs)),
        out_shape=jax.ShapeDtypeStruct((rows, out_dim), out_dtype),
        grid=(rows // tile_rows,),
        in_specs=in_specs,
        out_specs=pl.BlockSpec((tile_rows, out_dim), lambda i: (i, 0)),
        compiler_params=pltpu.CompilerParams(
            dimension_semantics=("parallel",),
            vmem_limit_bytes=vmem_limit),
    )(*row_inputs, *w_args)


def _gn_node_update(ks, cnt, dst_2d, inv_deg, edge_h, n_h, p, *,
                    tile_n, tile_e, vmem_limit, out_dtype=ACT_DTYPE):
    N_p, n_in = n_h.shape
    E_p, e_out = edge_h.shape
    num_k = E_p // tile_e
    out_dim = p["w3"].shape[1]
    w1n, w1a = p["w1s"]
    w_args = [w1n, w1a, p["b1"], p["w2"], p["b2"], p["w3"], p["b3"]]

    def _kk(i, k, ks_ref, cnt_ref):
        # Clamp so steps past cnt[i] re-use the previous block index -> no DMA.
        return ks_ref[i] + jnp.minimum(k, jnp.maximum(cnt_ref[i] - 1, 0))

    grid_spec = pltpu.PrefetchScalarGridSpec(
        num_scalar_prefetch=2,
        grid=(N_p // tile_n, num_k),
        in_specs=[
            pl.BlockSpec((1, tile_e), lambda i, k, ks, cnt: (0, _kk(i, k, ks, cnt))),
            pl.BlockSpec((tile_n, 1), lambda i, k, ks, cnt: (i, 0)),      # 1/max(deg,1)
            pl.BlockSpec((tile_e, e_out), lambda i, k, ks, cnt: (_kk(i, k, ks, cnt), 0)),
            pl.BlockSpec((tile_n, n_in), lambda i, k, ks, cnt: (i, 0)),   # node latents
        ] + [pl.BlockSpec(w.shape, lambda i, k, ks, cnt: (0, 0)) for w in w_args],
        out_specs=pl.BlockSpec((tile_n, out_dim), lambda i, k, ks, cnt: (i, 0)),
        scratch_shapes=[pltpu.VMEM((tile_n, e_out), jnp.float32)],
    )
    return pl.pallas_call(
        _gn_node_kernel,
        out_shape=jax.ShapeDtypeStruct((N_p, out_dim), out_dtype),
        grid_spec=grid_spec,
        compiler_params=pltpu.CompilerParams(
            dimension_semantics=("parallel", "arbitrary"),
            vmem_limit_bytes=vmem_limit),
    )(ks, cnt, dst_2d, inv_deg, edge_h, n_h, *w_args)


def _gn_block(p_e, p_n, src_idx, dst_idx, ks, cnt, dst_2d, inv_deg, n_h, e_h, *,
              tile_n, tile_e, vmem_limit):
    # TODO(synk): move the src/dst row gathers in-kernel (VMEM-resident n_h +
    # row gather / manual DMA) once gather lowering is guaranteed on all target
    # generations; until then XLA materializes two (E_p, 64) bf16 gathered operands.
    src_f = jnp.take(n_h, src_idx, axis=0)
    dst_f = jnp.take(n_h, dst_idx, axis=0)
    e_h_new = _row_mlp([e_h, src_f, dst_f], p_e,
                       tile_rows=tile_e, vmem_limit=vmem_limit)
    n_h_new = _gn_node_update(ks, cnt, dst_2d, inv_deg, e_h_new, n_h, p_n,
                              tile_n=tile_n, tile_e=tile_e, vmem_limit=vmem_limit)
    return n_h_new, e_h_new


# ----------------------------------------------------------------------------
# Parameter init (deterministic, PyTorch nn.Linear-style uniform) + kernel prep
# ----------------------------------------------------------------------------
def _init_linear(key, fan_in, fan_out):
    kw, kb = jax.random.split(key)
    bound = 1.0 / math.sqrt(fan_in)
    w = jax.random.uniform(kw, (fan_in, fan_out), jnp.float32, -bound, bound)
    b = jax.random.uniform(kb, (1, fan_out), jnp.float32, -bound, bound)
    return w, b


def _init_mlp(key, in_size, latent, out_size):
    k1, k2, k3 = jax.random.split(key, 3)
    w1, b1 = _init_linear(k1, in_size, latent)
    w2, b2 = _init_linear(k2, latent, latent)
    w3, b3 = _init_linear(k3, latent, out_size)
    return {"w1": w1, "b1": b1, "w2": w2, "b2": b2, "w3": w3, "b3": b3}


def init_raw_params(key):
    """Unpadded f32 parameters matching the PyTorch module's layer sizes."""
    h = 64
    ks = jax.random.split(key, 7)
    return {
        "enc_n":   _init_mlp(ks[0], 2, 16, h),
        "enc_e":   _init_mlp(ks[1], 3, 16, h),
        "conv1_e": _init_mlp(ks[2], 3 * h, 16, h),   # [e, src, dst] concat folded
        "conv1_n": _init_mlp(ks[3], 2 * h, 16, h),   # [n, h_N] concat folded
        "conv3_e": _init_mlp(ks[4], 3 * h, 16, h),
        "conv3_n": _init_mlp(ks[5], 2 * h, 16, h),
        "dec":     _init_mlp(ks[6], 3 * h, h, 1),
    }


def _prep_mlp(p, in_splits, in_pad=None):
    """Zero-pad the hidden dim to 128 lanes (numerics-preserving: padded hidden
    units get zero bias and zero outgoing weights, relu(0)=0), optionally pad
    the first layer's input rows, split w1 at the concat boundaries, and
    pre-cast matmul weights to bf16 once (biases stay f32)."""
    lat = p["w1"].shape[1]
    pad = LATENT_PAD - lat
    w1 = jnp.pad(p["w1"], ((0, 0), (0, pad)))
    b1 = jnp.pad(p["b1"], ((0, 0), (0, pad)))
    w2 = jnp.pad(p["w2"], ((0, pad), (0, pad)))
    b2 = jnp.pad(p["b2"], ((0, 0), (0, pad)))
    w3 = jnp.pad(p["w3"], ((0, pad), (0, 0)))
    if in_pad is not None:
        w1 = jnp.pad(w1, ((0, in_pad - w1.shape[0]), (0, 0)))
    offs = [0]
    for s in in_splits:
        offs.append(offs[-1] + s)
    w1s = [w1[offs[i]:offs[i + 1]].astype(MM_DTYPE) for i in range(len(in_splits))]
    return {"w1s": w1s, "b1": b1,
            "w2": w2.astype(MM_DTYPE), "b2": b2,
            "w3": w3.astype(MM_DTYPE), "b3": p["b3"]}


def prepare_params(raw):
    h = 64
    return {
        "enc_n":   _prep_mlp(raw["enc_n"], [ENC_IN_PAD], in_pad=ENC_IN_PAD),
        "enc_e":   _prep_mlp(raw["enc_e"], [ENC_IN_PAD], in_pad=ENC_IN_PAD),
        "conv1_e": _prep_mlp(raw["conv1_e"], [h, h, h]),
        "conv1_n": _prep_mlp(raw["conv1_n"], [h, h]),
        "conv3_e": _prep_mlp(raw["conv3_e"], [h, h, h]),
        "conv3_n": _prep_mlp(raw["conv3_n"], [h, h]),
        "dec":     _prep_mlp(raw["dec"], [h, h, h]),
    }


# ----------------------------------------------------------------------------
# EncodeProcessDecode forward
# ----------------------------------------------------------------------------
def encode_process_decode(params, src, dst, C, F, A, SP1, SP0):
    """Returns (n_h [N,64], e_h [E,64], P [E]) in f32, original node/edge order."""
    vmem_limit, max_tile = _hw_config()
    N = C.shape[0]
    E = A.shape[0]
    tile_n = _pick_tile(N, max_tile)
    tile_e = _pick_tile(E, max_tile)
    N_p = _round_up(N, tile_n)
    E_p = _round_up(E, tile_e)
    num_n_tiles = N_p // tile_n
    num_e_tiles = E_p // tile_e

    def pad_rows(x, rows_p, value=0):
        widths = ((0, rows_p - x.shape[0]),) + ((0, 0),) * (x.ndim - 1)
        return jnp.pad(x, widths, constant_values=value)

    # --- graph glue: sort edges by dst so each node tile's incoming edges ----
    # occupy a contiguous edge-tile range (CSR-style aggregation).
    order = jnp.argsort(dst)
    inv_order = jnp.argsort(order)
    src_sorted = jnp.take(src, order, axis=0)
    dst_sorted = jnp.take(dst, order, axis=0)
    # Padded edge rows: gather index 0 (harmless, excluded from every output)
    # and dst sentinel 1<<30 (never matches a node id in the aggregation mask).
    src_idx = pad_rows(src_sorted, E_p)
    dst_idx = pad_rows(dst_sorted, E_p)
    dst_pad = pad_rows(dst_sorted, E_p, value=(1 << 30)).astype(jnp.int32)
    dst_2d = dst_pad.reshape(1, E_p)

    # Per-node-tile incident edge-tile ranges (scalar-prefetched into SMEM).
    bounds = jnp.arange(num_n_tiles + 1, dtype=jnp.int32) * tile_n
    pos = jnp.searchsorted(dst_pad, bounds, side="left").astype(jnp.int32)
    row_lo, row_hi = pos[:-1], pos[1:]
    ks = jnp.minimum(row_lo // tile_e, num_e_tiles - 1).astype(jnp.int32)
    ke = (row_hi + tile_e - 1) // tile_e
    cnt = jnp.where(row_hi > row_lo, ke - ks, 0).astype(jnp.int32)

    deg = jnp.zeros((N_p,), jnp.float32).at[dst].add(1.0)
    inv_deg = (1.0 / jnp.maximum(deg, 1.0)).reshape(N_p, 1)      # deg 0 -> h_N = 0

    # --- encoders -------------------------------------------------------------
    xn = jnp.concatenate([C, F], axis=1)
    xn = jnp.pad(xn, ((0, N_p - N), (0, ENC_IN_PAD - xn.shape[1]))).astype(MM_DTYPE)
    xe = jnp.take(jnp.concatenate([A, SP1, SP0], axis=1), order, axis=0)
    xe = jnp.pad(xe, ((0, E_p - E), (0, ENC_IN_PAD - xe.shape[1]))).astype(MM_DTYPE)
    n_h = _row_mlp([xn], params["enc_n"], tile_rows=tile_n, vmem_limit=vmem_limit)
    e_h = _row_mlp([xe], params["enc_e"], tile_rows=tile_e, vmem_limit=vmem_limit)
    # NOTE: rows [N, N_p) of n_h and [E, E_p) of e_h hold sigmoid(bias) garbage.
    # They never contribute (pad dst never matches in aggregation) and are sliced
    # off below -- do not consume the padded rows anywhere else.

    # --- two GN blocks (conv1, conv3) ------------------------------------------
    for blk in ("conv1", "conv3"):
        n_h, e_h = _gn_block(params[blk + "_e"], params[blk + "_n"],
                             src_idx, dst_idx, ks, cnt, dst_2d, inv_deg, n_h, e_h,
                             tile_n=tile_n, tile_e=tile_e, vmem_limit=vmem_limit)

    # --- edge decoder -----------------------------------------------------------
    pd = params["dec"]
    src_f = jnp.take(n_h, src_idx, axis=0)
    dst_f = jnp.take(n_h, dst_idx, axis=0)
    P = _row_mlp([e_h, src_f, dst_f], pd, tile_rows=tile_e,
                 vmem_limit=vmem_limit, out_dtype=jnp.float32)

    # --- un-permute back to the original edge order -----------------------------
    n_out = n_h[:N].astype(jnp.float32)
    e_out = jnp.take(e_h[:E], inv_order, axis=0).astype(jnp.float32)
    P_out = jnp.take(P[:E, 0], inv_order, axis=0)
    return n_out, e_out, P_out


# ----------------------------------------------------------------------------
# Pure-JAX f32 reference (mirrors the PyTorch module)
# ----------------------------------------------------------------------------
def _mlp_ref(p, x):
    h = jnp.maximum(x @ p["w1"] + p["b1"], 0.0)
    h = jnp.maximum(h @ p["w2"] + p["b2"], 0.0)
    return jax.nn.sigmoid(h @ p["w3"] + p["b3"])


def reference_forward(raw, src, dst, C, F, A, SP1, SP0):
    N = C.shape[0]
    n_h = _mlp_ref(raw["enc_n"], jnp.concatenate([C, F], axis=1))
    e_h = _mlp_ref(raw["enc_e"], jnp.concatenate([A, SP1, SP0], axis=1))
    for blk in ("conv1", "conv3"):
        e_new = _mlp_ref(raw[blk + "_e"],
                         jnp.concatenate([e_h, n_h[src], n_h[dst]], axis=1))
        agg = jnp.zeros((N, e_new.shape[1]), jnp.float32).at[dst].add(e_new)
        deg = jnp.zeros((N,), jnp.float32).at[dst].add(1.0)
        h_N = agg / jnp.maximum(deg, 1.0)[:, None]
        n_h = _mlp_ref(raw[blk + "_n"], jnp.concatenate([n_h, h_N], axis=1))
        e_h = e_new
    P = _mlp_ref(raw["dec"], jnp.concatenate([e_h, n_h[src], n_h[dst]], axis=1))[:, 0]
    return n_h, e_h, P


# ----------------------------------------------------------------------------
if __name__ == "__main__":
    N_NODES, N_EDGES = 48, 160

    key = jax.random.PRNGKey(0)
    kp, k1, k2, k3, k4, k5, k6, k7 = jax.random.split(key, 8)
    raw = init_raw_params(kp)
    params = prepare_params(raw)

    src = jax.random.randint(k1, (N_EDGES,), 0, N_NODES, dtype=jnp.int32)
    dst = jax.random.randint(k2, (N_EDGES,), 0, N_NODES, dtype=jnp.int32)
    C = jax.random.normal(k3, (N_NODES, 1), jnp.float32)
    F = jax.random.normal(k4, (N_NODES, 1), jnp.float32)
    A = jax.random.normal(k5, (N_EDGES, 1), jnp.float32)
    SP1 = jax.random.normal(k6, (N_EDGES, 1), jnp.float32)
    SP0 = jax.random.normal(k7, (N_EDGES, 1), jnp.float32)

    fwd = jax.jit(encode_process_decode)
    n_h, e_h, P = fwd(params, src, dst, C, F, A, SP1, SP0)
    jax.block_until_ready((n_h, e_h, P))

    assert n_h.shape == (N_NODES, 64)
    assert e_h.shape == (N_EDGES, 64)
    assert P.shape == (N_EDGES,)
    assert bool(jnp.all(jnp.isfinite(n_h)))
    assert bool(jnp.all(jnp.isfinite(e_h)))
    assert bool(jnp.all(jnp.isfinite(P)))

    # f32 reference comparison (loose tolerance: bf16 matmuls / bf16 activations).
    n_ref, e_ref, P_ref = reference_forward(raw, src, dst, C, F, A, SP1, SP0)
    max_err = max(float(jnp.max(jnp.abs(n_h - n_ref))),
                  float(jnp.max(jnp.abs(e_h - e_ref))),
                  float(jnp.max(jnp.abs(P - P_ref))))
    assert max_err < 0.1, f"deviation from f32 reference too large: {max_err}"

    print("KERNEL_OK")
</pallas_src>

<mosaic_0001>
module attributes {stable_mosaic.version = 11 : i64} {
  func.func private @main(%arg0: i32) attributes {dimension_semantics = [#tpu.dimension_semantics<core_parallel>], iteration_bounds = array<i64: 2>, tpu.core_type = #tpu.core_type<sc_scalar_subcore>, window_params = []} {
    return
  }
}

module attributes {stable_mosaic.version = 11 : i64} {
  func.func private @main(%arg0: i32) attributes {dimension_semantics = [#tpu.dimension_semantics<core_parallel>], iteration_bounds = array<i64: 2>, tpu.core_type = #tpu.core_type<sc_scalar_subcore>, window_params = []} {
    return
  }
}

module attributes {stable_mosaic.version = 11 : i64} {
  func.func @kernel(%arg0: i32, %arg1: memref<128x16xbf16, #tpu.memory_space<vmem>>, %arg2: memref<16x128xbf16, #tpu.memory_space<vmem>>, %arg3: memref<1x128xf32, #tpu.memory_space<vmem>>, %arg4: memref<128x128xbf16, #tpu.memory_space<vmem>>, %arg5: memref<1x128xf32, #tpu.memory_space<vmem>>, %arg6: memref<128x64xbf16, #tpu.memory_space<vmem>>, %arg7: memref<1x64xf32, #tpu.memory_space<vmem>>, %arg8: memref<128x64xbf16, #tpu.memory_space<vmem>>) attributes {dimension_semantics = [#tpu.dimension_semantics<parallel>], iteration_bounds = array<i64: 1>, scalar_prefetch = 0 : i64, scratch_operands = 0 : i64, tpu.core_type = #tpu.core_type<tc>, window_params = [{transform_indices = @transform_0, window_bounds = array<i64: 128, 16>}, {pipeline_mode = #tpu.pipeline_mode<synchronous>, transform_indices = @transform_1, window_bounds = array<i64: 16, 128>}, {pipeline_mode = #tpu.pipeline_mode<synchronous>, transform_indices = @transform_2, window_bounds = array<i64: 1, 128>}, {pipeline_mode = #tpu.pipeline_mode<synchronous>, transform_indices = @transform_3, window_bounds = array<i64: 128, 128>}, {pipeline_mode = #tpu.pipeline_mode<synchronous>, transform_indices = @transform_4, window_bounds = array<i64: 1, 128>}, {pipeline_mode = #tpu.pipeline_mode<synchronous>, transform_indices = @transform_5, window_bounds = array<i64: 128, 64>}, {pipeline_mode = #tpu.pipeline_mode<synchronous>, transform_indices = @transform_6, window_bounds = array<i64: 1, 64>}, {transform_indices = @transform_7, window_bounds = array<i64: 128, 64>}]} {
    %c0 = arith.constant 0 : index
    %c0_0 = arith.constant 0 : index
    %0 = vector.load %arg3[%c0, %c0_0] : memref<1x128xf32, #tpu.memory_space<vmem>>, vector<1x128xf32>
    %c0_1 = arith.constant 0 : index
    %c0_2 = arith.constant 0 : index
    %1 = vector.load %arg1[%c0_1, %c0_2] : memref<128x16xbf16, #tpu.memory_space<vmem>>, vector<128x16xbf16>
    %c0_3 = arith.constant 0 : index
    %c0_4 = arith.constant 0 : index
    %2 = vector.load %arg2[%c0_3, %c0_4] : memref<16x128xbf16, #tpu.memory_space<vmem>>, vector<16x128xbf16>
    %cst = arith.constant dense<0.000000e+00> : vector<128x128xf32>
    %3 = tpu.matmul %1, %2, %cst {dimension_numbers = #tpu.dot_dimension_numbers<[1], [0], [0], [1], [0, 0, 1, 1], [], []>} : vector<128x16xbf16>, vector<16x128xbf16>, vector<128x128xf32> -> vector<128x128xf32>
    %4 = vector.broadcast %0 : vector<1x128xf32> to vector<128x128xf32>
    %5 = arith.addf %4, %3 : vector<128x128xf32>
    %cst_5 = arith.constant 0.000000e+00 : f32
    %6 = vector.broadcast %cst_5 : f32 to vector<128x128xf32>
    %7 = arith.maximumf %5, %6 : vector<128x128xf32>
    %8 = arith.truncf %7 : vector<128x128xf32> to vector<128x128xbf16>
    %c0_6 = arith.constant 0 : index
    %c0_7 = arith.constant 0 : index
    %9 = vector.load %arg4[%c0_6, %c0_7] : memref<128x128xbf16, #tpu.memory_space<vmem>>, vector<128x128xbf16>
    %cst_8 = arith.constant dense<0.000000e+00> : vector<128x128xf32>
    %10 = tpu.matmul %8, %9, %cst_8 {dimension_numbers = #tpu.dot_dimension_numbers<[1], [0], [0], [1], [0, 0, 1, 1], [], []>} : vector<128x128xbf16>, vector<128x128xbf16>, vector<128x128xf32> -> vector<128x128xf32>
    %c0_9 = arith.constant 0 : index
    %c0_10 = arith.constant 0 : index
    %11 = vector.load %arg5[%c0_9, %c0_10] : memref<1x128xf32, #tpu.memory_space<vmem>>, vector<1x128xf32>
    %12 = vector.broadcast %11 : vector<1x128xf32> to vector<128x128xf32>
    %13 = arith.addf %10, %12 : vector<128x128xf32>
    %cst_11 = arith.constant 0.000000e+00 : f32
    %14 = vector.broadcast %cst_11 : f32 to vector<128x128xf32>
    %15 = arith.maximumf %13, %14 : vector<128x128xf32>
    %16 = arith.truncf %15 : vector<128x128xf32> to vector<128x128xbf16>
    %c0_12 = arith.constant 0 : index
    %c0_13 = arith.constant 0 : index
    %17 = vector.load %arg6[%c0_12, %c0_13] : memref<128x64xbf16, #tpu.memory_space<vmem>>, vector<128x64xbf16>
    %cst_14 = arith.constant dense<0.000000e+00> : vector<128x64xf32>
    %18 = tpu.matmul %16, %17, %cst_14 {dimension_numbers = #tpu.dot_dimension_numbers<[1], [0], [0], [1], [0, 0, 1, 1], [], []>} : vector<128x128xbf16>, vector<128x64xbf16>, vector<128x64xf32> -> vector<128x64xf32>
    %c0_15 = arith.constant 0 : index
    %c0_16 = arith.constant 0 : index
    %19 = vector.load %arg7[%c0_15, %c0_16] : memref<1x64xf32, #tpu.memory_space<vmem>>, vector<1x64xf32>
    %20 = vector.broadcast %19 : vector<1x64xf32> to vector<128x64xf32>
    %21 = arith.addf %18, %20 : vector<128x64xf32>
    %22 = arith.negf %21 : vector<128x64xf32>
    %23 = math.exp %22 : vector<128x64xf32>
    %cst_17 = arith.constant 1.000000e+00 : f32
    %24 = vector.broadcast %cst_17 : f32 to vector<128x64xf32>
    %25 = arith.addf %24, %23 : vector<128x64xf32>
    %26 = arith.divf %24, %25 : vector<128x64xf32>
    %27 = arith.truncf %26 : vector<128x64xf32> to vector<128x64xbf16>
    %c0_18 = arith.constant 0 : index
    %c0_19 = arith.constant 0 : index
    %28 = vector.load %arg8[%c0_18, %c0_19] : memref<128x64xbf16, #tpu.memory_space<vmem>>, vector<128x64xbf16>
    tpu.vector_store %arg8[%c0_18, %c0_19], %27 {strides = array<i32>} : memref<128x64xbf16, #tpu.memory_space<vmem>>, vector<128x64xbf16>,
    return
  }
  func.func @transform_0(%arg0: i32) -> (i32, i32) {
    %c0_i32 = arith.constant 0 : i32
    %c0_i32_0 = arith.constant 0 : i32
    return %arg0, %c0_i32 : i32, i32
  }
  func.func @transform_1(%arg0: i32) -> (i32, i32) {
    %c0_i32 = arith.constant 0 : i32
    %c0_i32_0 = arith.constant 0 : i32
    %c0_i32_1 = arith.constant 0 : i32
    return %c0_i32, %c0_i32_0 : i32, i32
  }
  func.func @transform_2(%arg0: i32) -> (i32, i32) {
    %c0_i32 = arith.constant 0 : i32
    %c0_i32_0 = arith.constant 0 : i32
    %c0_i32_1 = arith.constant 0 : i32
    return %c0_i32, %c0_i32_0 : i32, i32
  }
  func.func @transform_3(%arg0: i32) -> (i32, i32) {
    %c0_i32 = arith.constant 0 : i32
    %c0_i32_0 = arith.constant 0 : i32
    %c0_i32_1 = arith.constant 0 : i32
    return %c0_i32, %c0_i32_0 : i32, i32
  }
  func.func @transform_4(%arg0: i32) -> (i32, i32) {
    %c0_i32 = arith.constant 0 : i32
    %c0_i32_0 = arith.constant 0 : i32
    %c0_i32_1 = arith.constant 0 : i32
    return %c0_i32, %c0_i32_0 : i32, i32
  }
  func.func @transform_5(%arg0: i32) -> (i32, i32) {
    %c0_i32 = arith.constant 0 : i32
    %c0_i32_0 = arith.constant 0 : i32
    %c0_i32_1 = arith.constant 0 : i32
    return %c0_i32, %c0_i32_0 : i32, i32
  }
  func.func @transform_6(%arg0: i32) -> (i32, i32) {
    %c0_i32 = arith.constant 0 : i32
    %c0_i32_0 = arith.constant 0 : i32
    %c0_i32_1 = arith.constant 0 : i32
    return %c0_i32, %c0_i32_0 : i32, i32
  }
  func.func @transform_7(%arg0: i32) -> (i32, i32) {
    %c0_i32 = arith.constant 0 : i32
    %c0_i32_0 = arith.constant 0 : i32
    return %arg0, %c0_i32 : i32, i32
  }
}

module attributes {stable_mosaic.version = 11 : i64} {
  func.func @kernel(%arg0: i32, %arg1: memref<128x16xbf16, #tpu.memory_space<vmem>>, %arg2: memref<16x128xbf16, #tpu.memory_space<vmem>>, %arg3: memref<1x128xf32, #tpu.memory_space<vmem>>, %arg4: memref<128x128xbf16, #tpu.memory_space<vmem>>, %arg5: memref<1x128xf32, #tpu.memory_space<vmem>>, %arg6: memref<128x64xbf16, #tpu.memory_space<vmem>>, %arg7: memref<1x64xf32, #tpu.memory_space<vmem>>, %arg8: memref<128x64xbf16, #tpu.memory_space<vmem>>) attributes {dimension_semantics = [#tpu.dimension_semantics<parallel>], iteration_bounds = array<i64: 2>, scalar_prefetch = 0 : i64, scratch_operands = 0 : i64, tpu.core_type = #tpu.core_type<tc>, window_params = [{transform_indices = @transform_0, window_bounds = array<i64: 128, 16>}, {pipeline_mode = #tpu.pipeline_mode<synchronous>, transform_indices = @transform_1, window_bounds = array<i64: 16, 128>}, {pipeline_mode = #tpu.pipeline_mode<synchronous>, transform_indices = @transform_2, window_bounds = array<i64: 1, 128>}, {pipeline_mode = #tpu.pipeline_mode<synchronous>, transform_indices = @transform_3, window_bounds = array<i64: 128, 128>}, {pipeline_mode = #tpu.pipeline_mode<synchronous>, transform_indices = @transform_4, window_bounds = array<i64: 1, 128>}, {pipeline_mode = #tpu.pipeline_mode<synchronous>, transform_indices = @transform_5, window_bounds = array<i64: 128, 64>}, {pipeline_mode = #tpu.pipeline_mode<synchronous>, transform_indices = @transform_6, window_bounds = array<i64: 1, 64>}, {transform_indices = @transform_7, window_bounds = array<i64: 128, 64>}]} {
    %c0 = arith.constant 0 : index
    %c0_0 = arith.constant 0 : index
    %0 = vector.load %arg3[%c0, %c0_0] : memref<1x128xf32, #tpu.memory_space<vmem>>, vector<1x128xf32>
    %c0_1 = arith.constant 0 : index
    %c0_2 = arith.constant 0 : index
    %1 = vector.load %arg1[%c0_1, %c0_2] : memref<128x16xbf16, #tpu.memory_space<vmem>>, vector<128x16xbf16>
    %c0_3 = arith.constant 0 : index
    %c0_4 = arith.constant 0 : index
    %2 = vector.load %arg2[%c0_3, %c0_4] : memref<16x128xbf16, #tpu.memory_space<vmem>>, vector<16x128xbf16>
    %cst = arith.constant dense<0.000000e+00> : vector<128x128xf32>
    %3 = tpu.matmul %1, %2, %cst {dimension_numbers = #tpu.dot_dimension_numbers<[1], [0], [0], [1], [0, 0, 1, 1], [], []>} : vector<128x16xbf16>, vector<16x128xbf16>, vector<128x128xf32> -> vector<128x128xf32>
    %4 = vector.broadcast %0 : vector<1x128xf32> to vector<128x128xf32>
    %5 = arith.addf %4, %3 : vector<128x128xf32>
    %cst_5 = arith.constant 0.000000e+00 : f32
    %6 = vector.broadcast %cst_5 : f32 to vector<128x128xf32>
    %7 = arith.maximumf %5, %6 : vector<128x128xf32>
    %8 = arith.truncf %7 : vector<128x128xf32> to vector<128x128xbf16>
    %c0_6 = arith.constant 0 : index
    %c0_7 = arith.constant 0 : index
    %9 = vector.load %arg4[%c0_6, %c0_7] : memref<128x128xbf16, #tpu.memory_space<vmem>>, vector<128x128xbf16>
    %cst_8 = arith.constant dense<0.000000e+00> : vector<128x128xf32>
    %10 = tpu.matmul %8, %9, %cst_8 {dimension_numbers = #tpu.dot_dimension_numbers<[1], [0], [0], [1], [0, 0, 1, 1], [], []>} : vector<128x128xbf16>, vector<128x128xbf16>, vector<128x128xf32> -> vector<128x128xf32>
    %c0_9 = arith.constant 0 : index
    %c0_10 = arith.constant 0 : index
    %11 = vector.load %arg5[%c0_9, %c0_10] : memref<1x128xf32, #tpu.memory_space<vmem>>, vector<1x128xf32>
    %12 = vector.broadcast %11 : vector<1x128xf32> to vector<128x128xf32>
    %13 = arith.addf %10, %12 : vector<128x128xf32>
    %cst_11 = arith.constant 0.000000e+00 : f32
    %14 = vector.broadcast %cst_11 : f32 to vector<128x128xf32>
    %15 = arith.maximumf %13, %14 : vector<128x128xf32>
    %16 = arith.truncf %15 : vector<128x128xf32> to vector<128x128xbf16>
    %c0_12 = arith.constant 0 : index
    %c0_13 = arith.constant 0 : index
    %17 = vector.load %arg6[%c0_12, %c0_13] : memref<128x64xbf16, #tpu.memory_space<vmem>>, vector<128x64xbf16>
    %cst_14 = arith.constant dense<0.000000e+00> : vector<128x64xf32>
    %18 = tpu.matmul %16, %17, %cst_14 {dimension_numbers = #tpu.dot_dimension_numbers<[1], [0], [0], [1], [0, 0, 1, 1], [], []>} : vector<128x128xbf16>, vector<128x64xbf16>, vector<128x64xf32> -> vector<128x64xf32>
    %c0_15 = arith.constant 0 : index
    %c0_16 = arith.constant 0 : index
    %19 = vector.load %arg7[%c0_15, %c0_16] : memref<1x64xf32, #tpu.memory_space<vmem>>, vector<1x64xf32>
    %20 = vector.broadcast %19 : vector<1x64xf32> to vector<128x64xf32>
    %21 = arith.addf %18, %20 : vector<128x64xf32>
    %22 = arith.negf %21 : vector<128x64xf32>
    %23 = math.exp %22 : vector<128x64xf32>
    %cst_17 = arith.constant 1.000000e+00 : f32
    %24 = vector.broadcast %cst_17 : f32 to vector<128x64xf32>
    %25 = arith.addf %24, %23 : vector<128x64xf32>
    %26 = arith.divf %24, %25 : vector<128x64xf32>
    %27 = arith.truncf %26 : vector<128x64xf32> to vector<128x64xbf16>
    %c0_18 = arith.constant 0 : index
    %c0_19 = arith.constant 0 : index
    %28 = vector.load %arg8[%c0_18, %c0_19] : memref<128x64xbf16, #tpu.memory_space<vmem>>, vector<128x64xbf16>
    tpu.vector_store %arg8[%c0_18, %c0_19], %27 {strides = array<i32>} : memref<128x64xbf16, #tpu.memory_space<vmem>>, vector<128x64xbf16>,
    return
  }
  func.func @transform_0(%arg0: i32) -> (i32, i32) {
    %c0_i32 = arith.constant 0 : i32
    %c0_i32_0 = arith.constant 0 : i32
    return %arg0, %c0_i32 : i32, i32
  }
  func.func @transform_1(%arg0: i32) -> (i32, i32) {
    %c0_i32 = arith.constant 0 : i32
    %c0_i32_0 = arith.constant 0 : i32
    %c0_i32_1 = arith.constant 0 : i32
    return %c0_i32, %c0_i32_0 : i32, i32
  }
  func.func @transform_2(%arg0: i32) -> (i32, i32) {
    %c0_i32 = arith.constant 0 : i32
    %c0_i32_0 = arith.constant 0 : i32
    %c0_i32_1 = arith.constant 0 : i32
    return %c0_i32, %c0_i32_0 : i32, i32
  }
  func.func @transform_3(%arg0: i32) -> (i32, i32) {
    %c0_i32 = arith.constant 0 : i32
    %c0_i32_0 = arith.constant 0 : i32
    %c0_i32_1 = arith.constant 0 : i32
    return %c0_i32, %c0_i32_0 : i32, i32
  }
  func.func @transform_4(%arg0: i32) -> (i32, i32) {
    %c0_i32 = arith.constant 0 : i32
    %c0_i32_0 = arith.constant 0 : i32
    %c0_i32_1 = arith.constant 0 : i32
    return %c0_i32, %c0_i32_0 : i32, i32
  }
  func.func @transform_5(%arg0: i32) -> (i32, i32) {
    %c0_i32 = arith.constant 0 : i32
    %c0_i32_0 = arith.constant 0 : i32
    %c0_i32_1 = arith.constant 0 : i32
    return %c0_i32, %c0_i32_0 : i32, i32
  }
  func.func @transform_6(%arg0: i32) -> (i32, i32) {
    %c0_i32 = arith.constant 0 : i32
    %c0_i32_0 = arith.constant 0 : i32
    %c0_i32_1 = arith.constant 0 : i32
    return %c0_i32, %c0_i32_0 : i32, i32
  }
  func.func @transform_7(%arg0: i32) -> (i32, i32) {
    %c0_i32 = arith.constant 0 : i32
    %c0_i32_0 = arith.constant 0 : i32
    return %arg0, %c0_i32 : i32, i32
  }
}

module attributes {stable_mosaic.version = 11 : i64} {
  func.func @kernel(%arg0: i32, %arg1: memref<128x64xbf16, #tpu.memory_space<vmem>>, %arg2: memref<128x64xbf16, #tpu.memory_space<vmem>>, %arg3: memref<128x64xbf16, #tpu.memory_space<vmem>>, %arg4: memref<64x128xbf16, #tpu.memory_space<vmem>>, %arg5: memref<64x128xbf16, #tpu.memory_space<vmem>>, %arg6: memref<64x128xbf16, #tpu.memory_space<vmem>>, %arg7: memref<1x128xf32, #tpu.memory_space<vmem>>, %arg8: memref<128x128xbf16, #tpu.memory_space<vmem>>, %arg9: memref<1x128xf32, #tpu.memory_space<vmem>>, %arg10: memref<128x64xbf16, #tpu.memory_space<vmem>>, %arg11: memref<1x64xf32, #tpu.memory_space<vmem>>, %arg12: memref<128x64xbf16, #tpu.memory_space<vmem>>) attributes {dimension_semantics = [#tpu.dimension_semantics<parallel>], iteration_bounds = array<i64: 2>, scalar_prefetch = 0 : i64, scratch_operands = 0 : i64, tpu.core_type = #tpu.core_type<tc>, window_params = [{transform_indices = @transform_0, window_bounds = array<i64: 128, 64>}, {transform_indices = @transform_1, window_bounds = array<i64: 128, 64>}, {transform_indices = @transform_2, window_bounds = array<i64: 128, 64>}, {pipeline_mode = #tpu.pipeline_mode<synchronous>, transform_indices = @transform_3, window_bounds = array<i64: 64, 128>}, {pipeline_mode = #tpu.pipeline_mode<synchronous>, transform_indices = @transform_4, window_bounds = array<i64: 64, 128>}, {pipeline_mode = #tpu.pipeline_mode<synchronous>, transform_indices = @transform_5, window_bounds = array<i64: 64, 128>}, {pipeline_mode = #tpu.pipeline_mode<synchronous>, transform_indices = @transform_6, window_bounds = array<i64: 1, 128>}, {pipeline_mode = #tpu.pipeline_mode<synchronous>, transform_indices = @transform_7, window_bounds = array<i64: 128, 128>}, {pipeline_mode = #tpu.pipeline_mode<synchronous>, transform_indices = @transform_8, window_bounds = array<i64: 1, 128>}, {pipeline_mode = #tpu.pipeline_mode<synchronous>, transform_indices = @transform_9, window_bounds = array<i64: 128, 64>}, {pipeline_mode = #tpu.pipeline_mode<synchronous>, transform_indices = @transform_10, window_bounds = array<i64: 1, 64>}, {transform_indices = @transform_11, window_bounds = array<i64: 128, 64>}]} {
    %c0 = arith.constant 0 : index
    %c0_0 = arith.constant 0 : index
    %0 = vector.load %arg7[%c0, %c0_0] : memref<1x128xf32, #tpu.memory_space<vmem>>, vector<1x128xf32>
    %c0_1 = arith.constant 0 : index
    %c0_2 = arith.constant 0 : index
    %1 = vector.load %arg1[%c0_1, %c0_2] : memref<128x64xbf16, #tpu.memory_space<vmem>>, vector<128x64xbf16>
    %c0_3 = arith.constant 0 : index
    %c0_4 = arith.constant 0 : index
    %2 = vector.load %arg4[%c0_3, %c0_4] : memref<64x128xbf16, #tpu.memory_space<vmem>>, vector<64x128xbf16>
    %cst = arith.constant dense<0.000000e+00> : vector<128x128xf32>
    %3 = tpu.matmul %1, %2, %cst {dimension_numbers = #tpu.dot_dimension_numbers<[1], [0], [0], [1], [0, 0, 1, 1], [], []>} : vector<128x64xbf16>, vector<64x128xbf16>, vector<128x128xf32> -> vector<128x128xf32>
    %4 = vector.broadcast %0 : vector<1x128xf32> to vector<128x128xf32>
    %5 = arith.addf %4, %3 : vector<128x128xf32>
    %c0_5 = arith.constant 0 : index
    %c0_6 = arith.constant 0 : index
    %6 = vector.load %arg2[%c0_5, %c0_6] : memref<128x64xbf16, #tpu.memory_space<vmem>>, vector<128x64xbf16>
    %c0_7 = arith.constant 0 : index
    %c0_8 = arith.constant 0 : index
    %7 = vector.load %arg5[%c0_7, %c0_8] : memref<64x128xbf16, #tpu.memory_space<vmem>>, vector<64x128xbf16>
    %cst_9 = arith.constant dense<0.000000e+00> : vector<128x128xf32>
    %8 = tpu.matmul %6, %7, %cst_9 {dimension_numbers = #tpu.dot_dimension_numbers<[1], [0], [0], [1], [0, 0, 1, 1], [], []>} : vector<128x64xbf16>, vector<64x128xbf16>, vector<128x128xf32> -> vector<128x128xf32>
    %9 = arith.addf %5, %8 : vector<128x128xf32>
    %c0_10 = arith.constant 0 : index
    %c0_11 = arith.constant 0 : index
    %10 = vector.load %arg3[%c0_10, %c0_11] : memref<128x64xbf16, #tpu.memory_space<vmem>>, vector<128x64xbf16>
    %c0_12 = arith.constant 0 : index
    %c0_13 = arith.constant 0 : index
    %11 = vector.load %arg6[%c0_12, %c0_13] : memref<64x128xbf16, #tpu.memory_space<vmem>>, vector<64x128xbf16>
    %cst_14 = arith.constant dense<0.000000e+00> : vector<128x128xf32>
    %12 = tpu.matmul %10, %11, %cst_14 {dimension_numbers = #tpu.dot_dimension_numbers<[1], [0], [0], [1], [0, 0, 1, 1], [], []>} : vector<128x64xbf16>, vector<64x128xbf16>, vector<128x128xf32> -> vector<128x128xf32>
    %13 = arith.addf %9, %12 : vector<128x128xf32>
    %cst_15 = arith.constant 0.000000e+00 : f32
    %14 = vector.broadcast %cst_15 : f32 to vector<128x128xf32>
    %15 = arith.maximumf %13, %14 : vector<128x128xf32>
    %16 = arith.truncf %15 : vector<128x128xf32> to vector<128x128xbf16>
    %c0_16 = arith.constant 0 : index
    %c0_17 = arith.constant 0 : index
    %17 = vector.load %arg8[%c0_16, %c0_17] : memref<128x128xbf16, #tpu.memory_space<vmem>>, vector<128x128xbf16>
    %cst_18 = arith.constant dense<0.000000e+00> : vector<128x128xf32>
    %18 = tpu.matmul %16, %17, %cst_18 {dimension_numbers = #tpu.dot_dimension_numbers<[1], [0], [0], [1], [0, 0, 1, 1], [], []>} : vector<128x128xbf16>, vector<128x128xbf16>, vector<128x128xf32> -> vector<128x128xf32>
    %c0_19 = arith.constant 0 : index
    %c0_20 = arith.constant 0 : index
    %19 = vector.load %arg9[%c0_19, %c0_20] : memref<1x128xf32, #tpu.memory_space<vmem>>, vector<1x128xf32>
    %20 = vector.broadcast %19 : vector<1x128xf32> to vector<128x128xf32>
    %21 = arith.addf %18, %20 : vector<128x128xf32>
    %cst_21 = arith.constant 0.000000e+00 : f32
    %22 = vector.broadcast %cst_21 : f32 to vector<128x128xf32>
    %23 = arith.maximumf %21, %22 : vector<128x128xf32>
    %24 = arith.truncf %23 : vector<128x128xf32> to vector<128x128xbf16>
    %c0_22 = arith.constant 0 : index
    %c0_23 = arith.constant 0 : index
    %25 = vector.load %arg10[%c0_22, %c0_23] : memref<128x64xbf16, #tpu.memory_space<vmem>>, vector<128x64xbf16>
    %cst_24 = arith.constant dense<0.000000e+00> : vector<128x64xf32>
    %26 = tpu.matmul %24, %25, %cst_24 {dimension_numbers = #tpu.dot_dimension_numbers<[1], [0], [0], [1], [0, 0, 1, 1], [], []>} : vector<128x128xbf16>, vector<128x64xbf16>, vector<128x64xf32> -> vector<128x64xf32>
    %c0_25 = arith.constant 0 : index
    %c0_26 = arith.constant 0 : index
    %27 = vector.load %arg11[%c0_25, %c0_26] : memref<1x64xf32, #tpu.memory_space<vmem>>, vector<1x64xf32>
    %28 = vector.broadcast %27 : vector<1x64xf32> to vector<128x64xf32>
    %29 = arith.addf %26, %28 : vector<128x64xf32>
    %30 = arith.negf %29 : vector<128x64xf32>
    %31 = math.exp %30 : vector<128x64xf32>
    %cst_27 = arith.constant 1.000000e+00 : f32
    %32 = vector.broadcast %cst_27 : f32 to vector<128x64xf32>
    %33 = arith.addf %32, %31 : vector<128x64xf32>
    %34 = arith.divf %32, %33 : vector<128x64xf32>
    %35 = arith.truncf %34 : vector<128x64xf32> to vector<128x64xbf16>
    %c0_28 = arith.constant 0 : index
    %c0_29 = arith.constant 0 : index
    %36 = vector.load %arg12[%c0_28, %c0_29] : memref<128x64xbf16, #tpu.memory_space<vmem>>, vector<128x64xbf16>
    tpu.vector_store %arg12[%c0_28, %c0_29], %35 {strides = array<i32>} : memref<128x64xbf16, #tpu.memory_space<vmem>>, vector<128x64xbf16>,
    return
  }
  func.func @transform_0(%arg0: i32) -> (i32, i32) {
    %c0_i32 = arith.constant 0 : i32
    %c0_i32_0 = arith.constant 0 : i32
    return %arg0, %c0_i32 : i32, i32
  }
  func.func @transform_1(%arg0: i32) -> (i32, i32) {
    %c0_i32 = arith.constant 0 : i32
    %c0_i32_0 = arith.constant 0 : i32
    return %arg0, %c0_i32 : i32, i32
  }
  func.func @transform_2(%arg0: i32) -> (i32, i32) {
    %c0_i32 = arith.constant 0 : i32
    %c0_i32_0 = arith.constant 0 : i32
    return %arg0, %c0_i32 : i32, i32
  }
  func.func @transform_3(%arg0: i32) -> (i32, i32) {
    %c0_i32 = arith.constant 0 : i32
    %c0_i32_0 = arith.constant 0 : i32
    %c0_i32_1 = arith.constant 0 : i32
    return %c0_i32, %c0_i32_0 : i32, i32
  }
  func.func @transform_4(%arg0: i32) -> (i32, i32) {
    %c0_i32 = arith.constant 0 : i32
    %c0_i32_0 = arith.constant 0 : i32
    %c0_i32_1 = arith.constant 0 : i32
    return %c0_i32, %c0_i32_0 : i32, i32
  }
  func.func @transform_5(%arg0: i32) -> (i32, i32) {
    %c0_i32 = arith.constant 0 : i32
    %c0_i32_0 = arith.constant 0 : i32
    %c0_i32_1 = arith.constant 0 : i32
    return %c0_i32, %c0_i32_0 : i32, i32
  }
  func.func @transform_6(%arg0: i32) -> (i32, i32) {
    %c0_i32 = arith.constant 0 : i32
    %c0_i32_0 = arith.constant 0 : i32
    %c0_i32_1 = arith.constant 0 : i32
    return %c0_i32, %c0_i32_0 : i32, i32
  }
  func.func @transform_7(%arg0: i32) -> (i32, i32) {
    %c0_i32 = arith.constant 0 : i32
    %c0_i32_0 = arith.constant 0 : i32
    %c0_i32_1 = arith.constant 0 : i32
    return %c0_i32, %c0_i32_0 : i32, i32
  }
  func.func @transform_8(%arg0: i32) -> (i32, i32) {
    %c0_i32 = arith.constant 0 : i32
    %c0_i32_0 = arith.constant 0 : i32
    %c0_i32_1 = arith.constant 0 : i32
    return %c0_i32, %c0_i32_0 : i32, i32
  }
  func.func @transform_9(%arg0: i32) -> (i32, i32) {
    %c0_i32 = arith.constant 0 : i32
    %c0_i32_0 = arith.constant 0 : i32
    %c0_i32_1 = arith.constant 0 : i32
    return %c0_i32, %c0_i32_0 : i32, i32
  }
  func.func @transform_10(%arg0: i32) -> (i32, i32) {
    %c0_i32 = arith.constant 0 : i32
    %c0_i32_0 = arith.constant 0 : i32
    %c0_i32_1 = arith.constant 0 : i32
    return %c0_i32, %c0_i32_0 : i32, i32
  }
  func.func @transform_11(%arg0: i32) -> (i32, i32) {
    %c0_i32 = arith.constant 0 : i32
    %c0_i32_0 = arith.constant 0 : i32
    return %arg0, %c0_i32 : i32, i32
  }
}

module attributes {stable_mosaic.version = 11 : i64} {
  func.func @_gn_node_kernel(%arg0: i32, %arg1: i32, %arg2: memref<1xi32, #tpu.memory_space<smem>>, %arg3: memref<1xi32, #tpu.memory_space<smem>>, %arg4: memref<1x128xi32, #tpu.memory_space<vmem>>, %arg5: memref<128x1xf32, #tpu.memory_space<vmem>>, %arg6: memref<128x64xbf16, #tpu.memory_space<vmem>>, %arg7: memref<128x64xbf16, #tpu.memory_space<vmem>>, %arg8: memref<64x128xbf16, #tpu.memory_space<vmem>>, %arg9: memref<64x128xbf16, #tpu.memory_space<vmem>>, %arg10: memref<1x128xf32, #tpu.memory_space<vmem>>, %arg11: memref<128x128xbf16, #tpu.memory_space<vmem>>, %arg12: memref<1x128xf32, #tpu.memory_space<vmem>>, %arg13: memref<128x64xbf16, #tpu.memory_space<vmem>>, %arg14: memref<1x64xf32, #tpu.memory_space<vmem>>, %arg15: memref<128x64xbf16, #tpu.memory_space<vmem>>, %arg16: memref<128x64xf32, #tpu.memory_space<vmem>>) attributes {dimension_semantics = [#tpu.dimension_semantics<parallel>, #tpu.dimension_semantics<arbitrary>], iteration_bounds = array<i64: 1, 2>, scalar_prefetch = 2 : i64, scratch_operands = 1 : i64, tpu.core_type = #tpu.core_type<tc>, window_params = [{transform_indices = @transform_0, window_bounds = array<i64: 1, 128>}, {transform_indices = @transform_1, window_bounds = array<i64: 128, 1>}, {transform_indices = @transform_2, window_bounds = array<i64: 128, 64>}, {transform_indices = @transform_3, window_bounds = array<i64: 128, 64>}, {pipeline_mode = #tpu.pipeline_mode<synchronous>, transform_indices = @transform_4, window_bounds = array<i64: 64, 128>}, {pipeline_mode = #tpu.pipeline_mode<synchronous>, transform_indices = @transform_5, window_bounds = array<i64: 64, 128>}, {pipeline_mode = #tpu.pipeline_mode<synchronous>, transform_indices = @transform_6, window_bounds = array<i64: 1, 128>}, {pipeline_mode = #tpu.pipeline_mode<synchronous>, transform_indices = @transform_7, window_bounds = array<i64: 128, 128>}, {pipeline_mode = #tpu.pipeline_mode<synchronous>, transform_indices = @transform_8, window_bounds = array<i64: 1, 128>}, {pipeline_mode = #tpu.pipeline_mode<synchronous>, transform_indices = @transform_9, window_bounds = array<i64: 128, 64>}, {pipeline_mode = #tpu.pipeline_mode<synchronous>, transform_indices = @transform_10, window_bounds = array<i64: 1, 64>}, {transform_indices = @transform_11, window_bounds = array<i64: 128, 64>}]} {
    %c0_i32 = arith.constant 0 : i32
    %0 = arith.cmpi eq, %arg1, %c0_i32 : i32
    %1 = arith.extui %0 : i1 to i32
    %c0_i32_0 = arith.constant 0 : i32
    %2 = arith.cmpi ne, %1, %c0_i32_0 : i32
    scf.if %2 {
      %cst = arith.constant 0.000000e+00 : f32
      %11 = vector.broadcast %cst : f32 to vector<128x64xf32>
      %c0 = arith.constant 0 : index
      %c0_3 = arith.constant 0 : index
      %12 = vector.load %arg16[%c0, %c0_3] : memref<128x64xf32, #tpu.memory_space<vmem>>, vector<128x64xf32>
      tpu.vector_store %arg16[%c0, %c0_3], %11 {strides = array<i32>} : memref<128x64xf32, #tpu.memory_space<vmem>>, vector<128x64xf32>,
    } else {
    }
    %3 = arith.index_cast %arg0 : i32 to index
    %4 = memref.load %arg3[%3] : memref<1xi32, #tpu.memory_space<smem>>
    %5 = arith.cmpi slt, %arg1, %4 : i32
    %6 = arith.extui %5 : i1 to i32
    %c0_i32_1 = arith.constant 0 : i32
    %7 = arith.cmpi ne, %6, %c0_i32_1 : i32
    scf.if %7 {
      %c128_i32 = arith.constant 128 : i32
      %11 = arith.muli %arg0, %c128_i32 : i32
      %12 = tpu.iota {dimensions = array<i32: 0>} : vector<128x128xi32>
      %13 = vector.broadcast %11 : i32 to vector<128x128xi32>
      %14 = arith.addi %13, %12 : vector<128x128xi32>
      %c0 = arith.constant 0 : index
      %c0_3 = arith.constant 0 : index
      %15 = vector.load %arg4[%c0, %c0_3] : memref<1x128xi32, #tpu.memory_space<vmem>>, vector<1x128xi32>
      %16 = vector.broadcast %15 : vector<1x128xi32> to vector<128x128xi32>
      %17 = arith.cmpi eq, %14, %16 : vector<128x128xi32>
      %18 = arith.extui %17 : vector<128x128xi1> to vector<128x128xi32>
      %19 = arith.sitofp %18 : vector<128x128xi32> to vector<128x128xf32>
      %20 = arith.truncf %19 : vector<128x128xf32> to vector<128x128xbf16>
      %c0_4 = arith.constant 0 : index
      %c0_5 = arith.constant 0 : index
      %21 = vector.load %arg16[%c0_4, %c0_5] : memref<128x64xf32, #tpu.memory_space<vmem>>, vector<128x64xf32>
      %c0_6 = arith.constant 0 : index
      %c0_7 = arith.constant 0 : index
      %22 = vector.load %arg6[%c0_6, %c0_7] : memref<128x64xbf16, #tpu.memory_space<vmem>>, vector<128x64xbf16>
      %cst = arith.constant dense<0.000000e+00> : vector<128x64xf32>
      %23 = tpu.matmul %20, %22, %cst {dimension_numbers = #tpu.dot_dimension_numbers<[1], [0], [0], [1], [0, 0, 1, 1], [], []>} : vector<128x128xbf16>, vector<128x64xbf16>, vector<128x64xf32> -> vector<128x64xf32>
      %24 = arith.addf %21, %23 : vector<128x64xf32>
      %c0_8 = arith.constant 0 : index
      %c0_9 = arith.constant 0 : index
      %25 = vector.load %arg16[%c0_8, %c0_9] : memref<128x64xf32, #tpu.memory_space<vmem>>, vector<128x64xf32>
      tpu.vector_store %arg16[%c0_8, %c0_9], %24 {strides = array<i32>} : memref<128x64xf32, #tpu.memory_space<vmem>>, vector<128x64xf32>,
    } else {
    }
    %c1_i32 = arith.constant 1 : i32
    %8 = arith.cmpi eq, %arg1, %c1_i32 : i32
    %9 = arith.extui %8 : i1 to i32
    %c0_i32_2 = arith.constant 0 : i32
    %10 = arith.cmpi ne, %9, %c0_i32_2 : i32
    scf.if %10 {
      %c0 = arith.constant 0 : index
      %c0_3 = arith.constant 0 : index
      %11 = vector.load %arg16[%c0, %c0_3] : memref<128x64xf32, #tpu.memory_space<vmem>>, vector<128x64xf32>
      %c0_4 = arith.constant 0 : index
      %c0_5 = arith.constant 0 : index
      %12 = vector.load %arg5[%c0_4, %c0_5] : memref<128x1xf32, #tpu.memory_space<vmem>>, vector<128x1xf32>
      %13 = vector.broadcast %12 : vector<128x1xf32> to vector<128x64xf32>
      %14 = arith.mulf %11, %13 : vector<128x64xf32>
      %c0_6 = arith.constant 0 : index
      %c0_7 = arith.constant 0 : index
      %15 = vector.load %arg7[%c0_6, %c0_7] : memref<128x64xbf16, #tpu.memory_space<vmem>>, vector<128x64xbf16>
      %c0_8 = arith.constant 0 : index
      %c0_9 = arith.constant 0 : index
      %16 = vector.load %arg8[%c0_8, %c0_9] : memref<64x128xbf16, #tpu.memory_space<vmem>>, vector<64x128xbf16>
      %cst = arith.constant dense<0.000000e+00> : vector<128x128xf32>
      %17 = tpu.matmul %15, %16, %cst {dimension_numbers = #tpu.dot_dimension_numbers<[1], [0], [0], [1], [0, 0, 1, 1], [], []>} : vector<128x64xbf16>, vector<64x128xbf16>, vector<128x128xf32> -> vector<128x128xf32>
      %18 = arith.truncf %14 : vector<128x64xf32> to vector<128x64xbf16>
      %c0_10 = arith.constant 0 : index
      %c0_11 = arith.constant 0 : index
      %19 = vector.load %arg9[%c0_10, %c0_11] : memref<64x128xbf16, #tpu.memory_space<vmem>>, vector<64x128xbf16>
      %cst_12 = arith.constant dense<0.000000e+00> : vector<128x128xf32>
      %20 = tpu.matmul %18, %19, %cst_12 {dimension_numbers = #tpu.dot_dimension_numbers<[1], [0], [0], [1], [0, 0, 1, 1], [], []>} : vector<128x64xbf16>, vector<64x128xbf16>, vector<128x128xf32> -> vector<128x128xf32>
      %21 = arith.addf %17, %20 : vector<128x128xf32>
      %c0_13 = arith.constant 0 : index
      %c0_14 = arith.constant 0 : index
      %22 = vector.load %arg10[%c0_13, %c0_14] : memref<1x128xf32, #tpu.memory_space<vmem>>, vector<1x128xf32>
      %23 = vector.broadcast %22 : vector<1x128xf32> to vector<128x128xf32>
      %24 = arith.addf %21, %23 : vector<128x128xf32>
      %cst_15 = arith.constant 0.000000e+00 : f32
      %25 = vector.broadcast %cst_15 : f32 to vector<128x128xf32>
      %26 = arith.maximumf %24, %25 : vector<128x128xf32>
      %27 = arith.truncf %26 : vector<128x128xf32> to vector<128x128xbf16>
      %c0_16 = arith.constant 0 : index
      %c0_17 = arith.constant 0 : index
      %28 = vector.load %arg11[%c0_16, %c0_17] : memref<128x128xbf16, #tpu.memory_space<vmem>>, vector<128x128xbf16>
      %cst_18 = arith.constant dense<0.000000e+00> : vector<128x128xf32>
      %29 = tpu.matmul %27, %28, %cst_18 {dimension_numbers = #tpu.dot_dimension_numbers<[1], [0], [0], [1], [0, 0, 1, 1], [], []>} : vector<128x128xbf16>, vector<128x128xbf16>, vector<128x128xf32> -> vector<128x128xf32>
      %c0_19 = arith.constant 0 : index
      %c0_20 = arith.constant 0 : index
      %30 = vector.load %arg12[%c0_19, %c0_20] : memref<1x128xf32, #tpu.memory_space<vmem>>, vector<1x128xf32>
      %31 = vector.broadcast %30 : vector<1x128xf32> to vector<128x128xf32>
      %32 = arith.addf %29, %31 : vector<128x128xf32>
      %cst_21 = arith.constant 0.000000e+00 : f32
      %33 = vector.broadcast %cst_21 : f32 to vector<128x128xf32>
      %34 = arith.maximumf %32, %33 : vector<128x128xf32>
      %35 = arith.truncf %34 : vector<128x128xf32> to vector<128x128xbf16>
      %c0_22 = arith.constant 0 : index
      %c0_23 = arith.constant 0 : index
      %36 = vector.load %arg13[%c0_22, %c0_23] : memref<128x64xbf16, #tpu.memory_space<vmem>>, vector<128x64xbf16>
      %cst_24 = arith.constant dense<0.000000e+00> : vector<128x64xf32>
      %37 = tpu.matmul %35, %36, %cst_24 {dimension_numbers = #tpu.dot_dimension_numbers<[1], [0], [0], [1], [0, 0, 1, 1], [], []>} : vector<128x128xbf16>, vector<128x64xbf16>, vector<128x64xf32> -> vector<128x64xf32>
      %c0_25 = arith.constant 0 : index
      %c0_26 = arith.constant 0 : index
      %38 = vector.load %arg14[%c0_25, %c0_26] : memref<1x64xf32, #tpu.memory_space<vmem>>, vector<1x64xf32>
      %39 = vector.broadcast %38 : vector<1x64xf32> to vector<128x64xf32>
      %40 = arith.addf %37, %39 : vector<128x64xf32>
      %41 = arith.negf %40 : vector<128x64xf32>
      %42 = math.exp %41 : vector<128x64xf32>
      %cst_27 = arith.constant 1.000000e+00 : f32
      %43 = vector.broadcast %cst_27 : f32 to vector<128x64xf32>
      %44 = arith.addf %43, %42 : vector<128x64xf32>
      %45 = arith.divf %43, %44 : vector<128x64xf32>
      %46 = arith.truncf %45 : vector<128x64xf32> to vector<128x64xbf16>
      %c0_28 = arith.constant 0 : index
      %c0_29 = arith.constant 0 : index
      %47 = vector.load %arg15[%c0_28, %c0_29] : memref<128x64xbf16, #tpu.memory_space<vmem>>, vector<128x64xbf16>
      tpu.vector_store %arg15[%c0_28, %c0_29], %46 {strides = array<i32>} : memref<128x64xbf16, #tpu.memory_space<vmem>>, vector<128x64xbf16>,
    } else {
    }
    return
  }
  func.func @transform_0(%arg0: i32, %arg1: i32, %arg2: memref<1xi32, #tpu.memory_space<smem>>, %arg3: memref<1xi32, #tpu.memory_space<smem>>) -> (i32, i32) {
    %0 = arith.index_cast %arg0 : i32 to index
    %1 = memref.load %arg2[%0] : memref<1xi32, #tpu.memory_space<smem>>
    %2 = arith.index_cast %arg0 : i32 to index
    %3 = memref.load %arg3[%2] : memref<1xi32, #tpu.memory_space<smem>>
    %c1_i32 = arith.constant 1 : i32
    %4 = arith.subi %3, %c1_i32 : i32
    %c0_i32 = arith.constant 0 : i32
    %5 = arith.maxsi %4, %c0_i32 : i32
    %6 = arith.minsi %arg1, %5 : i32
    %7 = arith.addi %1, %6 : i32
    %c0_i32_0 = arith.constant 0 : i32
    %c0_i32_1 = arith.constant 0 : i32
    return %c0_i32_0, %7 : i32, i32
  }
  func.func @transform_1(%arg0: i32, %arg1: i32, %arg2: memref<1xi32, #tpu.memory_space<smem>>, %arg3: memref<1xi32, #tpu.memory_space<smem>>) -> (i32, i32) {
    %c0_i32 = arith.constant 0 : i32
    %c0_i32_0 = arith.constant 0 : i32
    return %arg0, %c0_i32 : i32, i32
  }
  func.func @transform_2(%arg0: i32, %arg1: i32, %arg2: memref<1xi32, #tpu.memory_space<smem>>, %arg3: memref<1xi32, #tpu.memory_space<smem>>) -> (i32, i32) {
    %0 = arith.index_cast %arg0 : i32 to index
    %1 = memref.load %arg2[%0] : memref<1xi32, #tpu.memory_space<smem>>
    %2 = arith.index_cast %arg0 : i32 to index
    %3 = memref.load %arg3[%2] : memref<1xi32, #tpu.memory_space<smem>>
    %c1_i32 = arith.constant 1 : i32
    %4 = arith.subi %3, %c1_i32 : i32
    %c0_i32 = arith.constant 0 : i32
    %5 = arith.maxsi %4, %c0_i32 : i32
    %6 = arith.minsi %arg1, %5 : i32
    %7 = arith.addi %1, %6 : i32
    %c0_i32_0 = arith.constant 0 : i32
    %c0_i32_1 = arith.constant 0 : i32
    return %7, %c0_i32_0 : i32, i32
  }
  func.func @transform_3(%arg0: i32, %arg1: i32, %arg2: memref<1xi32, #tpu.memory_space<smem>>, %arg3: memref<1xi32, #tpu.memory_space<smem>>) -> (i32, i32) {
    %c0_i32 = arith.constant 0 : i32
    %c0_i32_0 = arith.constant 0 : i32
    return %arg0, %c0_i32 : i32, i32
  }
  func.func @transform_4(%arg0: i32, %arg1: i32, %arg2: memref<1xi32, #tpu.memory_space<smem>>, %arg3: memref<1xi32, #tpu.memory_space<smem>>) -> (i32, i32) {
    %c0_i32 = arith.constant 0 : i32
    %c0_i32_0 = arith.constant 0 : i32
    %c0_i32_1 = arith.constant 0 : i32
    return %c0_i32, %c0_i32_0 : i32, i32
  }
  func.func @transform_5(%arg0: i32, %arg1: i32, %arg2: memref<1xi32, #tpu.memory_space<smem>>, %arg3: memref<1xi32, #tpu.memory_space<smem>>) -> (i32, i32) {
    %c0_i32 = arith.constant 0 : i32
    %c0_i32_0 = arith.constant 0 : i32
    %c0_i32_1 = arith.constant 0 : i32
    return %c0_i32, %c0_i32_0 : i32, i32
  }
  func.func @transform_6(%arg0: i32, %arg1: i32, %arg2: memref<1xi32, #tpu.memory_space<smem>>, %arg3: memref<1xi32, #tpu.memory_space<smem>>) -> (i32, i32) {
    %c0_i32 = arith.constant 0 : i32
    %c0_i32_0 = arith.constant 0 : i32
    %c0_i32_1 = arith.constant 0 : i32
    return %c0_i32, %c0_i32_0 : i32, i32
  }
  func.func @transform_7(%arg0: i32, %arg1: i32, %arg2: memref<1xi32, #tpu.memory_space<smem>>, %arg3: memref<1xi32, #tpu.memory_space<smem>>) -> (i32, i32) {
    %c0_i32 = arith.constant 0 : i32
    %c0_i32_0 = arith.constant 0 : i32
    %c0_i32_1 = arith.constant 0 : i32
    return %c0_i32, %c0_i32_0 : i32, i32
  }
  func.func @transform_8(%arg0: i32, %arg1: i32, %arg2: memref<1xi32, #tpu.memory_space<smem>>, %arg3: memref<1xi32, #tpu.memory_space<smem>>) -> (i32, i32) {
    %c0_i32 = arith.constant 0 : i32
    %c0_i32_0 = arith.constant 0 : i32
    %c0_i32_1 = arith.constant 0 : i32
    return %c0_i32, %c0_i32_0 : i32, i32
  }
  func.func @transform_9(%arg0: i32, %arg1: i32, %arg2: memref<1xi32, #tpu.memory_space<smem>>, %arg3: memref<1xi32, #tpu.memory_space<smem>>) -> (i32, i32) {
    %c0_i32 = arith.constant 0 : i32
    %c0_i32_0 = arith.constant 0 : i32
    %c0_i32_1 = arith.constant 0 : i32
    return %c0_i32, %c0_i32_0 : i32, i32
  }
  func.func @transform_10(%arg0: i32, %arg1: i32, %arg2: memref<1xi32, #tpu.memory_space<smem>>, %arg3: memref<1xi32, #tpu.memory_space<smem>>) -> (i32, i32) {
    %c0_i32 = arith.constant 0 : i32
    %c0_i32_0 = arith.constant 0 : i32
    %c0_i32_1 = arith.constant 0 : i32
    return %c0_i32, %c0_i32_0 : i32, i32
  }
  func.func @transform_11(%arg0: i32, %arg1: i32, %arg2: memref<1xi32, #tpu.memory_space<smem>>, %arg3: memref<1xi32, #tpu.memory_space<smem>>) -> (i32, i32) {
    %c0_i32 = arith.constant 0 : i32
    %c0_i32_0 = arith.constant 0 : i32
    return %arg0, %c0_i32 : i32, i32
  }
}

module attributes {stable_mosaic.version = 11 : i64} {
  func.func @kernel(%arg0: i32, %arg1: memref<128x64xbf16, #tpu.memory_space<vmem>>, %arg2: memref<128x64xbf16, #tpu.memory_space<vmem>>, %arg3: memref<128x64xbf16, #tpu.memory_space<vmem>>, %arg4: memref<64x128xbf16, #tpu.memory_space<vmem>>, %arg5: memref<64x128xbf16, #tpu.memory_space<vmem>>, %arg6: memref<64x128xbf16, #tpu.memory_space<vmem>>, %arg7: memref<1x128xf32, #tpu.memory_space<vmem>>, %arg8: memref<128x128xbf16, #tpu.memory_space<vmem>>, %arg9: memref<1x128xf32, #tpu.memory_space<vmem>>, %arg10: memref<128x1xbf16, #tpu.memory_space<vmem>>, %arg11: memref<1x1xf32, #tpu.memory_space<vmem>>, %arg12: memref<128x1xf32, #tpu.memory_space<vmem>>) attributes {dimension_semantics = [#tpu.dimension_semantics<parallel>], iteration_bounds = array<i64: 2>, scalar_prefetch = 0 : i64, scratch_operands = 0 : i64, tpu.core_type = #tpu.core_type<tc>, window_params = [{transform_indices = @transform_0, window_bounds = array<i64: 128, 64>}, {transform_indices = @transform_1, window_bounds = array<i64: 128, 64>}, {transform_indices = @transform_2, window_bounds = array<i64: 128, 64>}, {pipeline_mode = #tpu.pipeline_mode<synchronous>, transform_indices = @transform_3, window_bounds = array<i64: 64, 128>}, {pipeline_mode = #tpu.pipeline_mode<synchronous>, transform_indices = @transform_4, window_bounds = array<i64: 64, 128>}, {pipeline_mode = #tpu.pipeline_mode<synchronous>, transform_indices = @transform_5, window_bounds = array<i64: 64, 128>}, {pipeline_mode = #tpu.pipeline_mode<synchronous>, transform_indices = @transform_6, window_bounds = array<i64: 1, 128>}, {pipeline_mode = #tpu.pipeline_mode<synchronous>, transform_indices = @transform_7, window_bounds = array<i64: 128, 128>}, {pipeline_mode = #tpu.pipeline_mode<synchronous>, transform_indices = @transform_8, window_bounds = array<i64: 1, 128>}, {pipeline_mode = #tpu.pipeline_mode<synchronous>, transform_indices = @transform_9, window_bounds = array<i64: 128, 1>}, {pipeline_mode = #tpu.pipeline_mode<synchronous>, transform_indices = @transform_10, window_bounds = array<i64: 1, 1>}, {transform_indices = @transform_11, window_bounds = array<i64: 128, 1>}]} {
    %c0 = arith.constant 0 : index
    %c0_0 = arith.constant 0 : index
    %0 = vector.load %arg7[%c0, %c0_0] : memref<1x128xf32, #tpu.memory_space<vmem>>, vector<1x128xf32>
    %c0_1 = arith.constant 0 : index
    %c0_2 = arith.constant 0 : index
    %1 = vector.load %arg1[%c0_1, %c0_2] : memref<128x64xbf16, #tpu.memory_space<vmem>>, vector<128x64xbf16>
    %c0_3 = arith.constant 0 : index
    %c0_4 = arith.constant 0 : index
    %2 = vector.load %arg4[%c0_3, %c0_4] : memref<64x128xbf16, #tpu.memory_space<vmem>>, vector<64x128xbf16>
    %cst = arith.constant dense<0.000000e+00> : vector<128x128xf32>
    %3 = tpu.matmul %1, %2, %cst {dimension_numbers = #tpu.dot_dimension_numbers<[1], [0], [0], [1], [0, 0, 1, 1], [], []>} : vector<128x64xbf16>, vector<64x128xbf16>, vector<128x128xf32> -> vector<128x128xf32>
    %4 = vector.broadcast %0 : vector<1x128xf32> to vector<128x128xf32>
    %5 = arith.addf %4, %3 : vector<128x128xf32>
    %c0_5 = arith.constant 0 : index
    %c0_6 = arith.constant 0 : index
    %6 = vector.load %arg2[%c0_5, %c0_6] : memref<128x64xbf16, #tpu.memory_space<vmem>>, vector<128x64xbf16>
    %c0_7 = arith.constant 0 : index
    %c0_8 = arith.constant 0 : index
    %7 = vector.load %arg5[%c0_7, %c0_8] : memref<64x128xbf16, #tpu.memory_space<vmem>>, vector<64x128xbf16>
    %cst_9 = arith.constant dense<0.000000e+00> : vector<128x128xf32>
    %8 = tpu.matmul %6, %7, %cst_9 {dimension_numbers = #tpu.dot_dimension_numbers<[1], [0], [0], [1], [0, 0, 1, 1], [], []>} : vector<128x64xbf16>, vector<64x128xbf16>, vector<128x128xf32> -> vector<128x128xf32>
    %9 = arith.addf %5, %8 : vector<128x128xf32>
    %c0_10 = arith.constant 0 : index
    %c0_11 = arith.constant 0 : index
    %10 = vector.load %arg3[%c0_10, %c0_11] : memref<128x64xbf16, #tpu.memory_space<vmem>>, vector<128x64xbf16>
    %c0_12 = arith.constant 0 : index
    %c0_13 = arith.constant 0 : index
    %11 = vector.load %arg6[%c0_12, %c0_13] : memref<64x128xbf16, #tpu.memory_space<vmem>>, vector<64x128xbf16>
    %cst_14 = arith.constant dense<0.000000e+00> : vector<128x128xf32>
    %12 = tpu.matmul %10, %11, %cst_14 {dimension_numbers = #tpu.dot_dimension_numbers<[1], [0], [0], [1], [0, 0, 1, 1], [], []>} : vector<128x64xbf16>, vector<64x128xbf16>, vector<128x128xf32> -> vector<128x128xf32>
    %13 = arith.addf %9, %12 : vector<128x128xf32>
    %cst_15 = arith.constant 0.000000e+00 : f32
    %14 = vector.broadcast %cst_15 : f32 to vector<128x128xf32>
    %15 = arith.maximumf %13, %14 : vector<128x128xf32>
    %16 = arith.truncf %15 : vector<128x128xf32> to vector<128x128xbf16>
    %c0_16 = arith.constant 0 : index
    %c0_17 = arith.constant 0 : index
    %17 = vector.load %arg8[%c0_16, %c0_17] : memref<128x128xbf16, #tpu.memory_space<vmem>>, vector<128x128xbf16>
    %cst_18 = arith.constant dense<0.000000e+00> : vector<128x128xf32>
    %18 = tpu.matmul %16, %17, %cst_18 {dimension_numbers = #tpu.dot_dimension_numbers<[1], [0], [0], [1], [0, 0, 1, 1], [], []>} : vector<128x128xbf16>, vector<128x128xbf16>, vector<128x128xf32> -> vector<128x128xf32>
    %c0_19 = arith.constant 0 : index
    %c0_20 = arith.constant 0 : index
    %19 = vector.load %arg9[%c0_19, %c0_20] : memref<1x128xf32, #tpu.memory_space<vmem>>, vector<1x128xf32>
    %20 = vector.broadcast %19 : vector<1x128xf32> to vector<128x128xf32>
    %21 = arith.addf %18, %20 : vector<128x128xf32>
    %cst_21 = arith.constant 0.000000e+00 : f32
    %22 = vector.broadcast %cst_21 : f32 to vector<128x128xf32>
    %23 = arith.maximumf %21, %22 : vector<128x128xf32>
    %24 = arith.truncf %23 : vector<128x128xf32> to vector<128x128xbf16>
    %c0_22 = arith.constant 0 : index
    %c0_23 = arith.constant 0 : index
    %25 = vector.load %arg10[%c0_22, %c0_23] : memref<128x1xbf16, #tpu.memory_space<vmem>>, vector<128x1xbf16>
    %cst_24 = arith.constant dense<0.000000e+00> : vector<128x1xf32>
    %26 = tpu.matmul %24, %25, %cst_24 {dimension_numbers = #tpu.dot_dimension_numbers<[1], [0], [0], [1], [0, 0, 1, 1], [], []>} : vector<128x128xbf16>, vector<128x1xbf16>, vector<128x1xf32> -> vector<128x1xf32>
    %c0_25 = arith.constant 0 : index
    %c0_26 = arith.constant 0 : index
    %27 = vector.load %arg11[%c0_25, %c0_26] : memref<1x1xf32, #tpu.memory_space<vmem>>, vector<1x1xf32>
    %28 = vector.broadcast %27 : vector<1x1xf32> to vector<128x1xf32>
    %29 = arith.addf %26, %28 : vector<128x1xf32>
    %30 = arith.negf %29 : vector<128x1xf32>
    %31 = math.exp %30 : vector<128x1xf32>
    %cst_27 = arith.constant 1.000000e+00 : f32
    %32 = vector.broadcast %cst_27 : f32 to vector<128x1xf32>
    %33 = arith.addf %32, %31 : vector<128x1xf32>
    %34 = arith.divf %32, %33 : vector<128x1xf32>
    %c0_28 = arith.constant 0 : index
    %c0_29 = arith.constant 0 : index
    %35 = vector.load %arg12[%c0_28, %c0_29] : memref<128x1xf32, #tpu.memory_space<vmem>>, vector<128x1xf32>
    tpu.vector_store %arg12[%c0_28, %c0_29], %34 {strides = array<i32>} : memref<128x1xf32, #tpu.memory_space<vmem>>, vector<128x1xf32>,
    return
  }
  func.func @transform_0(%arg0: i32) -> (i32, i32) {
    %c0_i32 = arith.constant 0 : i32
    %c0_i32_0 = arith.constant 0 : i32
    return %arg0, %c0_i32 : i32, i32
  }
  func.func @transform_1(%arg0: i32) -> (i32, i32) {
    %c0_i32 = arith.constant 0 : i32
    %c0_i32_0 = arith.constant 0 : i32
    return %arg0, %c0_i32 : i32, i32
  }
  func.func @transform_2(%arg0: i32) -> (i32, i32) {
    %c0_i32 = arith.constant 0 : i32
    %c0_i32_0 = arith.constant 0 : i32
    return %arg0, %c0_i32 : i32, i32
  }
  func.func @transform_3(%arg0: i32) -> (i32, i32) {
    %c0_i32 = arith.constant 0 : i32
    %c0_i32_0 = arith.constant 0 : i32
    %c0_i32_1 = arith.constant 0 : i32
    return %c0_i32, %c0_i32_0 : i32, i32
  }
  func.func @transform_4(%arg0: i32) -> (i32, i32) {
    %c0_i32 = arith.constant 0 : i32
    %c0_i32_0 = arith.constant 0 : i32
    %c0_i32_1 = arith.constant 0 : i32
    return %c0_i32, %c0_i32_0 : i32, i32
  }
  func.func @transform_5(%arg0: i32) -> (i32, i32) {
    %c0_i32 = arith.constant 0 : i32
    %c0_i32_0 = arith.constant 0 : i32
    %c0_i32_1 = arith.constant 0 : i32
    return %c0_i32, %c0_i32_0 : i32, i32
  }
  func.func @transform_6(%arg0: i32) -> (i32, i32) {
    %c0_i32 = arith.constant 0 : i32
    %c0_i32_0 = arith.constant 0 : i32
    %c0_i32_1 = arith.constant 0 : i32
    return %c0_i32, %c0_i32_0 : i32, i32
  }
  func.func @transform_7(%arg0: i32) -> (i32, i32) {
    %c0_i32 = arith.constant 0 : i32
    %c0_i32_0 = arith.constant 0 : i32
    %c0_i32_1 = arith.constant 0 : i32
    return %c0_i32, %c0_i32_0 : i32, i32
  }
  func.func @transform_8(%arg0: i32) -> (i32, i32) {
    %c0_i32 = arith.constant 0 : i32
    %c0_i32_0 = arith.constant 0 : i32
    %c0_i32_1 = arith.constant 0 : i32
    return %c0_i32, %c0_i32_0 : i32, i32
  }
  func.func @transform_9(%arg0: i32) -> (i32, i32) {
    %c0_i32 = arith.constant 0 : i32
    %c0_i32_0 = arith.constant 0 : i32
    %c0_i32_1 = arith.constant 0 : i32
    return %c0_i32, %c0_i32_0 : i32, i32
  }
  func.func @transform_10(%arg0: i32) -> (i32, i32) {
    %c0_i32 = arith.constant 0 : i32
    %c0_i32_0 = arith.constant 0 : i32
    %c0_i32_1 = arith.constant 0 : i32
    return %c0_i32, %c0_i32_0 : i32, i32
  }
  func.func @transform_11(%arg0: i32) -> (i32, i32) {
    %c0_i32 = arith.constant 0 : i32
    %c0_i32_0 = arith.constant 0 : i32
    return %arg0, %c0_i32 : i32, i32
  }
}

</mosaic_0001>

<bundles_post_ra>
// kernel: custom-call
= control target key start
LH: loop header
LB: loop body
LE: loop exit
PB: predicated region body
PF: predicated region fallthrough
CT: control target
= control target key end

     0   :  { %s6_s0 = inlined_call_operand.vmem [shape: u32[2], index: 0, kind: output, shape index: {}]  }

// kernel: encode_process_decode.7
= control target key start
LH: loop header
LB: loop body
LE: loop exit
PB: predicated region body
PF: predicated region fallthrough
CT: control target
= control target key end

     0   :  { %vm92_vm0 = vcmask 130048   ;;  %vm780_vm1 = vcmask 519168   ;;  %s1311_s1 = inlined_call_operand.vmem [shape: bf16[16,128], index: 1, kind: input, shape index: {}]   ;;  %s1312_s0 = inlined_call_operand.vmem [shape: bf16[128,16], index: 0, kind: input, shape index: {}]   ;;  %s1313_s3 = inlined_call_operand.vmem [shape: bf16[128,128], index: 3, kind: input, shape index: {}]   ;;  %s1314_s5 = inlined_call_operand.vmem [shape: bf16[128,64], index: 5, kind: input, shape index: {}]   ;;  %s1315_s2 = inlined_call_operand.vmem [shape: f32[1,128], index: 2, kind: input, shape index: {}]   ;;  %s1316_s4 = inlined_call_operand.vmem [shape: f32[1,128], index: 4, kind: input, shape index: {}]   ;;  %s1317_s6 = inlined_call_operand.vmem [shape: f32[1,64], index: 6, kind: input, shape index: {}]   ;;  %s1318_s7 = inlined_call_operand.vmem [shape: bf16[128,64], index: 7, kind: output, shape index: {}]  }
   0x1   :  { %v1008_v0 = vld [vmem:[%s1311_s1] sm:$0xff]   ;;  %v1010_v2 = vld [vmem:[%s1312_s0 + $0x8] sm:$0xff]   ;;  %v1011_v3 = vld [vmem:[%s1312_s0 + $0x10] sm:$0xff]  }
   0x2   :  { %v1009_v1 = vld [vmem:[%s1312_s0] sm:$0xff]   ;;  %926 = vmatprep.subr.bf16.mxu0 %v1008_v0  ;;  %v1012_v4 = vld [vmem:[%s1312_s0 + $0x18] sm:$0xff]   ;;  %v1018_v6 = vld [vmem:[%s1313_s3 + $0x8] sm:$0xff]  }
   0x3   :  { %927 = vmatpush3.bf16.msra.mxu0 %v1008_v0  ;;  %928 = vmatprep.mubr.msk.bf16.mxu0 %vm92_vm0, %v1009_v1  ;;  %v1017_v5 = vld [vmem:[%s1313_s3] sm:$0xff]   ;;  %v1019_v8 = vld [vmem:[%s1313_s3 + $0x10] sm:$0xff]   ;;  %v1020_v9 = vld [vmem:[%s1313_s3 + $0x18] sm:$0xff]  }
   0x4   :  { %v1013_v7 = vld [vmem:[%s1312_s0 + $0x20] sm:$0xff]   ;;  %944 = vmatprep.subr.bf16.mxu1 %v1017_v5  ;;  %v1014_v10 = vld [vmem:[%s1312_s0 + $0x28] sm:$0xff]   ;;  %v1015_v11 = vld [vmem:[%s1312_s0 + $0x30] sm:$0xff]  }
   0x5   :  { %945 = vmatpush3.bf16.msra.mxu1 %v1017_v5  ;;  %v1021_v12 = vld [vmem:[%s1313_s3 + $0x20] sm:$0xff]   ;;  %v1022_v13 = vld [vmem:[%s1313_s3 + $0x28] sm:$0xff]   ;;  %v1016_v14 = vld [vmem:[%s1312_s0 + $0x38] sm:$0xff]  }
   0x6   :  { %929 = vmatmul.mubr.msk.bf16.vlgmr.msra.gmra.mrb[0].mxu0 %vm92_vm0, %v1010_v2  ;;  %946 = vmatprep.subr.bf16.mxu1 %v1018_v6  ;;  %v1023_v15 = vld [vmem:[%s1313_s3 + $0x30] sm:$0xff]   ;;  %v1024_v16 = vld [vmem:[%s1313_s3 + $0x38] sm:$0xff]   ;;  %v1025_v17 = vld [vmem:[%s1314_s5] sm:$0xff]  }
   0x7   :  { %932 = vmatprep.mubr.msk.bf16.mxu0 %vm92_vm0, %v1011_v3  ;;  %v1026_v18 = vld [vmem:[%s1314_s5 + $0x8] sm:$0xff]   ;;  %976 = vmatprep.subr.bf16.mxu0 %v1025_v17  ;;  %v1027_v19 = vld [vmem:[%s1314_s5 + $0x10] sm:$0xff]   ;;  %v1028_v20 = vld [vmem:[%s1314_s5 + $0x18] sm:$0xff]  }
   0x8   :  { %977 = vmatpush3.bf16.msra.mxu0 %v1025_v17  ;;  %v1029_v21 = vld [vmem:[%s1314_s5 + $0x20] sm:$0xff]   ;;  %v1030_v22 = vld [vmem:[%s1314_s5 + $0x28] sm:$0xff]   ;;  %v1032_v17 = vld [vmem:[%s1314_s5 + $0x38] sm:$0xff]  }
   0x9   :  { %947 = vmatpush3.bf16.msra.mxu1 %v1018_v6  ;;  %978 = vmatprep.subr.bf16.mxu0 %v1026_v18  ;;  %v818_v23 = vld [vmem:[%s1315_s2] ss:$0 sm:$0xff] }
   0xa   :  { %948 = vmatprep.subr.bf16.mxu1 %v1019_v8 }
   0xc   :  { %979 = vmatpush3.bf16.msra.mxu0 %v1026_v18  ;;  %v819_v18 = vld [vmem:[%s1316_s4] ss:$0 sm:$0xff] }
   0xd   :  { %949 = vmatpush3.bf16.msra.mxu1 %v1019_v8  ;;  %980 = vmatprep.subr.bf16.mxu0 %v1027_v19 }
   0xe   :  { %933 = vmatmul.mubr.msk.bf16.gmra.mrb[4].mxu0 %vm92_vm0, %v1012_v4  ;;  %950 = vmatprep.subr.bf16.mxu1 %v1020_v9 }
   0xf   :  { %936 = vmatprep.mubr.msk.bf16.mxu0 %vm92_vm0, %v1013_v7 }
  0x10   :  { %981 = vmatpush3.bf16.msra.mxu0 %v1027_v19 }
  0x11   :  { %951 = vmatpush3.bf16.msra.mxu1 %v1020_v9  ;;  %982 = vmatprep.subr.bf16.mxu0 %v1028_v20 }
  0x12   :  { %952 = vmatprep.subr.bf16.mxu1 %v1021_v12 }
  0x14   :  { %983 = vmatpush3.bf16.msra.mxu0 %v1028_v20 }
  0x15   :  { %953 = vmatpush3.bf16.msra.mxu1 %v1021_v12  ;;  %984 = vmatprep.subr.bf16.mxu0 %v1029_v21 }
  0x16   :  { %937 = vmatmul.mubr.msk.bf16.gmra.mrb[8].mxu0 %vm92_vm0, %v1014_v10  ;;  %954 = vmatprep.subr.bf16.mxu1 %v1022_v13 }
  0x17   :  { %940 = vmatprep.mubr.msk.bf16.mxu0 %vm92_vm0, %v1015_v11 }
  0x18   :  { %985 = vmatpush3.bf16.msra.mxu0 %v1029_v21 }
  0x19   :  { %955 = vmatpush3.bf16.msra.mxu1 %v1022_v13  ;;  %986 = vmatprep.subr.bf16.mxu0 %v1030_v22 }
  0x1a   :  { %956 = vmatprep.subr.bf16.mxu1 %v1023_v15 }
  0x1c   :  { %987 = vmatpush3.bf16.msra.mxu0 %v1030_v22 }
  0x1d   :  { %957 = vmatpush3.bf16.msra.mxu1 %v1023_v15 }
  0x1e   :  { %941 = vmatmul.mubr.msk.bf16.gmra.mrb[12].mxu0 %vm92_vm0, %v1016_v14  ;;  %958 = vmatprep.subr.bf16.mxu1 %v1024_v16 }
  0x21   :  { %959 = vmatpush3.bf16.msra.mxu1 %v1024_v16  ;;  %v1031_v16 = vld [vmem:[%s1314_s5 + $0x30] sm:$0xff]  }
  0x22   :  { %988 = vmatprep.subr.bf16.mxu0 %v1031_v16 }
  0x23   :  { %989 = vmatpush3.bf16.msra.mxu0 %v1031_v16 }
  0x24   :  { %990 = vmatprep.subr.bf16.mxu0 %v1032_v17 }
  0x27   :  { %991 = vmatpush3.bf16.msra.mxu0 %v1032_v17 }
  0xd9   :  { %v930_v24 = vpop.f32.mrb[0].mxu0 }
  0xda   :  { %v222_v25 = vadd.f32 %v930_v24, %v818_v23  ;;  %v151_v26 = vpop.f32.mrb[1].mxu0 }
  0xdb   :  { %v220_v27 = vadd.f32 %v818_v23, %v151_v26  ;;  %v931_v28 = vpop.f32.mrb[2].mxu0 }
  0xdc   :  { %v223_v29 = vadd.f32 %v931_v28, %v818_v23  ;;  %v154_v30 = vpop.f32.mrb[3].mxu0  ;;  %v238_v32 = vmax.f32 %v222_v25, 0.0 }
  0xdd   :  { %v221_v31 = vadd.f32 %v818_v23, %v154_v30  ;;  %v236_v34 = vmax.f32 %v220_v27, 0.0 }
  0xde   :  { %v239_v33 = vmax.f32 %v223_v29, 0.0 }
  0xdf   :  { %v237_v35 = vmax.f32 %v221_v31, 0.0 }
  0xe0   :  { %v253_v36 = vpack.c.bf16 %v239_v33, %v238_v32 }
  0xe1   :  { %v934_v37 = vpop.f32.mrb[4].mxu0  ;;  %v252_v38 = vpack.c.bf16 %v237_v35, %v236_v34 }
  0xe2   :  { %v226_v39 = vadd.f32 %v934_v37, %v818_v23  ;;  %v167_v40 = vpop.f32.mrb[5].mxu0 }
  0xe3   :  { %v224_v41 = vadd.f32 %v818_v23, %v167_v40  ;;  %v935_v42 = vpop.f32.mrb[6].mxu0  ;;  %960 = vmatprep.mubr.bf16.mxu1 %v252_v38 }
  0xe4   :  { %v227_v43 = vadd.f32 %v935_v42, %v818_v23  ;;  %v170_v44 = vpop.f32.mrb[7].mxu0  ;;  %961 = vmatmul.mubr.bf16.vlgmr.msra.gmra.mrb[0].mxu1 %v253_v36  ;;  %v242_v46 = vmax.f32 %v226_v39, 0.0 }
  0xe5   :  { %v225_v45 = vadd.f32 %v818_v23, %v170_v44  ;;  %v240_v48 = vmax.f32 %v224_v41, 0.0 }
  0xe6   :  { %v243_v47 = vmax.f32 %v227_v43, 0.0 }
  0xe7   :  { %v241_v49 = vmax.f32 %v225_v45, 0.0 }
  0xe8   :  { %v255_v50 = vpack.c.bf16 %v243_v47, %v242_v46 }
  0xe9   :  { %v254_v51 = vpack.c.bf16 %v241_v49, %v240_v48  ;;  %v938_v52 = vpop.f32.mrb[8].mxu0 }
  0xea   :  { %v230_v53 = vadd.f32 %v938_v52, %v818_v23  ;;  %v183_v54 = vpop.f32.mrb[9].mxu0 }
  0xeb   :  { %v228_v55 = vadd.f32 %v818_v23, %v183_v54  ;;  %v939_v56 = vpop.f32.mrb[10].mxu0  ;;  %964 = vmatprep.mubr.bf16.mxu1 %v254_v51 }
  0xec   :  { %v231_v57 = vadd.f32 %v939_v56, %v818_v23  ;;  %v186_v58 = vpop.f32.mrb[11].mxu0  ;;  %965 = vmatmul.mubr.bf16.gmra.mrb[4].mxu1 %v255_v50  ;;  %v246_v60 = vmax.f32 %v230_v53, 0.0 }
  0xed   :  { %v229_v59 = vadd.f32 %v818_v23, %v186_v58  ;;  %v244_v62 = vmax.f32 %v228_v55, 0.0 }
  0xee   :  { %v247_v61 = vmax.f32 %v231_v57, 0.0 }
  0xef   :  { %v245_v63 = vmax.f32 %v229_v59, 0.0 }
  0xf0   :  { %v257_v0 = vpack.c.bf16 %v247_v61, %v246_v60 }
  0xf1   :  { %v256_v1 = vpack.c.bf16 %v245_v63, %v244_v62  ;;  %v942_v2 = vpop.f32.mrb[12].mxu0 }
  0xf2   :  { %v234_v3 = vadd.f32 %v942_v2, %v818_v23  ;;  %v199_v4 = vpop.f32.mrb[13].mxu0 }
  0xf3   :  { %v232_v5 = vadd.f32 %v818_v23, %v199_v4  ;;  %v943_v6 = vpop.f32.mrb[14].mxu0  ;;  %968 = vmatprep.mubr.bf16.mxu1 %v256_v1 }
  0xf4   :  { %v235_v7 = vadd.f32 %v943_v6, %v818_v23  ;;  %v202_v8 = vpop.f32.mrb[15].mxu0  ;;  %969 = vmatmul.mubr.bf16.gmra.mrb[8].mxu1 %v257_v0  ;;  %v250_v10 = vmax.f32 %v234_v3, 0.0 }
  0xf5   :  { %v233_v9 = vadd.f32 %v818_v23, %v202_v8  ;;  %v248_v12 = vmax.f32 %v232_v5, 0.0 }
  0xf6   :  { %v251_v11 = vmax.f32 %v235_v7, 0.0 }
  0xf7   :  { %v249_v13 = vmax.f32 %v233_v9, 0.0 }
  0xf8   :  { %v259_v14 = vpack.c.bf16 %v251_v11, %v250_v10  ;;  %v1229_v11 = vld [vmem:[%s1317_s6] ss:$0 sm:$0xff] }
  0xf9   :  { %v258_v15 = vpack.c.bf16 %v249_v13, %v248_v12 }
  0xfb   :  { %972 = vmatprep.mubr.bf16.mxu1 %v258_v15 }
  0xfc   :  { %973 = vmatmul.mubr.bf16.gmra.mrb[12].mxu1 %v259_v14 }
 0x1b7   :  { %v962_v19 = vpop.f32.mrb[0].mxu1 }
 0x1b8   :  { %v374_v20 = vadd.f32 %v962_v19, %v819_v18  ;;  %v365_v21 = vpop.f32.mrb[1].mxu1 }
 0x1b9   :  { %v366_v22 = vadd.f32 %v819_v18, %v365_v21  ;;  %v963_v23 = vpop.f32.mrb[2].mxu1 }
 0x1ba   :  { %v377_v24 = vadd.f32 %v963_v23, %v819_v18  ;;  %v368_v25 = vpop.f32.mrb[3].mxu1  ;;  %v430_v27 = vmax.f32 %v374_v20, 0.0 }
 0x1bb   :  { %v369_v26 = vadd.f32 %v819_v18, %v368_v25  ;;  %v428_v29 = vmax.f32 %v366_v22, 0.0 }
 0x1bc   :  { %v431_v28 = vmax.f32 %v377_v24, 0.0 }
 0x1bd   :  { %v429_v30 = vmax.f32 %v369_v26, 0.0 }
 0x1be   :  { %v445_v31 = vpack.c.bf16 %v431_v28, %v430_v27 }
 0x1bf   :  { %v444_v32 = vpack.c.bf16 %v429_v30, %v428_v29  ;;  %v966_v33 = vpop.f32.mrb[4].mxu1 }
 0x1c0   :  { %v390_v34 = vadd.f32 %v966_v33, %v819_v18  ;;  %v381_v35 = vpop.f32.mrb[5].mxu1 }
 0x1c1   :  { %v382_v36 = vadd.f32 %v819_v18, %v381_v35  ;;  %v967_v37 = vpop.f32.mrb[6].mxu1  ;;  %992 = vmatprep.mubr.bf16.mxu0 %v444_v32 }
 0x1c2   :  { %v393_v38 = vadd.f32 %v967_v37, %v819_v18  ;;  %v384_v39 = vpop.f32.mrb[7].mxu1  ;;  %993 = vmatmul.mubr.bf16.vlgmr.msra.gmra.mrb[16].mxu0 %v445_v31  ;;  %v434_v41 = vmax.f32 %v390_v34, 0.0 }
 0x1c3   :  { %v385_v40 = vadd.f32 %v819_v18, %v384_v39  ;;  %v432_v43 = vmax.f32 %v382_v36, 0.0 }
 0x1c4   :  { %v435_v42 = vmax.f32 %v393_v38, 0.0 }
 0x1c5   :  { %v433_v44 = vmax.f32 %v385_v40, 0.0 }
 0x1c6   :  { %v447_v45 = vpack.c.bf16 %v435_v42, %v434_v41 }
 0x1c7   :  { %v446_v46 = vpack.c.bf16 %v433_v44, %v432_v43  ;;  %v970_v47 = vpop.f32.mrb[8].mxu1 }
 0x1c8   :  { %v406_v48 = vadd.f32 %v970_v47, %v819_v18  ;;  %v397_v49 = vpop.f32.mrb[9].mxu1 }
 0x1c9   :  { %v398_v50 = vadd.f32 %v819_v18, %v397_v49  ;;  %v971_v51 = vpop.f32.mrb[10].mxu1  ;;  %996 = vmatprep.mubr.bf16.mxu0 %v446_v46 }
 0x1ca   :  { %v409_v52 = vadd.f32 %v971_v51, %v819_v18  ;;  %v400_v53 = vpop.f32.mrb[11].mxu1  ;;  %997 = vmatmul.mubr.bf16.gmra.mrb[20].mxu0 %v447_v45  ;;  %v438_v55 = vmax.f32 %v406_v48, 0.0 }
 0x1cb   :  { %v401_v54 = vadd.f32 %v819_v18, %v400_v53  ;;  %v436_v57 = vmax.f32 %v398_v50, 0.0 }
 0x1cc   :  { %v439_v56 = vmax.f32 %v409_v52, 0.0 }
 0x1cd   :  { %v437_v58 = vmax.f32 %v401_v54, 0.0 }
 0x1ce   :  { %v449_v59 = vpack.c.bf16 %v439_v56, %v438_v55 }
 0x1cf   :  { %v448_v60 = vpack.c.bf16 %v437_v58, %v436_v57  ;;  %v974_v61 = vpop.f32.mrb[12].mxu1 }
 0x1d0   :  { %v422_v62 = vadd.f32 %v974_v61, %v819_v18  ;;  %v413_v63 = vpop.f32.mrb[13].mxu1 }
 0x1d1   :  { %v414_v0 = vadd.f32 %v819_v18, %v413_v63  ;;  %v975_v1 = vpop.f32.mrb[14].mxu1  ;;  %1000 = vmatprep.mubr.bf16.mxu0 %v448_v60 }
 0x1d2   :  { %v425_v2 = vadd.f32 %v975_v1, %v819_v18  ;;  %v416_v3 = vpop.f32.mrb[15].mxu1  ;;  %1001 = vmatmul.mubr.bf16.gmra.mrb[24].mxu0 %v449_v59  ;;  %v442_v5 = vmax.f32 %v422_v62, 0.0 }
 0x1d3   :  { %v417_v4 = vadd.f32 %v819_v18, %v416_v3  ;;  %v440_v7 = vmax.f32 %v414_v0, 0.0 }
 0x1d4   :  { %v443_v6 = vmax.f32 %v425_v2, 0.0 }
 0x1d5   :  { %v441_v8 = vmax.f32 %v417_v4, 0.0 }
 0x1d6   :  { %v451_v9 = vpack.c.bf16 %v443_v6, %v442_v5 }
 0x1d7   :  { %v450_v10 = vpack.c.bf16 %v441_v8, %v440_v7 }
 0x1d9   :  { %1004 = vmatprep.mubr.bf16.mxu0 %v450_v10 }
 0x1da   :  { %1005 = vmatmul.mubr.bf16.gmra.mrb[28].mxu0 %v451_v9 }
 0x295   :  { %v994_v12 = vpop.f32.mrb[16].mxu0 }
 0x296   :  { %v566_v13 = vadd.f32 %v994_v12, %v1229_v11  ;;  %v557_v14 = vpop.f32.mrb[17].mxu0 }
 0x297   :  { %v558_v15 = vadd.f32 %v1229_v11, %v557_v14  ;;  %v995_v16 = vpop.f32.mrb[18].mxu0 }
 0x298   :  { %v839_v17 = vmul.f32 -1.442695, %v566_v13  ;;  %v569_v18 = vadd.f32 %v995_v16, %v1229_v11  ;;  %v560_v19 = vpop.f32.mrb[19].mxu0 }
 0x299   :  { %v837_v20 = vmul.f32 -1.442695, %v558_v15  ;;  %v561_v21 = vadd.f32 %v1229_v11, %v560_v19 }
 0x29a   :  { %1033 = vpow2.f32 %v839_v17  ;;  %v840_v22 = vmul.f32 -1.442695, %v569_v18 }
 0x29b   :  { %1035 = vpow2.f32 %v837_v20  ;;  %v838_v23 = vmul.f32 -1.442695, %v561_v21 }
 0x29c   :  { %1037 = vpow2.f32 %v840_v22 }
 0x29d   :  { %1039 = vpow2.f32 %v838_v23  ;;  %v998_v24 = vpop.f32.mrb[20].mxu0 }
 0x29e   :  { %v582_v25 = vadd.f32 %v998_v24, %v1229_v11  ;;  %v573_v26 = vpop.f32.mrb[21].mxu0 }
 0x29f   :  { %v574_v27 = vadd.f32 %v1229_v11, %v573_v26  ;;  %v999_v28 = vpop.f32.mrb[22].mxu0 }
 0x2a0   :  { %v843_v29 = vmul.f32 -1.442695, %v582_v25  ;;  %v585_v30 = vadd.f32 %v999_v28, %v1229_v11  ;;  %v576_v31 = vpop.f32.mrb[23].mxu0 }
 0x2a1   :  { %v841_v32 = vmul.f32 -1.442695, %v574_v27  ;;  %v577_v33 = vadd.f32 %v1229_v11, %v576_v31 }
 0x2a2   :  { %1041 = vpow2.f32 %v843_v29  ;;  %v844_v34 = vmul.f32 -1.442695, %v585_v30 }
 0x2a3   :  { %1043 = vpow2.f32 %v841_v32  ;;  %v842_v35 = vmul.f32 -1.442695, %v577_v33 }
 0x2a4   :  { %v1034_v36 = vpop.eup %1033  ;;  %1045 = vpow2.f32 %v844_v34 }
 0x2a5   :  { %v1036_v37 = vpop.eup %1035  ;;  %v670_v38 = vadd.f32 1.0, %v1034_v36  ;;  %1047 = vpow2.f32 %v842_v35  ;;  %v1002_v39 = vpop.f32.mrb[24].mxu0 }
 0x2a6   :  { %v1038_v40 = vpop.eup %1037  ;;  %v668_v41 = vadd.f32 1.0, %v1036_v37  ;;  %v598_v42 = vadd.f32 %v1002_v39, %v1229_v11  ;;  %v589_v43 = vpop.f32.mrb[25].mxu0 }
 0x2a7   :  { %v1040_v44 = vpop.eup %1039  ;;  %1049 = vrcp.f32 %v670_v38  ;;  %v671_v45 = vadd.f32 1.0, %v1038_v40  ;;  %v590_v46 = vadd.f32 %v1229_v11, %v589_v43  ;;  %v1003_v47 = vpop.f32.mrb[26].mxu0 }
 0x2a8   :  { %1051 = vrcp.f32 %v668_v41  ;;  %v669_v48 = vadd.f32 1.0, %v1040_v44  ;;  %v847_v49 = vmul.f32 -1.442695, %v598_v42  ;;  %v601_v50 = vadd.f32 %v1003_v47, %v1229_v11  ;;  %v592_v51 = vpop.f32.mrb[27].mxu0 }
 0x2a9   :  { %1053 = vrcp.f32 %v671_v45  ;;  %v845_v52 = vmul.f32 -1.442695, %v590_v46  ;;  %v593_v53 = vadd.f32 %v1229_v11, %v592_v51 }
 0x2aa   :  { %1055 = vrcp.f32 %v669_v48  ;;  %v848_v54 = vmul.f32 -1.442695, %v601_v50 }
 0x2ab   :  { %1057 = vpow2.f32 %v847_v49  ;;  %v846_v55 = vmul.f32 -1.442695, %v593_v53 }
 0x2ac   :  { %v1042_v56 = vpop.eup %1041  ;;  %1059 = vpow2.f32 %v845_v52 }
 0x2ad   :  { %v1044_v57 = vpop.eup %1043  ;;  %v674_v58 = vadd.f32 1.0, %v1042_v56  ;;  %1061 = vpow2.f32 %v848_v54  ;;  %v1006_v59 = vpop.f32.mrb[28].mxu0 }
 0x2ae   :  { %v1046_v60 = vpop.eup %1045  ;;  %v672_v61 = vadd.f32 1.0, %v1044_v57  ;;  %1063 = vpow2.f32 %v846_v55  ;;  %v614_v62 = vadd.f32 %v1006_v59, %v1229_v11  ;;  %v605_v63 = vpop.f32.mrb[29].mxu0 }
 0x2af   :  { %v1048_v0 = vpop.eup %1047  ;;  %1065 = vrcp.f32 %v674_v58  ;;  %v675_v1 = vadd.f32 1.0, %v1046_v60  ;;  %v606_v2 = vadd.f32 %v1229_v11, %v605_v63  ;;  %v1007_v3 = vpop.f32.mrb[30].mxu0 }
 0x2b0   :  { %1067 = vrcp.f32 %v672_v61  ;;  %v673_v4 = vadd.f32 1.0, %v1048_v0  ;;  %v851_v5 = vmul.f32 -1.442695, %v614_v62  ;;  %v617_v6 = vadd.f32 %v1007_v3, %v1229_v11  ;;  %v608_v7 = vpop.f32.mrb[31].mxu0 }
 0x2b1   :  { %v1050_v8 = vpop.eup %1049  ;;  %1069 = vrcp.f32 %v675_v1  ;;  %v849_v9 = vmul.f32 -1.442695, %v606_v2  ;;  %v609_v10 = vadd.f32 %v1229_v11, %v608_v7 }
 0x2b2   :  { %v1052_v12 = vpop.eup %1051  ;;  %v871_v13 = vpack.c.bf16 %v1050_v8, %v1050_v8  ;;  %1071 = vrcp.f32 %v673_v4  ;;  %v852_v14 = vmul.f32 -1.442695, %v617_v6 }
 0x2b3   :  { %v1054_v15 = vpop.eup %1053  ;;  %v869_v16 = vpack.c.bf16 %v1052_v12, %v1052_v12  ;;  %1073 = vpow2.f32 %v851_v5  ;;  %v850_v17 = vmul.f32 -1.442695, %v609_v10 }
 0x2b4   :  { %v1056_v18 = vpop.eup %1055  ;;  %783 = vst.msk [vmem:[%s1318_s7 + $0x8] sm:$0xf] %vm780_vm1, %v871_v13  ;;  %v872_v19 = vpack.c.bf16 %v1054_v15, %v1054_v15  ;;  %1075 = vpow2.f32 %v849_v9 }
 0x2b5   :  { %v1058_v20 = vpop.eup %1057  ;;  %781 = vst.msk [vmem:[%s1318_s7] sm:$0xf] %vm780_vm1, %v869_v16  ;;  %v870_v11 = vpack.c.bf16 %v1056_v18, %v1056_v18  ;;  %1077 = vpow2.f32 %v852_v14 }
 0x2b6   :  { %v1060_v21 = vpop.eup %1059  ;;  %784 = vst.msk [vmem:[%s1318_s7 + $0xc] sm:$0xf] %vm780_vm1, %v872_v19  ;;  %v678_v22 = vadd.f32 1.0, %v1058_v20  ;;  %1079 = vpow2.f32 %v850_v17 }
 0x2b7   :  { %v1062_v23 = vpop.eup %1061  ;;  %782 = vst.msk [vmem:[%s1318_s7 + $0x4] sm:$0xf] %vm780_vm1, %v870_v11  ;;  %v676_v24 = vadd.f32 1.0, %v1060_v21 }
 0x2b8   :  { %v1064_v25 = vpop.eup %1063  ;;  %1081 = vrcp.f32 %v678_v22  ;;  %v679_v26 = vadd.f32 1.0, %v1062_v23 }
 0x2b9   :  { %v1066_v27 = vpop.eup %1065  ;;  %1083 = vrcp.f32 %v676_v24  ;;  %v677_v28 = vadd.f32 1.0, %v1064_v25 }
 0x2ba   :  { %v1068_v29 = vpop.eup %1067  ;;  %v875_v30 = vpack.c.bf16 %v1066_v27, %v1066_v27  ;;  %1085 = vrcp.f32 %v679_v26 }
 0x2bb   :  { %v1070_v31 = vpop.eup %1069  ;;  %v873_v32 = vpack.c.bf16 %v1068_v29, %v1068_v29  ;;  %1087 = vrcp.f32 %v677_v28 }
 0x2bc   :  { %v1072_v33 = vpop.eup %1071  ;;  %787 = vst.msk [vmem:[%s1318_s7 + $0x18] sm:$0xf] %vm780_vm1, %v875_v30  ;;  %v876_v34 = vpack.c.bf16 %v1070_v31, %v1070_v31 }
 0x2bd   :  { %v1074_v35 = vpop.eup %1073  ;;  %785 = vst.msk [vmem:[%s1318_s7 + $0x10] sm:$0xf] %vm780_vm1, %v873_v32  ;;  %v874_v36 = vpack.c.bf16 %v1072_v33, %v1072_v33 }
 0x2be   :  { %v1076_v37 = vpop.eup %1075  ;;  %788 = vst.msk [vmem:[%s1318_s7 + $0x1c] sm:$0xf] %vm780_vm1, %v876_v34  ;;  %v682_v38 = vadd.f32 1.0, %v1074_v35 }
 0x2bf   :  { %v1078_v39 = vpop.eup %1077  ;;  %786 = vst.msk [vmem:[%s1318_s7 + $0x14] sm:$0xf] %vm780_vm1, %v874_v36  ;;  %v680_v40 = vadd.f32 1.0, %v1076_v37 }
 0x2c0   :  { %v1080_v41 = vpop.eup %1079  ;;  %1089 = vrcp.f32 %v682_v38  ;;  %v683_v42 = vadd.f32 1.0, %v1078_v39 }
 0x2c1   :  { %1091 = vrcp.f32 %v680_v40  ;;  %v681_v43 = vadd.f32 1.0, %v1080_v41 }
 0x2c2   :  { %v1082_v44 = vpop.eup %1081  ;;  %1093 = vrcp.f32 %v683_v42 }
 0x2c3   :  { %v1084_v45 = vpop.eup %1083  ;;  %v879_v46 = vpack.c.bf16 %v1082_v44, %v1082_v44  ;;  %1095 = vrcp.f32 %v681_v43 }
 0x2c4   :  { %v1086_v47 = vpop.eup %1085  ;;  %v877_v48 = vpack.c.bf16 %v1084_v45, %v1084_v45 }
 0x2c5   :  { %v1088_v49 = vpop.eup %1087  ;;  %791 = vst.msk [vmem:[%s1318_s7 + $0x28] sm:$0xf] %vm780_vm1, %v879_v46  ;;  %v880_v50 = vpack.c.bf16 %v1086_v47, %v1086_v47 }
 0x2c6   :  { %789 = vst.msk [vmem:[%s1318_s7 + $0x20] sm:$0xf] %vm780_vm1, %v877_v48  ;;  %v878_v51 = vpack.c.bf16 %v1088_v49, %v1088_v49 }
 0x2c7   :  { %792 = vst.msk [vmem:[%s1318_s7 + $0x2c] sm:$0xf] %vm780_vm1, %v880_v50 }
 0x2c8   :  { %790 = vst.msk [vmem:[%s1318_s7 + $0x24] sm:$0xf] %vm780_vm1, %v878_v51 }
 0x2ca   :  { %v1090_v52 = vpop.eup %1089 }
 0x2cb   :  { %v1092_v53 = vpop.eup %1091  ;;  %v883_v54 = vpack.c.bf16 %v1090_v52, %v1090_v52 }
 0x2cc   :  { %v1094_v55 = vpop.eup %1093  ;;  %v881_v56 = vpack.c.bf16 %v1092_v53, %v1092_v53 }
 0x2cd   :  { %v1096_v57 = vpop.eup %1095  ;;  %795 = vst.msk [vmem:[%s1318_s7 + $0x38] sm:$0xf] %vm780_vm1, %v883_v54  ;;  %v884_v58 = vpack.c.bf16 %v1094_v55, %v1094_v55 }
 0x2ce   :  { %793 = vst.msk [vmem:[%s1318_s7 + $0x30] sm:$0xf] %vm780_vm1, %v881_v56  ;;  %v882_v59 = vpack.c.bf16 %v1096_v57, %v1096_v57 }
 0x2cf   :  { %796 = vst.msk [vmem:[%s1318_s7 + $0x3c] sm:$0xf] %vm780_vm1, %v884_v58 }
 0x2d0   :  { %794 = vst.msk [vmem:[%s1318_s7 + $0x34] sm:$0xf] %vm780_vm1, %v882_v59 }

// kernel: encode_process_decode.8
= control target key start
LH: loop header
LB: loop body
LE: loop exit
PB: predicated region body
PF: predicated region fallthrough
CT: control target
= control target key end

     0   :  { %s1472_s24 = smov 0   ;;  %s1616_s0 = inlined_call_operand.vmem [shape: bf16[256,16], index: 0, kind: input, shape index: {}]   ;;  %s1617_s1 = inlined_call_operand.vmem [shape: bf16[16,128], index: 1, kind: input, shape index: {}]   ;;  %s1618_s2 = inlined_call_operand.vmem [shape: f32[1,128], index: 2, kind: input, shape index: {}]   ;;  %s1619_s3 = inlined_call_operand.vmem [shape: bf16[128,128], index: 3, kind: input, shape index: {}]   ;;  %s1620_s4 = inlined_call_operand.vmem [shape: f32[1,128], index: 4, kind: input, shape index: {}]   ;;  %s1621_s5 = inlined_call_operand.vmem [shape: bf16[128,64], index: 5, kind: input, shape index: {}]   ;;  %s1622_s6 = inlined_call_operand.vmem [shape: f32[1,64], index: 6, kind: input, shape index: {}]   ;;  %s1623_s7 = inlined_call_operand.vmem [shape: bf16[256,64], index: 7, kind: output, shape index: {}]  }
   0x1 LB: > { %s1109_s25 = sadd.s32 4294967295, %s1430_s24   ;;  %p1113_p0 = scmp.ge.s32.totalorder %s1430_s24, 1  ;;  %s1430_s24 = sphi %s1472_s24, %s17_s24  }
   0x2   : > { %p238_p1 = scmp.lt.s32.totalorder %s1430_s24, 3 }
   0x4   : > { %p239_p2 = pnand %p1113_p0, %p238_p1 }
   0x5   : > { %v1335_v0 = vld [vmem:[%s1617_s1] sm:$0xff] (!%p239_p2)   ;;  %s1114_s28 = sshll.u32 (!%p239_p2), %s1109_s25, 4  ;;  %v1345_v2 = vld [vmem:[%s1619_s3 + $0x8] sm:$0xff] (!%p239_p2)   ;;  %vm348_vm0 = vcmask (!%p239_p2), 130048   ;;  %v1346_v3 = vld [vmem:[%s1619_s3 + $0x10] sm:$0xff] (!%p239_p2)   ;;  %vm1036_vm1 = vcmask (!%p239_p2), 519168  }
   0x6   : > { %242 = sbr.rel (%p239_p2) target bundleno = 733 (0x2dd), region = 48  ;;  %p271_p3 = scmp.lt.s32.totalorder (!%p239_p2), %s1114_s28, 31  ;;  %1245 = vmatprep.subr.bf16.mxu0 (!%p239_p2), %v1335_v0  ;;  %v1344_v1 = vld [vmem:[%s1619_s3] sm:$0xff] (!%p239_p2)   ;;  %v1347_v7 = vld [vmem:[%s1619_s3 + $0x18] sm:$0xff] (!%p239_p2)   ;;  %v1349_v11 = vld [vmem:[%s1619_s3 + $0x28] sm:$0xff] (!%p239_p2)  }
   0x7   : > { %1246 = vmatpush3.bf16.msra.mxu0 (!%p239_p2), %v1335_v0  ;;  %1263 = vmatprep.subr.bf16.mxu1 (!%p239_p2), %v1344_v1  ;;  %v1348_v8 = vld [vmem:[%s1619_s3 + $0x20] sm:$0xff] (!%p239_p2)   ;;  %v1350_v15 = vld [vmem:[%s1619_s3 + $0x30] sm:$0xff] (!%p239_p2)   ;;  %v1351_v16 = vld [vmem:[%s1619_s3 + $0x38] sm:$0xff] (!%p239_p2)  }
   0x8   : > { %1264 = vmatpush3.bf16.msra.mxu1 (!%p239_p2), %v1344_v1  ;;  %v1352_v17 = vld [vmem:[%s1621_s5] sm:$0xff] (!%p239_p2)   ;;  %v1353_v18 = vld [vmem:[%s1621_s5 + $0x8] sm:$0xff] (!%p239_p2)   ;;  %v1354_v19 = vld [vmem:[%s1621_s5 + $0x10] sm:$0xff] (!%p239_p2)  }
   0x9   : > { %1265 = vmatprep.subr.bf16.mxu1 (!%p239_p2), %v1345_v2  ;;  %1295 = vmatprep.subr.bf16.mxu0 (!%p239_p2), %v1352_v17  ;;  %v1355_v20 = vld [vmem:[%s1621_s5 + $0x18] sm:$0xff] (!%p239_p2)   ;;  %v1356_v21 = vld [vmem:[%s1621_s5 + $0x20] sm:$0xff] (!%p239_p2)   ;;  %v1357_v22 = vld [vmem:[%s1621_s5 + $0x28] sm:$0xff] (!%p239_p2)  }
   0xa   : > { %v1135_v23 = vld [vmem:[%s1618_s2] ss:$0 sm:$0xff] (!%p239_p2) }
   0xc   : > { %1266 = vmatpush3.bf16.msra.mxu1 (!%p239_p2), %v1345_v2 }
   0xd   : > { %s1625_s28 = smov (!%p271_p3, %s1114_s28), 31  ;;  %1267 = vmatprep.subr.bf16.mxu1 %v1346_v3 }
   0xe   : > { %s1115_s10 = sshll.u32 %s1625_s28, 2 }
   0xf   : > { %s274_s13 = scalar_lea.vmem %s1616_s0, %s1115_s10  ;;  %s1578_s9 = scalar_lea.vmem %s1623_s7, %s1115_s10 }
  0x10   : > { %v1336_v4 = vld [vmem:[%s274_s13] sm:$0xff]   ;;  %v1337_v5 = vld [vmem:[%s274_s13 + $0x8] sm:$0xff]   ;;  %v1338_v6 = vld [vmem:[%s274_s13 + $0x10] sm:$0xff]   ;;  %1268 = vmatpush3.bf16.msra.mxu1 %v1346_v3 }
  0x11   : > { %1247 = vmatprep.mubr.msk.bf16.mxu0 %vm348_vm0, %v1336_v4  ;;  %v1339_v9 = vld [vmem:[%s274_s13 + $0x18] sm:$0xff]   ;;  %1269 = vmatprep.subr.bf16.mxu1 %v1347_v7  ;;  %v1340_v10 = vld [vmem:[%s274_s13 + $0x20] sm:$0xff]   ;;  %v1341_v12 = vld [vmem:[%s274_s13 + $0x28] sm:$0xff]  }
  0x12   : > { %1248 = vmatmul.mubr.msk.bf16.vlgmr.msra.gmra.mrb[0].mxu0 %vm348_vm0, %v1337_v5  ;;  %v1342_v13 = vld [vmem:[%s274_s13 + $0x30] sm:$0xff]   ;;  %v1343_v14 = vld [vmem:[%s274_s13 + $0x38] sm:$0xff]  }
  0x13   : > { %1251 = vmatprep.mubr.msk.bf16.mxu0 %vm348_vm0, %v1338_v6  ;;  %1296 = vmatpush3.bf16.msra.mxu0 %v1352_v17  ;;  %v1359_v17 = vld [vmem:[%s1621_s5 + $0x38] sm:$0xff]  }
  0x14   : > { %1270 = vmatpush3.bf16.msra.mxu1 %v1347_v7  ;;  %1297 = vmatprep.subr.bf16.mxu0 %v1353_v18 }
  0x15   : > { %1271 = vmatprep.subr.bf16.mxu1 %v1348_v8 }
  0x17   : > { %1298 = vmatpush3.bf16.msra.mxu0 %v1353_v18  ;;  %v1136_v18 = vld [vmem:[%s1620_s4] ss:$0 sm:$0xff] }
  0x18   : > { %1272 = vmatpush3.bf16.msra.mxu1 %v1348_v8  ;;  %1299 = vmatprep.subr.bf16.mxu0 %v1354_v19 }
  0x19   : > { %1273 = vmatprep.subr.bf16.mxu1 %v1349_v11 }
  0x1a   : > { %1252 = vmatmul.mubr.msk.bf16.gmra.mrb[4].mxu0 %vm348_vm0, %v1339_v9 }
  0x1b   : > { %1255 = vmatprep.mubr.msk.bf16.mxu0 %vm348_vm0, %v1340_v10  ;;  %1300 = vmatpush3.bf16.msra.mxu0 %v1354_v19 }
  0x1c   : > { %1274 = vmatpush3.bf16.msra.mxu1 %v1349_v11  ;;  %1301 = vmatprep.subr.bf16.mxu0 %v1355_v20 }
  0x1d   : > { %1275 = vmatprep.subr.bf16.mxu1 %v1350_v15 }
  0x1f   : > { %1302 = vmatpush3.bf16.msra.mxu0 %v1355_v20 }
  0x20   : > { %1276 = vmatpush3.bf16.msra.mxu1 %v1350_v15  ;;  %1303 = vmatprep.subr.bf16.mxu0 %v1356_v21 }
  0x21   : > { %1277 = vmatprep.subr.bf16.mxu1 %v1351_v16 }
  0x22   : > { %1256 = vmatmul.mubr.msk.bf16.gmra.mrb[8].mxu0 %vm348_vm0, %v1341_v12 }
  0x23   : > { %1259 = vmatprep.mubr.msk.bf16.mxu0 %vm348_vm0, %v1342_v13  ;;  %1304 = vmatpush3.bf16.msra.mxu0 %v1356_v21 }
  0x24   : > { %1278 = vmatpush3.bf16.msra.mxu1 %v1351_v16  ;;  %1305 = vmatprep.subr.bf16.mxu0 %v1357_v22  ;;  %v1358_v16 = vld [vmem:[%s1621_s5 + $0x30] sm:$0xff]  }
  0x27   : > { %1306 = vmatpush3.bf16.msra.mxu0 %v1357_v22 }
  0x28   : > { %1307 = vmatprep.subr.bf16.mxu0 %v1358_v16 }
  0x2a   : > { %1260 = vmatmul.mubr.msk.bf16.gmra.mrb[12].mxu0 %vm348_vm0, %v1343_v14 }
  0x2b   : > { %1308 = vmatpush3.bf16.msra.mxu0 %v1358_v16 }
  0x2c   : > { %1309 = vmatprep.subr.bf16.mxu0 %v1359_v17 }
  0x2f   : > { %1310 = vmatpush3.bf16.msra.mxu0 %v1359_v17 }
  0xe5   : > { %v1249_v24 = vpop.f32.mrb[0].mxu0 }
  0xe6   : > { %v478_v25 = vadd.f32 %v1249_v24, %v1135_v23  ;;  %v407_v26 = vpop.f32.mrb[1].mxu0 }
  0xe7   : > { %v476_v27 = vadd.f32 %v1135_v23, %v407_v26  ;;  %v1250_v28 = vpop.f32.mrb[2].mxu0 }
  0xe8   : > { %v479_v29 = vadd.f32 %v1250_v28, %v1135_v23  ;;  %v410_v30 = vpop.f32.mrb[3].mxu0  ;;  %v494_v32 = vmax.f32 %v478_v25, 0.0 }
  0xe9   : > { %v477_v31 = vadd.f32 %v1135_v23, %v410_v30  ;;  %v492_v34 = vmax.f32 %v476_v27, 0.0 }
  0xea   : > { %v495_v33 = vmax.f32 %v479_v29, 0.0 }
  0xeb   : > { %v493_v35 = vmax.f32 %v477_v31, 0.0 }
  0xec   : > { %v509_v36 = vpack.c.bf16 %v495_v33, %v494_v32 }
  0xed   : > { %v1253_v37 = vpop.f32.mrb[4].mxu0  ;;  %v508_v38 = vpack.c.bf16 %v493_v35, %v492_v34 }
  0xee   : > { %v482_v39 = vadd.f32 %v1253_v37, %v1135_v23  ;;  %v423_v40 = vpop.f32.mrb[5].mxu0 }
  0xef   : > { %v480_v41 = vadd.f32 %v1135_v23, %v423_v40  ;;  %v1254_v42 = vpop.f32.mrb[6].mxu0  ;;  %1279 = vmatprep.mubr.bf16.mxu1 %v508_v38 }
  0xf0   : > { %v483_v43 = vadd.f32 %v1254_v42, %v1135_v23  ;;  %v426_v44 = vpop.f32.mrb[7].mxu0  ;;  %1280 = vmatmul.mubr.bf16.vlgmr.msra.gmra.mrb[0].mxu1 %v509_v36  ;;  %v498_v46 = vmax.f32 %v482_v39, 0.0 }
  0xf1   : > { %v481_v45 = vadd.f32 %v1135_v23, %v426_v44  ;;  %v496_v48 = vmax.f32 %v480_v41, 0.0 }
  0xf2   : > { %v499_v47 = vmax.f32 %v483_v43, 0.0 }
  0xf3   : > { %v497_v49 = vmax.f32 %v481_v45, 0.0 }
  0xf4   : > { %v511_v50 = vpack.c.bf16 %v499_v47, %v498_v46 }
  0xf5   : > { %v510_v51 = vpack.c.bf16 %v497_v49, %v496_v48  ;;  %v1257_v52 = vpop.f32.mrb[8].mxu0 }
  0xf6   : > { %v486_v53 = vadd.f32 %v1257_v52, %v1135_v23  ;;  %v439_v54 = vpop.f32.mrb[9].mxu0 }
  0xf7   : > { %v484_v55 = vadd.f32 %v1135_v23, %v439_v54  ;;  %v1258_v56 = vpop.f32.mrb[10].mxu0  ;;  %1283 = vmatprep.mubr.bf16.mxu1 %v510_v51 }
  0xf8   : > { %v487_v57 = vadd.f32 %v1258_v56, %v1135_v23  ;;  %v442_v58 = vpop.f32.mrb[11].mxu0  ;;  %1284 = vmatmul.mubr.bf16.gmra.mrb[4].mxu1 %v511_v50  ;;  %v502_v60 = vmax.f32 %v486_v53, 0.0 }
  0xf9   : > { %v485_v59 = vadd.f32 %v1135_v23, %v442_v58  ;;  %v500_v62 = vmax.f32 %v484_v55, 0.0 }
  0xfa   : > { %v503_v61 = vmax.f32 %v487_v57, 0.0 }
  0xfb   : > { %v501_v63 = vmax.f32 %v485_v59, 0.0 }
  0xfc   : > { %v513_v0 = vpack.c.bf16 %v503_v61, %v502_v60 }
  0xfd   : > { %v512_v1 = vpack.c.bf16 %v501_v63, %v500_v62  ;;  %v1261_v2 = vpop.f32.mrb[12].mxu0 }
  0xfe   : > { %v490_v3 = vadd.f32 %v1261_v2, %v1135_v23  ;;  %v455_v4 = vpop.f32.mrb[13].mxu0 }
  0xff   : > { %v488_v5 = vadd.f32 %v1135_v23, %v455_v4  ;;  %v1262_v6 = vpop.f32.mrb[14].mxu0  ;;  %1287 = vmatprep.mubr.bf16.mxu1 %v512_v1 }
 0x100   : > { %v491_v7 = vadd.f32 %v1262_v6, %v1135_v23  ;;  %v458_v8 = vpop.f32.mrb[15].mxu0  ;;  %1288 = vmatmul.mubr.bf16.gmra.mrb[8].mxu1 %v513_v0  ;;  %v506_v10 = vmax.f32 %v490_v3, 0.0 }
 0x101   : > { %v489_v9 = vadd.f32 %v1135_v23, %v458_v8  ;;  %v504_v12 = vmax.f32 %v488_v5, 0.0 }
 0x102   : > { %v507_v11 = vmax.f32 %v491_v7, 0.0 }
 0x103   : > { %v505_v13 = vmax.f32 %v489_v9, 0.0 }
 0x104   : > { %v515_v14 = vpack.c.bf16 %v507_v11, %v506_v10  ;;  %v1556_v11 = vld [vmem:[%s1622_s6] ss:$0 sm:$0xff] }
 0x105   : > { %v514_v15 = vpack.c.bf16 %v505_v13, %v504_v12 }
 0x107   : > { %1291 = vmatprep.mubr.bf16.mxu1 %v514_v15 }
 0x108   : > { %1292 = vmatmul.mubr.bf16.gmra.mrb[12].mxu1 %v515_v14 }
 0x1c3   : > { %v1281_v19 = vpop.f32.mrb[0].mxu1 }
 0x1c4   : > { %v630_v20 = vadd.f32 %v1281_v19, %v1136_v18  ;;  %v621_v21 = vpop.f32.mrb[1].mxu1 }
 0x1c5   : > { %v622_v22 = vadd.f32 %v1136_v18, %v621_v21  ;;  %v1282_v23 = vpop.f32.mrb[2].mxu1 }
 0x1c6   : > { %v633_v24 = vadd.f32 %v1282_v23, %v1136_v18  ;;  %v624_v25 = vpop.f32.mrb[3].mxu1  ;;  %v686_v27 = vmax.f32 %v630_v20, 0.0 }
 0x1c7   : > { %v625_v26 = vadd.f32 %v1136_v18, %v624_v25  ;;  %v684_v29 = vmax.f32 %v622_v22, 0.0 }
 0x1c8   : > { %v687_v28 = vmax.f32 %v633_v24, 0.0 }
 0x1c9   : > { %v685_v30 = vmax.f32 %v625_v26, 0.0 }
 0x1ca   : > { %v701_v31 = vpack.c.bf16 %v687_v28, %v686_v27 }
 0x1cb   : > { %v700_v32 = vpack.c.bf16 %v685_v30, %v684_v29  ;;  %v1285_v33 = vpop.f32.mrb[4].mxu1 }
 0x1cc   : > { %v646_v34 = vadd.f32 %v1285_v33, %v1136_v18  ;;  %v637_v35 = vpop.f32.mrb[5].mxu1 }
 0x1cd   : > { %v638_v36 = vadd.f32 %v1136_v18, %v637_v35  ;;  %v1286_v37 = vpop.f32.mrb[6].mxu1  ;;  %1311 = vmatprep.mubr.bf16.mxu0 %v700_v32 }
 0x1ce   : > { %v649_v38 = vadd.f32 %v1286_v37, %v1136_v18  ;;  %v640_v39 = vpop.f32.mrb[7].mxu1  ;;  %1312 = vmatmul.mubr.bf16.vlgmr.msra.gmra.mrb[16].mxu0 %v701_v31  ;;  %v690_v41 = vmax.f32 %v646_v34, 0.0 }
 0x1cf   : > { %v641_v40 = vadd.f32 %v1136_v18, %v640_v39  ;;  %v688_v43 = vmax.f32 %v638_v36, 0.0 }
 0x1d0   : > { %v691_v42 = vmax.f32 %v649_v38, 0.0 }
 0x1d1   : > { %v689_v44 = vmax.f32 %v641_v40, 0.0 }
 0x1d2   : > { %v703_v45 = vpack.c.bf16 %v691_v42, %v690_v41 }
 0x1d3   : > { %v702_v46 = vpack.c.bf16 %v689_v44, %v688_v43  ;;  %v1289_v47 = vpop.f32.mrb[8].mxu1 }
 0x1d4   : > { %v662_v48 = vadd.f32 %v1289_v47, %v1136_v18  ;;  %v653_v49 = vpop.f32.mrb[9].mxu1 }
 0x1d5   : > { %v654_v50 = vadd.f32 %v1136_v18, %v653_v49  ;;  %v1290_v51 = vpop.f32.mrb[10].mxu1  ;;  %1315 = vmatprep.mubr.bf16.mxu0 %v702_v46 }
 0x1d6   : > { %v665_v52 = vadd.f32 %v1290_v51, %v1136_v18  ;;  %v656_v53 = vpop.f32.mrb[11].mxu1  ;;  %1316 = vmatmul.mubr.bf16.gmra.mrb[20].mxu0 %v703_v45  ;;  %v694_v55 = vmax.f32 %v662_v48, 0.0 }
 0x1d7   : > { %v657_v54 = vadd.f32 %v1136_v18, %v656_v53  ;;  %v692_v57 = vmax.f32 %v654_v50, 0.0 }
 0x1d8   : > { %v695_v56 = vmax.f32 %v665_v52, 0.0 }
 0x1d9   : > { %v693_v58 = vmax.f32 %v657_v54, 0.0 }
 0x1da   : > { %v705_v59 = vpack.c.bf16 %v695_v56, %v694_v55 }
 0x1db   : > { %v704_v60 = vpack.c.bf16 %v693_v58, %v692_v57  ;;  %v1293_v61 = vpop.f32.mrb[12].mxu1 }
 0x1dc   : > { %v678_v62 = vadd.f32 %v1293_v61, %v1136_v18  ;;  %v669_v63 = vpop.f32.mrb[13].mxu1 }
 0x1dd   : > { %v670_v0 = vadd.f32 %v1136_v18, %v669_v63  ;;  %v1294_v1 = vpop.f32.mrb[14].mxu1  ;;  %1319 = vmatprep.mubr.bf16.mxu0 %v704_v60 }
 0x1de   : > { %v681_v2 = vadd.f32 %v1294_v1, %v1136_v18  ;;  %v672_v3 = vpop.f32.mrb[15].mxu1  ;;  %1320 = vmatmul.mubr.bf16.gmra.mrb[24].mxu0 %v705_v59  ;;  %v698_v5 = vmax.f32 %v678_v62, 0.0 }
 0x1df   : > { %v673_v4 = vadd.f32 %v1136_v18, %v672_v3  ;;  %v696_v7 = vmax.f32 %v670_v0, 0.0 }
 0x1e0   : > { %v699_v6 = vmax.f32 %v681_v2, 0.0 }
 0x1e1   : > { %v697_v8 = vmax.f32 %v673_v4, 0.0 }
 0x1e2   : > { %v707_v9 = vpack.c.bf16 %v699_v6, %v698_v5 }
 0x1e3   : > { %v706_v10 = vpack.c.bf16 %v697_v8, %v696_v7 }
 0x1e5   : > { %1323 = vmatprep.mubr.bf16.mxu0 %v706_v10 }
 0x1e6   : > { %1324 = vmatmul.mubr.bf16.gmra.mrb[28].mxu0 %v707_v9 }
 0x2a1   : > { %v1313_v12 = vpop.f32.mrb[16].mxu0 }
 0x2a2   : > { %v822_v13 = vadd.f32 %v1313_v12, %v1556_v11  ;;  %v813_v14 = vpop.f32.mrb[17].mxu0 }
 0x2a3   : > { %v814_v15 = vadd.f32 %v1556_v11, %v813_v14  ;;  %v1314_v16 = vpop.f32.mrb[18].mxu0 }
 0x2a4   : > { %v1156_v17 = vmul.f32 -1.442695, %v822_v13  ;;  %v825_v18 = vadd.f32 %v1314_v16, %v1556_v11  ;;  %v816_v19 = vpop.f32.mrb[19].mxu0 }
 0x2a5   : > { %v1154_v20 = vmul.f32 -1.442695, %v814_v15  ;;  %v817_v21 = vadd.f32 %v1556_v11, %v816_v19 }
 0x2a6   : > { %1360 = vpow2.f32 %v1156_v17  ;;  %v1157_v22 = vmul.f32 -1.442695, %v825_v18 }
 0x2a7   : > { %1362 = vpow2.f32 %v1154_v20  ;;  %v1155_v23 = vmul.f32 -1.442695, %v817_v21 }
 0x2a8   : > { %1364 = vpow2.f32 %v1157_v22 }
 0x2a9   : > { %1366 = vpow2.f32 %v1155_v23  ;;  %v1317_v24 = vpop.f32.mrb[20].mxu0 }
 0x2aa   : > { %v838_v25 = vadd.f32 %v1317_v24, %v1556_v11  ;;  %v829_v26 = vpop.f32.mrb[21].mxu0 }
 0x2ab   : > { %v830_v27 = vadd.f32 %v1556_v11, %v829_v26  ;;  %v1318_v28 = vpop.f32.mrb[22].mxu0 }
 0x2ac   : > { %v1160_v29 = vmul.f32 -1.442695, %v838_v25  ;;  %v841_v30 = vadd.f32 %v1318_v28, %v1556_v11  ;;  %v832_v31 = vpop.f32.mrb[23].mxu0 }
 0x2ad   : > { %v1158_v32 = vmul.f32 -1.442695, %v830_v27  ;;  %v833_v33 = vadd.f32 %v1556_v11, %v832_v31 }
 0x2ae   : > { %1368 = vpow2.f32 %v1160_v29  ;;  %v1161_v34 = vmul.f32 -1.442695, %v841_v30 }
 0x2af   : > { %1370 = vpow2.f32 %v1158_v32  ;;  %v1159_v35 = vmul.f32 -1.442695, %v833_v33 }
 0x2b0   : > { %v1361_v36 = vpop.eup %1360  ;;  %1372 = vpow2.f32 %v1161_v34 }
 0x2b1   : > { %v1363_v37 = vpop.eup %1362  ;;  %v926_v38 = vadd.f32 1.0, %v1361_v36  ;;  %1374 = vpow2.f32 %v1159_v35  ;;  %v1321_v39 = vpop.f32.mrb[24].mxu0 }
 0x2b2   : > { %v1365_v40 = vpop.eup %1364  ;;  %v924_v41 = vadd.f32 1.0, %v1363_v37  ;;  %v854_v42 = vadd.f32 %v1321_v39, %v1556_v11  ;;  %v845_v43 = vpop.f32.mrb[25].mxu0 }
 0x2b3   : > { %v1367_v44 = vpop.eup %1366  ;;  %1376 = vrcp.f32 %v926_v38  ;;  %v927_v45 = vadd.f32 1.0, %v1365_v40  ;;  %v846_v46 = vadd.f32 %v1556_v11, %v845_v43  ;;  %v1322_v47 = vpop.f32.mrb[26].mxu0 }
 0x2b4   : > { %1378 = vrcp.f32 %v924_v41  ;;  %v925_v48 = vadd.f32 1.0, %v1367_v44  ;;  %v1164_v49 = vmul.f32 -1.442695, %v854_v42  ;;  %v857_v50 = vadd.f32 %v1322_v47, %v1556_v11  ;;  %v848_v51 = vpop.f32.mrb[27].mxu0 }
 0x2b5   : > { %1380 = vrcp.f32 %v927_v45  ;;  %v1162_v52 = vmul.f32 -1.442695, %v846_v46  ;;  %v849_v53 = vadd.f32 %v1556_v11, %v848_v51 }
 0x2b6   : > { %1382 = vrcp.f32 %v925_v48  ;;  %v1165_v54 = vmul.f32 -1.442695, %v857_v50 }
 0x2b7   : > { %1384 = vpow2.f32 %v1164_v49  ;;  %v1163_v55 = vmul.f32 -1.442695, %v849_v53 }
 0x2b8   : > { %v1369_v56 = vpop.eup %1368  ;;  %1386 = vpow2.f32 %v1162_v52 }
 0x2b9   : > { %v1371_v57 = vpop.eup %1370  ;;  %v930_v58 = vadd.f32 1.0, %v1369_v56  ;;  %1388 = vpow2.f32 %v1165_v54  ;;  %v1325_v59 = vpop.f32.mrb[28].mxu0 }
 0x2ba   : > { %v1373_v60 = vpop.eup %1372  ;;  %v928_v61 = vadd.f32 1.0, %v1371_v57  ;;  %1390 = vpow2.f32 %v1163_v55  ;;  %v870_v62 = vadd.f32 %v1325_v59, %v1556_v11  ;;  %v861_v63 = vpop.f32.mrb[29].mxu0 }
 0x2bb   : > { %v1375_v0 = vpop.eup %1374  ;;  %1392 = vrcp.f32 %v930_v58  ;;  %v931_v1 = vadd.f32 1.0, %v1373_v60  ;;  %v862_v2 = vadd.f32 %v1556_v11, %v861_v63  ;;  %v1326_v3 = vpop.f32.mrb[30].mxu0 }
 0x2bc   : > { %1394 = vrcp.f32 %v928_v61  ;;  %v929_v4 = vadd.f32 1.0, %v1375_v0  ;;  %v1168_v5 = vmul.f32 -1.442695, %v870_v62  ;;  %v873_v6 = vadd.f32 %v1326_v3, %v1556_v11  ;;  %v864_v7 = vpop.f32.mrb[31].mxu0 }
 0x2bd   : > { %v1377_v8 = vpop.eup %1376  ;;  %1396 = vrcp.f32 %v931_v1  ;;  %v1166_v9 = vmul.f32 -1.442695, %v862_v2  ;;  %v865_v10 = vadd.f32 %v1556_v11, %v864_v7 }
 0x2be   : > { %v1379_v12 = vpop.eup %1378  ;;  %v1190_v13 = vpack.c.bf16 %v1377_v8, %v1377_v8  ;;  %1398 = vrcp.f32 %v929_v4  ;;  %v1169_v14 = vmul.f32 -1.442695, %v873_v6 }
 0x2bf   : > { %v1381_v15 = vpop.eup %1380  ;;  %v1188_v16 = vpack.c.bf16 %v1379_v12, %v1379_v12  ;;  %1400 = vpow2.f32 %v1168_v5  ;;  %v1167_v17 = vmul.f32 -1.442695, %v865_v10 }
 0x2c0   : > { %v1383_v18 = vpop.eup %1382  ;;  %1039 = vst.msk [vmem:[%s1578_s9 + $0x8] sm:$0xf] %vm1036_vm1, %v1190_v13  ;;  %v1191_v19 = vpack.c.bf16 %v1381_v15, %v1381_v15  ;;  %1402 = vpow2.f32 %v1166_v9 }
 0x2c1   : > { %v1385_v20 = vpop.eup %1384  ;;  %1037 = vst.msk [vmem:[%s1578_s9] sm:$0xf] %vm1036_vm1, %v1188_v16  ;;  %v1189_v21 = vpack.c.bf16 %v1383_v18, %v1383_v18  ;;  %1404 = vpow2.f32 %v1169_v14 }
 0x2c2   : > { %v1387_v11 = vpop.eup %1386  ;;  %1040 = vst.msk [vmem:[%s1578_s9 + $0xc] sm:$0xf] %vm1036_vm1, %v1191_v19  ;;  %v934_v22 = vadd.f32 1.0, %v1385_v20  ;;  %1406 = vpow2.f32 %v1167_v17 }
 0x2c3   : > { %v1389_v23 = vpop.eup %1388  ;;  %1038 = vst.msk [vmem:[%s1578_s9 + $0x4] sm:$0xf] %vm1036_vm1, %v1189_v21  ;;  %v932_v24 = vadd.f32 1.0, %v1387_v11 }
 0x2c4   : > { %v1391_v25 = vpop.eup %1390  ;;  %1408 = vrcp.f32 %v934_v22  ;;  %v935_v26 = vadd.f32 1.0, %v1389_v23 }
 0x2c5   : > { %v1393_v27 = vpop.eup %1392  ;;  %1410 = vrcp.f32 %v932_v24  ;;  %v933_v28 = vadd.f32 1.0, %v1391_v25 }
 0x2c6   : > { %v1395_v29 = vpop.eup %1394  ;;  %v1194_v30 = vpack.c.bf16 %v1393_v27, %v1393_v27  ;;  %1412 = vrcp.f32 %v935_v26 }
 0x2c7   : > { %v1397_v31 = vpop.eup %1396  ;;  %v1192_v32 = vpack.c.bf16 %v1395_v29, %v1395_v29  ;;  %1414 = vrcp.f32 %v933_v28 }
 0x2c8   : > { %v1399_v33 = vpop.eup %1398  ;;  %1043 = vst.msk [vmem:[%s1578_s9 + $0x18] sm:$0xf] %vm1036_vm1, %v1194_v30  ;;  %v1195_v34 = vpack.c.bf16 %v1397_v31, %v1397_v31 }
 0x2c9   : > { %v1401_v35 = vpop.eup %1400  ;;  %1041 = vst.msk [vmem:[%s1578_s9 + $0x10] sm:$0xf] %vm1036_vm1, %v1192_v32  ;;  %v1193_v36 = vpack.c.bf16 %v1399_v33, %v1399_v33 }
 0x2ca   : > { %v1403_v37 = vpop.eup %1402  ;;  %1044 = vst.msk [vmem:[%s1578_s9 + $0x1c] sm:$0xf] %vm1036_vm1, %v1195_v34  ;;  %v938_v38 = vadd.f32 1.0, %v1401_v35 }
 0x2cb   : > { %v1405_v39 = vpop.eup %1404  ;;  %1042 = vst.msk [vmem:[%s1578_s9 + $0x14] sm:$0xf] %vm1036_vm1, %v1193_v36  ;;  %v936_v40 = vadd.f32 1.0, %v1403_v37 }
 0x2cc   : > { %v1407_v41 = vpop.eup %1406  ;;  %1416 = vrcp.f32 %v938_v38  ;;  %v939_v42 = vadd.f32 1.0, %v1405_v39 }
 0x2cd   : > { %1418 = vrcp.f32 %v936_v40  ;;  %v937_v43 = vadd.f32 1.0, %v1407_v41 }
 0x2ce   : > { %v1409_v44 = vpop.eup %1408  ;;  %1420 = vrcp.f32 %v939_v42 }
 0x2cf   : > { %v1411_v45 = vpop.eup %1410  ;;  %v1198_v46 = vpack.c.bf16 %v1409_v44, %v1409_v44  ;;  %1422 = vrcp.f32 %v937_v43 }
 0x2d0   : > { %v1413_v47 = vpop.eup %1412  ;;  %v1196_v48 = vpack.c.bf16 %v1411_v45, %v1411_v45 }
 0x2d1   : > { %v1415_v49 = vpop.eup %1414  ;;  %1047 = vst.msk [vmem:[%s1578_s9 + $0x28] sm:$0xf] %vm1036_vm1, %v1198_v46  ;;  %v1199_v50 = vpack.c.bf16 %v1413_v47, %v1413_v47 }
 0x2d2   : > { %1045 = vst.msk [vmem:[%s1578_s9 + $0x20] sm:$0xf] %vm1036_vm1, %v1196_v48  ;;  %v1197_v51 = vpack.c.bf16 %v1415_v49, %v1415_v49 }
 0x2d3   : > { %1048 = vst.msk [vmem:[%s1578_s9 + $0x2c] sm:$0xf] %vm1036_vm1, %v1199_v50 }
 0x2d4   : > { %1046 = vst.msk [vmem:[%s1578_s9 + $0x24] sm:$0xf] %vm1036_vm1, %v1197_v51 }
 0x2d6   : > { %v1417_v52 = vpop.eup %1416 }
 0x2d7   : > { %v1419_v53 = vpop.eup %1418  ;;  %v1202_v54 = vpack.c.bf16 %v1417_v52, %v1417_v52 }
 0x2d8   : > { %v1421_v55 = vpop.eup %1420  ;;  %v1200_v56 = vpack.c.bf16 %v1419_v53, %v1419_v53 }
 0x2d9   : > { %v1423_v57 = vpop.eup %1422  ;;  %1051 = vst.msk [vmem:[%s1578_s9 + $0x38] sm:$0xf] %vm1036_vm1, %v1202_v54  ;;  %v1203_v58 = vpack.c.bf16 %v1421_v55, %v1421_v55 }
 0x2da   : > { %1049 = vst.msk [vmem:[%s1578_s9 + $0x30] sm:$0xf] %vm1036_vm1, %v1200_v56  ;;  %v1201_v59 = vpack.c.bf16 %v1423_v57, %v1423_v57 }
 0x2db   : > { %1052 = vst.msk [vmem:[%s1578_s9 + $0x3c] sm:$0xf] %vm1036_vm1, %v1203_v58 }
 0x2dc   : > { %1050 = vst.msk [vmem:[%s1578_s9 + $0x34] sm:$0xf] %vm1036_vm1, %v1201_v59 }
 0x2dd PF: > { %s17_s24 = sadd.s32 1, %s1430_s24  }
 0x2de   : > { %p14_p4 = scmp.ge.s32.totalorder %s17_s24, 4  }
 0x2e0   :  { %16 = sbr.rel (!%p14_p4) target bundleno = 1 (0x1), region = 78 }

// kernel: encode_process_decode.9
= control target key start
LH: loop header
LB: loop body
LE: loop exit
PB: predicated region body
PF: predicated region fallthrough
CT: control target
= control target key end

     0   :  { %s2345_s17 = smov 0   ;;  %s2591_s0 = inlined_call_operand.vmem [shape: bf16[256,64], index: 0, kind: input, shape index: {}]   ;;  %s2592_s1 = inlined_call_operand.vmem [shape: bf16[256,64], index: 1, kind: input, shape index: {}]   ;;  %s2593_s2 = inlined_call_operand.vmem [shape: bf16[256,64], index: 2, kind: input, shape index: {}]   ;;  %s2594_s3 = inlined_call_operand.vmem [shape: bf16[64,128], index: 3, kind: input, shape index: {}]   ;;  %s2595_s4 = inlined_call_operand.vmem [shape: bf16[64,128], index: 4, kind: input, shape index: {}]   ;;  %s2596_s5 = inlined_call_operand.vmem [shape: bf16[64,128], index: 5, kind: input, shape index: {}]   ;;  %s2597_s6 = inlined_call_operand.vmem [shape: f32[1,128], index: 6, kind: input, shape index: {}]   ;;  %s2598_s7 = inlined_call_operand.vmem [shape: bf16[128,128], index: 7, kind: input, shape index: {}]   ;;  %s2599_s8 = inlined_call_operand.vmem [shape: f32[1,128], index: 8, kind: input, shape index: {}]   ;;  %s2600_s9 = inlined_call_operand.vmem [shape: bf16[128,64], index: 9, kind: input, shape index: {}]   ;;  %s2601_s10 = inlined_call_operand.vmem [shape: f32[1,64], index: 10, kind: input, shape index: {}]   ;;  %s2602_s11 = inlined_call_operand.vmem [shape: bf16[256,64], index: 11, kind: output, shape index: {}]  }
   0x1 LB: > { %s1759_s18 = sadd.s32 4294967295, %s2283_s17   ;;  %p1763_p0 = scmp.ge.s32.totalorder %s2283_s17, 1  ;;  %s2283_s17 = sphi %s2345_s17, %s21_s17  }
   0x2   : > { %p360_p1 = scmp.lt.s32.totalorder %s2283_s17, 3 }
   0x4   : > { %p361_p2 = pnand %p1763_p0, %p360_p1 }
   0x5   : > { %v2161_v0 = vld [vmem:[%s2594_s3] sm:$0xff] (!%p361_p2)   ;;  %s1764_s21 = sshll.u32 (!%p361_p2), %s1759_s18, 4  ;;  %v2162_v1 = vld [vmem:[%s2594_s3 + $0x8] sm:$0xff] (!%p361_p2)   ;;  %v2163_v2 = vld [vmem:[%s2594_s3 + $0x10] sm:$0xff] (!%p361_p2)   ;;  %vm524_vm0 = vcmask (!%p361_p2), 523264   ;;  %vm1662_vm1 = vcmask (!%p361_p2), 519168  }
   0x6   : > { %364 = sbr.rel (%p361_p2) target bundleno = 801 (0x321), region = 64  ;;  %p411_p3 = scmp.lt.s32.totalorder (!%p361_p2), %s1764_s21, 31  ;;  %1969 = vmatprep.subr.bf16.mxu0 (!%p361_p2), %v2161_v0  ;;  %v2164_v4 = vld [vmem:[%s2594_s3 + $0x18] sm:$0xff] (!%p361_p2)   ;;  %v2167_v5 = vld [vmem:[%s2595_s4] sm:$0xff] (!%p361_p2)   ;;  %v2170_v8 = vld [vmem:[%s2595_s4 + $0x8] sm:$0xff] (!%p361_p2)  }
   0x7   : > { %1970 = vmatpush3.bf16.msra.mxu0 (!%p361_p2), %v2161_v0  ;;  %v2173_v9 = vld [vmem:[%s2595_s4 + $0x10] sm:$0xff] (!%p361_p2)   ;;  %v2176_v12 = vld [vmem:[%s2595_s4 + $0x18] sm:$0xff] (!%p361_p2)   ;;  %v2179_v13 = vld [vmem:[%s2596_s5] sm:$0xff] (!%p361_p2)  }
   0x8   : > { %1971 = vmatprep.subr.bf16.mxu0 (!%p361_p2), %v2162_v1  ;;  %v2197_v16 = vld [vmem:[%s2598_s7] sm:$0xff] (!%p361_p2)   ;;  %v2198_v17 = vld [vmem:[%s2598_s7 + $0x8] sm:$0xff] (!%p361_p2)   ;;  %v2199_v20 = vld [vmem:[%s2598_s7 + $0x10] sm:$0xff] (!%p361_p2)  }
   0x9   : > { %2041 = vmatprep.subr.bf16.mxu1 (!%p361_p2), %v2197_v16  ;;  %v2200_v21 = vld [vmem:[%s2598_s7 + $0x18] sm:$0xff] (!%p361_p2)   ;;  %v2182_v24 = vld [vmem:[%s2596_s5 + $0x8] sm:$0xff] (!%p361_p2)   ;;  %v2201_v25 = vld [vmem:[%s2598_s7 + $0x20] sm:$0xff] (!%p361_p2)  }
   0xa   : > { %2042 = vmatpush3.bf16.msra.mxu1 (!%p361_p2), %v2197_v16  ;;  %v2185_v26 = vld [vmem:[%s2596_s5 + $0x10] sm:$0xff] (!%p361_p2)   ;;  %v2202_v27 = vld [vmem:[%s2598_s7 + $0x28] sm:$0xff] (!%p361_p2)   ;;  %v2188_v30 = vld [vmem:[%s2596_s5 + $0x18] sm:$0xff] (!%p361_p2)  }
   0xb   : > { %1972 = vmatpush3.bf16.msra.mxu0 (!%p361_p2), %v2162_v1  ;;  %2043 = vmatprep.subr.bf16.mxu1 (!%p361_p2), %v2198_v17  ;;  %v2203_v42 = vld [vmem:[%s2598_s7 + $0x30] sm:$0xff] (!%p361_p2)   ;;  %v2204_v43 = vld [vmem:[%s2598_s7 + $0x38] sm:$0xff] (!%p361_p2)   ;;  %v2205_v44 = vld [vmem:[%s2600_s9] sm:$0xff] (!%p361_p2)  }
   0xc   : > { %1973 = vmatprep.subr.bf16.mxu0 (!%p361_p2), %v2163_v2  ;;  %v2487_v45 = vld [vmem:[%s2597_s6] ss:$0 sm:$0xff] (!%p361_p2)  ;;  %v2206_v63 = vld [vmem:[%s2600_s9 + $0x8] sm:$0xff] (!%p361_p2)  }
   0xd   : > { %s2604_s21 = smov (!%p411_p3, %s1764_s21), 31 }
   0xe   : > { %s2362_s26 = sshll.u32 %s2604_s21, 2  ;;  %2044 = vmatpush3.bf16.msra.mxu1 %v2198_v17 }
   0xf   : > { %s2368_s29 = scalar_lea.vmem %s2591_s0, %s2362_s26  ;;  %1974 = vmatpush3.bf16.msra.mxu0 %v2163_v2  ;;  %s2384_s18 = scalar_lea.vmem %s2592_s1, %s2362_s26  ;;  %2045 = vmatprep.subr.bf16.mxu1 %v2199_v20 }
  0x10   : > { %v2165_v3 = vld [vmem:[%s2368_s29] sm:$0xff]   ;;  %1975 = vmatprep.subr.bf16.mxu0 %v2164_v4  ;;  %v2166_v6 = vld [vmem:[%s2368_s29 + $0x8] sm:$0xff]   ;;  %v2168_v7 = vld [vmem:[%s2368_s29 + $0x10] sm:$0xff]   ;;  %s2405_s28 = scalar_lea.vmem %s2593_s2, %s2362_s26  ;;  %s2553_s27 = scalar_lea.vmem %s2602_s11, %s2362_s26 }
  0x11   : > { %1977 = vmatprep.mubr.msk.bf16.mxu0 %vm524_vm0, %v2165_v3  ;;  %v2169_v10 = vld [vmem:[%s2368_s29 + $0x18] sm:$0xff]   ;;  %v2171_v11 = vld [vmem:[%s2368_s29 + $0x20] sm:$0xff]   ;;  %v2172_v14 = vld [vmem:[%s2368_s29 + $0x28] sm:$0xff]  }
  0x12   : > { %v2174_v15 = vld [vmem:[%s2368_s29 + $0x30] sm:$0xff]   ;;  %v2175_v18 = vld [vmem:[%s2368_s29 + $0x38] sm:$0xff]   ;;  %v2177_v19 = vld [vmem:[%s2384_s18] sm:$0xff]   ;;  %2046 = vmatpush3.bf16.msra.mxu1 %v2199_v20 }
  0x13   : > { %1976 = vmatpush3.bf16.msra.mxu0 %v2164_v4  ;;  %v2178_v22 = vld [vmem:[%s2384_s18 + $0x8] sm:$0xff]   ;;  %v2180_v23 = vld [vmem:[%s2384_s18 + $0x10] sm:$0xff]   ;;  %2047 = vmatprep.subr.bf16.mxu1 %v2200_v21  ;;  %v2181_v28 = vld [vmem:[%s2384_s18 + $0x18] sm:$0xff]  }
  0x14   : > { %1993 = vmatprep.subr.bf16.mxu0 %v2167_v5  ;;  %v2183_v29 = vld [vmem:[%s2384_s18 + $0x20] sm:$0xff]   ;;  %v2184_v31 = vld [vmem:[%s2384_s18 + $0x28] sm:$0xff]   ;;  %v2186_v32 = vld [vmem:[%s2384_s18 + $0x30] sm:$0xff]  }
  0x15   : > { %v2187_v33 = vld [vmem:[%s2384_s18 + $0x38] sm:$0xff]   ;;  %v2189_v34 = vld [vmem:[%s2405_s28] sm:$0xff]   ;;  %v2190_v35 = vld [vmem:[%s2405_s28 + $0x8] sm:$0xff]  }
  0x16   : > { %1978 = vmatmul.mubr.msk.bf16.vlgmr.msra.gmra.mrb[0].mxu0 %vm524_vm0, %v2166_v6  ;;  %2048 = vmatpush3.bf16.msra.mxu1 %v2200_v21  ;;  %v2191_v36 = vld [vmem:[%s2405_s28 + $0x10] sm:$0xff]   ;;  %v2192_v37 = vld [vmem:[%s2405_s28 + $0x18] sm:$0xff]   ;;  %v2193_v38 = vld [vmem:[%s2405_s28 + $0x20] sm:$0xff]  }
  0x17   : > { %1994 = vmatpush3.bf16.msra.mxu0 %v2167_v5  ;;  %1981 = vmatprep.mubr.msk.bf16.mxu0 %vm524_vm0, %v2168_v7  ;;  %v2194_v39 = vld [vmem:[%s2405_s28 + $0x28] sm:$0xff]   ;;  %v2195_v40 = vld [vmem:[%s2405_s28 + $0x30] sm:$0xff]   ;;  %v2196_v41 = vld [vmem:[%s2405_s28 + $0x38] sm:$0xff]  }
  0x18   : > { %1995 = vmatprep.subr.bf16.mxu0 %v2170_v8  ;;  %2049 = vmatprep.subr.bf16.mxu1 %v2201_v25  ;;  %v2207_v7 = vld [vmem:[%s2600_s9 + $0x10] sm:$0xff]  }
  0x1a   : > { %2050 = vmatpush3.bf16.msra.mxu1 %v2201_v25 }
  0x1b   : > { %1996 = vmatpush3.bf16.msra.mxu0 %v2170_v8  ;;  %2051 = vmatprep.subr.bf16.mxu1 %v2202_v27 }
  0x1c   : > { %1997 = vmatprep.subr.bf16.mxu0 %v2173_v9 }
  0x1e   : > { %1982 = vmatmul.mubr.msk.bf16.gmra.mrb[4].mxu0 %vm524_vm0, %v2169_v10  ;;  %2052 = vmatpush3.bf16.msra.mxu1 %v2202_v27 }
  0x1f   : > { %1985 = vmatprep.mubr.msk.bf16.mxu0 %vm524_vm0, %v2171_v11  ;;  %1998 = vmatpush3.bf16.msra.mxu0 %v2173_v9 }
  0x20   : > { %1999 = vmatprep.subr.bf16.mxu0 %v2176_v12  ;;  %2053 = vmatprep.subr.bf16.mxu1 %v2203_v42 }
  0x22   : > { %2054 = vmatpush3.bf16.msra.mxu1 %v2203_v42 }
  0x23   : > { %2000 = vmatpush3.bf16.msra.mxu0 %v2176_v12  ;;  %2055 = vmatprep.subr.bf16.mxu1 %v2204_v43 }
  0x24   : > { %2017 = vmatprep.subr.bf16.mxu0 %v2179_v13 }
  0x26   : > { %1986 = vmatmul.mubr.msk.bf16.gmra.mrb[8].mxu0 %vm524_vm0, %v2172_v14  ;;  %2056 = vmatpush3.bf16.msra.mxu1 %v2204_v43  ;;  %v2211_v43 = vld [vmem:[%s2600_s9 + $0x30] sm:$0xff]  }
  0x27   : > { %1989 = vmatprep.mubr.msk.bf16.mxu0 %vm524_vm0, %v2174_v15  ;;  %2073 = vmatprep.subr.bf16.mxu1 %v2205_v44  ;;  %v2208_v15 = vld [vmem:[%s2600_s9 + $0x18] sm:$0xff]  }
  0x2e   : > { %1990 = vmatmul.mubr.msk.bf16.gmra.mrb[12].mxu0 %vm524_vm0, %v2175_v18 }
  0x2f   : > { %2001 = vmatprep.mubr.msk.bf16.mxu0 %vm524_vm0, %v2177_v19 }
  0x36   : > { %2002 = vmatmul.mubr.msk.bf16.vlgmr.msra.gmra.mrb[0].mxu0 %vm524_vm0, %v2178_v22 }
  0x37   : > { %2018 = vmatpush3.bf16.msra.mxu0 %v2179_v13  ;;  %2005 = vmatprep.mubr.msk.bf16.mxu0 %vm524_vm0, %v2180_v23  ;;  %v2209_v23 = vld [vmem:[%s2600_s9 + $0x20] sm:$0xff]  }
  0x38   : > { %2019 = vmatprep.subr.bf16.mxu0 %v2182_v24 }
  0x3b   : > { %2020 = vmatpush3.bf16.msra.mxu0 %v2182_v24 }
  0x3c   : > { %2021 = vmatprep.subr.bf16.mxu0 %v2185_v26 }
  0x3e   : > { %2006 = vmatmul.mubr.msk.bf16.gmra.mrb[4].mxu0 %vm524_vm0, %v2181_v28 }
  0x3f   : > { %2009 = vmatprep.mubr.msk.bf16.mxu0 %vm524_vm0, %v2183_v29  ;;  %2022 = vmatpush3.bf16.msra.mxu0 %v2185_v26 }
  0x40   : > { %2023 = vmatprep.subr.bf16.mxu0 %v2188_v30 }
  0x43   : > { %2024 = vmatpush3.bf16.msra.mxu0 %v2188_v30 }
  0x46   : > { %2010 = vmatmul.mubr.msk.bf16.gmra.mrb[8].mxu0 %vm524_vm0, %v2184_v31  ;;  %v2210_v31 = vld [vmem:[%s2600_s9 + $0x28] sm:$0xff]  }
  0x47   : > { %2013 = vmatprep.mubr.msk.bf16.mxu0 %vm524_vm0, %v2186_v32 }
  0x4e   : > { %2014 = vmatmul.mubr.msk.bf16.gmra.mrb[12].mxu0 %vm524_vm0, %v2187_v33 }
  0x4f   : > { %2025 = vmatprep.mubr.msk.bf16.mxu0 %vm524_vm0, %v2189_v34 }
  0x56   : > { %2026 = vmatmul.mubr.msk.bf16.vlgmr.msra.gmra.mrb[0].mxu0 %vm524_vm0, %v2190_v35 }
  0x57   : > { %2029 = vmatprep.mubr.msk.bf16.mxu0 %vm524_vm0, %v2191_v36 }
  0x5e   : > { %2030 = vmatmul.mubr.msk.bf16.gmra.mrb[4].mxu0 %vm524_vm0, %v2192_v37 }
  0x5f   : > { %2033 = vmatprep.mubr.msk.bf16.mxu0 %vm524_vm0, %v2193_v38 }
  0x66   : > { %2034 = vmatmul.mubr.msk.bf16.gmra.mrb[8].mxu0 %vm524_vm0, %v2194_v39 }
  0x67   : > { %2037 = vmatprep.mubr.msk.bf16.mxu0 %vm524_vm0, %v2195_v40 }
  0x6e   : > { %2038 = vmatmul.mubr.msk.bf16.gmra.mrb[12].mxu0 %vm524_vm0, %v2196_v41 }
 0x129   : > { %v2027_v46 = vpop.f32.mrb[0].mxu0 }
 0x12a   : > { %v2105_v47 = vadd.f32 %v2027_v46, %v2487_v45  ;;  %v1039_v48 = vpop.f32.mrb[1].mxu0 }
 0x12b   : > { %v2106_v49 = vadd.f32 %v2487_v45, %v1039_v48  ;;  %v2028_v50 = vpop.f32.mrb[2].mxu0 }
 0x12c   : > { %v2107_v51 = vadd.f32 %v2028_v50, %v2487_v45  ;;  %v1042_v52 = vpop.f32.mrb[3].mxu0  ;;  %v1120_v54 = vmax.f32 %v2105_v47, 0.0 }
 0x12d   : > { %v2108_v53 = vadd.f32 %v2487_v45, %v1042_v52  ;;  %v1118_v56 = vmax.f32 %v2106_v49, 0.0 }
 0x12e   : > { %v1121_v55 = vmax.f32 %v2107_v51, 0.0 }
 0x12f   : > { %v1119_v57 = vmax.f32 %v2108_v53, 0.0 }
 0x130   : > { %v1135_v58 = vpack.c.bf16 %v1121_v55, %v1120_v54 }
 0x131   : > { %v2031_v59 = vpop.f32.mrb[4].mxu0  ;;  %v1134_v60 = vpack.c.bf16 %v1119_v57, %v1118_v56 }
 0x132   : > { %v2109_v61 = vadd.f32 %v2031_v59, %v2487_v45  ;;  %v1055_v62 = vpop.f32.mrb[5].mxu0 }
 0x133   : > { %v2110_v0 = vadd.f32 %v2487_v45, %v1055_v62  ;;  %v2032_v1 = vpop.f32.mrb[6].mxu0  ;;  %2057 = vmatprep.mubr.bf16.mxu1 %v1134_v60 }
 0x134   : > { %v2111_v2 = vadd.f32 %v2032_v1, %v2487_v45  ;;  %v1058_v3 = vpop.f32.mrb[7].mxu0  ;;  %2058 = vmatmul.mubr.bf16.vlgmr.msra.gmra.mrb[0].mxu1 %v1135_v58  ;;  %v1124_v5 = vmax.f32 %v2109_v61, 0.0 }
 0x135   : > { %v2112_v4 = vadd.f32 %v2487_v45, %v1058_v3  ;;  %2074 = vmatpush3.bf16.msra.mxu1 %v2205_v44  ;;  %v1122_v8 = vmax.f32 %v2110_v0, 0.0  ;;  %v2212_v44 = vld [vmem:[%s2600_s9 + $0x38] sm:$0xff]  }
 0x136   : > { %v1125_v6 = vmax.f32 %v2111_v2, 0.0  ;;  %2075 = vmatprep.subr.bf16.mxu1 %v2206_v63 }
 0x137   : > { %v1123_v9 = vmax.f32 %v2112_v4, 0.0 }
 0x138   : > { %v1137_v10 = vpack.c.bf16 %v1125_v6, %v1124_v5 }
 0x139   : > { %v1136_v11 = vpack.c.bf16 %v1123_v9, %v1122_v8  ;;  %v2035_v12 = vpop.f32.mrb[8].mxu0  ;;  %2076 = vmatpush3.bf16.msra.mxu1 %v2206_v63 }
 0x13a   : > { %v2113_v13 = vadd.f32 %v2035_v12, %v2487_v45  ;;  %v1071_v14 = vpop.f32.mrb[9].mxu0  ;;  %2077 = vmatprep.subr.bf16.mxu1 %v2207_v7 }
 0x13b   : > { %v2114_v16 = vadd.f32 %v2487_v45, %v1071_v14  ;;  %v2036_v17 = vpop.f32.mrb[10].mxu0  ;;  %2061 = vmatprep.mubr.bf16.mxu1 %v1136_v11 }
 0x13c   : > { %v2115_v18 = vadd.f32 %v2036_v17, %v2487_v45  ;;  %v1074_v19 = vpop.f32.mrb[11].mxu0  ;;  %2062 = vmatmul.mubr.bf16.gmra.mrb[4].mxu1 %v1137_v10  ;;  %v1128_v21 = vmax.f32 %v2113_v13, 0.0 }
 0x13d   : > { %v2116_v20 = vadd.f32 %v2487_v45, %v1074_v19  ;;  %2078 = vmatpush3.bf16.msra.mxu1 %v2207_v7  ;;  %v1126_v24 = vmax.f32 %v2114_v16, 0.0 }
 0x13e   : > { %v1129_v22 = vmax.f32 %v2115_v18, 0.0  ;;  %2079 = vmatprep.subr.bf16.mxu1 %v2208_v15 }
 0x13f   : > { %v1127_v25 = vmax.f32 %v2116_v20, 0.0 }
 0x140   : > { %v1139_v26 = vpack.c.bf16 %v1129_v22, %v1128_v21 }
 0x141   : > { %v1138_v27 = vpack.c.bf16 %v1127_v25, %v1126_v24  ;;  %v2039_v28 = vpop.f32.mrb[12].mxu0  ;;  %2080 = vmatpush3.bf16.msra.mxu1 %v2208_v15 }
 0x142   : > { %v2117_v29 = vadd.f32 %v2039_v28, %v2487_v45  ;;  %v1087_v30 = vpop.f32.mrb[13].mxu0  ;;  %2081 = vmatprep.subr.bf16.mxu1 %v2209_v23 }
 0x143   : > { %v2118_v32 = vadd.f32 %v2487_v45, %v1087_v30  ;;  %v2040_v33 = vpop.f32.mrb[14].mxu0  ;;  %2065 = vmatprep.mubr.bf16.mxu1 %v1138_v27 }
 0x144   : > { %v2119_v34 = vadd.f32 %v2040_v33, %v2487_v45  ;;  %v1090_v35 = vpop.f32.mrb[15].mxu0  ;;  %2066 = vmatmul.mubr.bf16.gmra.mrb[8].mxu1 %v1139_v26  ;;  %v1132_v37 = vmax.f32 %v2117_v29, 0.0 }
 0x145   : > { %v2120_v36 = vadd.f32 %v2487_v45, %v1090_v35  ;;  %2082 = vmatpush3.bf16.msra.mxu1 %v2209_v23  ;;  %v1130_v39 = vmax.f32 %v2118_v32, 0.0  ;;  %v1833_v45 = vld [vmem:[%s2599_s8] ss:$0 sm:$0xff] }
 0x146   : > { %v1133_v38 = vmax.f32 %v2119_v34, 0.0  ;;  %2083 = vmatprep.subr.bf16.mxu1 %v2210_v31 }
 0x147   : > { %v1131_v40 = vmax.f32 %v2120_v36, 0.0 }
 0x148   : > { %v1141_v41 = vpack.c.bf16 %v1133_v38, %v1132_v37  ;;  %v2532_v38 = vld [vmem:[%s2601_s10] ss:$0 sm:$0xff] }
 0x149   : > { %v1140_v42 = vpack.c.bf16 %v1131_v40, %v1130_v39  ;;  %2084 = vmatpush3.bf16.msra.mxu1 %v2210_v31 }
 0x14a   : > { %2085 = vmatprep.subr.bf16.mxu1 %v2211_v43 }
 0x14b   : > { %2069 = vmatprep.mubr.bf16.mxu1 %v1140_v42 }
 0x14c   : > { %2070 = vmatmul.mubr.bf16.gmra.mrb[12].mxu1 %v1141_v41 }
 0x14d   : > { %2086 = vmatpush3.bf16.msra.mxu1 %v2211_v43 }
 0x14e   : > { %2087 = vmatprep.subr.bf16.mxu1 %v2212_v44 }
 0x151   : > { %2088 = vmatpush3.bf16.msra.mxu1 %v2212_v44 }
 0x207   : > { %v2059_v46 = vpop.f32.mrb[0].mxu1 }
 0x208   : > { %v1256_v47 = vadd.f32 %v2059_v46, %v1833_v45  ;;  %v1247_v48 = vpop.f32.mrb[1].mxu1 }
 0x209   : > { %v1248_v49 = vadd.f32 %v1833_v45, %v1247_v48  ;;  %v2060_v50 = vpop.f32.mrb[2].mxu1 }
 0x20a   : > { %v1259_v51 = vadd.f32 %v2060_v50, %v1833_v45  ;;  %v1250_v52 = vpop.f32.mrb[3].mxu1  ;;  %v1312_v54 = vmax.f32 %v1256_v47, 0.0 }
 0x20b   : > { %v1251_v53 = vadd.f32 %v1833_v45, %v1250_v52  ;;  %v1310_v56 = vmax.f32 %v1248_v49, 0.0 }
 0x20c   : > { %v1313_v55 = vmax.f32 %v1259_v51, 0.0 }
 0x20d   : > { %v1311_v57 = vmax.f32 %v1251_v53, 0.0 }
 0x20e   : > { %v1327_v58 = vpack.c.bf16 %v1313_v55, %v1312_v54 }
 0x20f   : > { %v1326_v59 = vpack.c.bf16 %v1311_v57, %v1310_v56  ;;  %v2063_v60 = vpop.f32.mrb[4].mxu1 }
 0x210   : > { %v1272_v61 = vadd.f32 %v2063_v60, %v1833_v45  ;;  %v1263_v62 = vpop.f32.mrb[5].mxu1 }
 0x211   : > { %v1264_v63 = vadd.f32 %v1833_v45, %v1263_v62  ;;  %v2064_v0 = vpop.f32.mrb[6].mxu1  ;;  %2089 = vmatprep.mubr.bf16.mxu1 %v1326_v59 }
 0x212   : > { %v1275_v1 = vadd.f32 %v2064_v0, %v1833_v45  ;;  %v1266_v2 = vpop.f32.mrb[7].mxu1  ;;  %2090 = vmatmul.mubr.bf16.vlgmr.msra.gmra.mrb[16].mxu1 %v1327_v58  ;;  %v1316_v4 = vmax.f32 %v1272_v61, 0.0 }
 0x213   : > { %v1267_v3 = vadd.f32 %v1833_v45, %v1266_v2  ;;  %v1314_v6 = vmax.f32 %v1264_v63, 0.0 }
 0x214   : > { %v1317_v5 = vmax.f32 %v1275_v1, 0.0 }
 0x215   : > { %v1315_v7 = vmax.f32 %v1267_v3, 0.0 }
 0x216   : > { %v1329_v8 = vpack.c.bf16 %v1317_v5, %v1316_v4 }
 0x217   : > { %v1328_v9 = vpack.c.bf16 %v1315_v7, %v1314_v6  ;;  %v2067_v10 = vpop.f32.mrb[8].mxu1 }
 0x218   : > { %v1288_v11 = vadd.f32 %v2067_v10, %v1833_v45  ;;  %v1279_v12 = vpop.f32.mrb[9].mxu1 }
 0x219   : > { %v1280_v13 = vadd.f32 %v1833_v45, %v1279_v12  ;;  %v2068_v14 = vpop.f32.mrb[10].mxu1  ;;  %2093 = vmatprep.mubr.bf16.mxu1 %v1328_v9 }
 0x21a   : > { %v1291_v15 = vadd.f32 %v2068_v14, %v1833_v45  ;;  %v1282_v16 = vpop.f32.mrb[11].mxu1  ;;  %2094 = vmatmul.mubr.bf16.gmra.mrb[20].mxu1 %v1329_v8  ;;  %v1320_v18 = vmax.f32 %v1288_v11, 0.0 }
 0x21b   : > { %v1283_v17 = vadd.f32 %v1833_v45, %v1282_v16  ;;  %v1318_v20 = vmax.f32 %v1280_v13, 0.0 }
 0x21c   : > { %v1321_v19 = vmax.f32 %v1291_v15, 0.0 }
 0x21d   : > { %v1319_v21 = vmax.f32 %v1283_v17, 0.0 }
 0x21e   : > { %v1331_v22 = vpack.c.bf16 %v1321_v19, %v1320_v18 }
 0x21f   : > { %v1330_v23 = vpack.c.bf16 %v1319_v21, %v1318_v20  ;;  %v2071_v24 = vpop.f32.mrb[12].mxu1 }
 0x220   : > { %v1304_v25 = vadd.f32 %v2071_v24, %v1833_v45  ;;  %v1295_v26 = vpop.f32.mrb[13].mxu1 }
 0x221   : > { %v1296_v27 = vadd.f32 %v1833_v45, %v1295_v26  ;;  %v2072_v28 = vpop.f32.mrb[14].mxu1  ;;  %2097 = vmatprep.mubr.bf16.mxu1 %v1330_v23 }
 0x222   : > { %v1307_v29 = vadd.f32 %v2072_v28, %v1833_v45  ;;  %v1298_v30 = vpop.f32.mrb[15].mxu1  ;;  %2098 = vmatmul.mubr.bf16.gmra.mrb[24].mxu1 %v1331_v22  ;;  %v1324_v32 = vmax.f32 %v1304_v25, 0.0 }
 0x223   : > { %v1299_v31 = vadd.f32 %v1833_v45, %v1298_v30  ;;  %v1322_v34 = vmax.f32 %v1296_v27, 0.0 }
 0x224   : > { %v1325_v33 = vmax.f32 %v1307_v29, 0.0 }
 0x225   : > { %v1323_v35 = vmax.f32 %v1299_v31, 0.0 }
 0x226   : > { %v1333_v36 = vpack.c.bf16 %v1325_v33, %v1324_v32 }
 0x227   : > { %v1332_v37 = vpack.c.bf16 %v1323_v35, %v1322_v34 }
 0x229   : > { %2101 = vmatprep.mubr.bf16.mxu1 %v1332_v37 }
 0x22a   : > { %2102 = vmatmul.mubr.bf16.gmra.mrb[28].mxu1 %v1333_v36 }
 0x2e5   : > { %v2091_v39 = vpop.f32.mrb[16].mxu1 }
 0x2e6   : > { %v1448_v40 = vadd.f32 %v2091_v39, %v2532_v38  ;;  %v1439_v41 = vpop.f32.mrb[17].mxu1 }
 0x2e7   : > { %v1440_v42 = vadd.f32 %v2532_v38, %v1439_v41  ;;  %v2092_v43 = vpop.f32.mrb[18].mxu1 }
 0x2e8   : > { %v1853_v44 = vmul.f32 -1.442695, %v1448_v40  ;;  %v1451_v45 = vadd.f32 %v2092_v43, %v2532_v38  ;;  %v1442_v46 = vpop.f32.mrb[19].mxu1 }
 0x2e9   : > { %v1851_v47 = vmul.f32 -1.442695, %v1440_v42  ;;  %v1443_v48 = vadd.f32 %v2532_v38, %v1442_v46 }
 0x2ea   : > { %2213 = vpow2.f32 %v1853_v44  ;;  %v1854_v49 = vmul.f32 -1.442695, %v1451_v45 }
 0x2eb   : > { %2215 = vpow2.f32 %v1851_v47  ;;  %v1852_v50 = vmul.f32 -1.442695, %v1443_v48 }
 0x2ec   : > { %2217 = vpow2.f32 %v1854_v49 }
 0x2ed   : > { %2219 = vpow2.f32 %v1852_v50  ;;  %v2095_v51 = vpop.f32.mrb[20].mxu1 }
 0x2ee   : > { %v1464_v52 = vadd.f32 %v2095_v51, %v2532_v38  ;;  %v1455_v53 = vpop.f32.mrb[21].mxu1 }
 0x2ef   : > { %v1456_v54 = vadd.f32 %v2532_v38, %v1455_v53  ;;  %v2096_v55 = vpop.f32.mrb[22].mxu1 }
 0x2f0   : > { %v1857_v56 = vmul.f32 -1.442695, %v1464_v52  ;;  %v1467_v57 = vadd.f32 %v2096_v55, %v2532_v38  ;;  %v1458_v58 = vpop.f32.mrb[23].mxu1 }
 0x2f1   : > { %v1855_v59 = vmul.f32 -1.442695, %v1456_v54  ;;  %v1459_v60 = vadd.f32 %v2532_v38, %v1458_v58 }
 0x2f2   : > { %2221 = vpow2.f32 %v1857_v56  ;;  %v1858_v61 = vmul.f32 -1.442695, %v1467_v57 }
 0x2f3   : > { %2223 = vpow2.f32 %v1855_v59  ;;  %v1856_v62 = vmul.f32 -1.442695, %v1459_v60 }
 0x2f4   : > { %v2214_v63 = vpop.eup %2213  ;;  %2225 = vpow2.f32 %v1858_v61 }
 0x2f5   : > { %v2216_v0 = vpop.eup %2215  ;;  %v1552_v1 = vadd.f32 1.0, %v2214_v63  ;;  %2227 = vpow2.f32 %v1856_v62  ;;  %v2099_v2 = vpop.f32.mrb[24].mxu1 }
 0x2f6   : > { %v2218_v3 = vpop.eup %2217  ;;  %v1550_v4 = vadd.f32 1.0, %v2216_v0  ;;  %v1480_v5 = vadd.f32 %v2099_v2, %v2532_v38  ;;  %v1471_v6 = vpop.f32.mrb[25].mxu1 }
 0x2f7   : > { %v2220_v7 = vpop.eup %2219  ;;  %2229 = vrcp.f32 %v1552_v1  ;;  %v1553_v8 = vadd.f32 1.0, %v2218_v3  ;;  %v1472_v9 = vadd.f32 %v2532_v38, %v1471_v6  ;;  %v2100_v10 = vpop.f32.mrb[26].mxu1 }
 0x2f8   : > { %2231 = vrcp.f32 %v1550_v4  ;;  %v1551_v11 = vadd.f32 1.0, %v2220_v7  ;;  %v1861_v12 = vmul.f32 -1.442695, %v1480_v5  ;;  %v1483_v13 = vadd.f32 %v2100_v10, %v2532_v38  ;;  %v1474_v14 = vpop.f32.mrb[27].mxu1 }
 0x2f9   : > { %2233 = vrcp.f32 %v1553_v8  ;;  %v1859_v15 = vmul.f32 -1.442695, %v1472_v9  ;;  %v1475_v16 = vadd.f32 %v2532_v38, %v1474_v14 }
 0x2fa   : > { %2235 = vrcp.f32 %v1551_v11  ;;  %v1862_v17 = vmul.f32 -1.442695, %v1483_v13 }
 0x2fb   : > { %2237 = vpow2.f32 %v1861_v12  ;;  %v1860_v18 = vmul.f32 -1.442695, %v1475_v16 }
 0x2fc   : > { %v2222_v19 = vpop.eup %2221  ;;  %2239 = vpow2.f32 %v1859_v15 }
 0x2fd   : > { %v2224_v20 = vpop.eup %2223  ;;  %v1556_v21 = vadd.f32 1.0, %v2222_v19  ;;  %2241 = vpow2.f32 %v1862_v17  ;;  %v2103_v22 = vpop.f32.mrb[28].mxu1 }
 0x2fe   : > { %v2226_v23 = vpop.eup %2225  ;;  %v1554_v24 = vadd.f32 1.0, %v2224_v20  ;;  %2243 = vpow2.f32 %v1860_v18  ;;  %v1496_v25 = vadd.f32 %v2103_v22, %v2532_v38  ;;  %v1487_v26 = vpop.f32.mrb[29].mxu1 }
 0x2ff   : > { %v2228_v27 = vpop.eup %2227  ;;  %2245 = vrcp.f32 %v1556_v21  ;;  %v1557_v28 = vadd.f32 1.0, %v2226_v23  ;;  %v1488_v29 = vadd.f32 %v2532_v38, %v1487_v26  ;;  %v2104_v30 = vpop.f32.mrb[30].mxu1 }
 0x300   : > { %2247 = vrcp.f32 %v1554_v24  ;;  %v1555_v31 = vadd.f32 1.0, %v2228_v27  ;;  %v1865_v32 = vmul.f32 -1.442695, %v1496_v25  ;;  %v1499_v33 = vadd.f32 %v2104_v30, %v2532_v38  ;;  %v1490_v34 = vpop.f32.mrb[31].mxu1 }
 0x301   : > { %v2230_v35 = vpop.eup %2229  ;;  %2249 = vrcp.f32 %v1557_v28  ;;  %v1863_v36 = vmul.f32 -1.442695, %v1488_v29  ;;  %v1491_v37 = vadd.f32 %v2532_v38, %v1490_v34 }
 0x302   : > { %v2232_v39 = vpop.eup %2231  ;;  %v1887_v40 = vpack.c.bf16 %v2230_v35, %v2230_v35  ;;  %2251 = vrcp.f32 %v1555_v31  ;;  %v1866_v41 = vmul.f32 -1.442695, %v1499_v33 }
 0x303   : > { %v2234_v42 = vpop.eup %2233  ;;  %v1885_v43 = vpack.c.bf16 %v2232_v39, %v2232_v39  ;;  %2253 = vpow2.f32 %v1865_v32  ;;  %v1864_v44 = vmul.f32 -1.442695, %v1491_v37 }
 0x304   : > { %v2236_v45 = vpop.eup %2235  ;;  %1665 = vst.msk [vmem:[%s2553_s27 + $0x8] sm:$0xf] %vm1662_vm1, %v1887_v40  ;;  %v1888_v46 = vpack.c.bf16 %v2234_v42, %v2234_v42  ;;  %2255 = vpow2.f32 %v1863_v36 }
 0x305   : > { %v2238_v47 = vpop.eup %2237  ;;  %1663 = vst.msk [vmem:[%s2553_s27] sm:$0xf] %vm1662_vm1, %v1885_v43  ;;  %v1886_v48 = vpack.c.bf16 %v2236_v45, %v2236_v45  ;;  %2257 = vpow2.f32 %v1866_v41 }
 0x306   : > { %v2240_v38 = vpop.eup %2239  ;;  %1666 = vst.msk [vmem:[%s2553_s27 + $0xc] sm:$0xf] %vm1662_vm1, %v1888_v46  ;;  %v1560_v49 = vadd.f32 1.0, %v2238_v47  ;;  %2259 = vpow2.f32 %v1864_v44 }
 0x307   : > { %v2242_v50 = vpop.eup %2241  ;;  %1664 = vst.msk [vmem:[%s2553_s27 + $0x4] sm:$0xf] %vm1662_vm1, %v1886_v48  ;;  %v1558_v51 = vadd.f32 1.0, %v2240_v38 }
 0x308   : > { %v2244_v52 = vpop.eup %2243  ;;  %2261 = vrcp.f32 %v1560_v49  ;;  %v1561_v53 = vadd.f32 1.0, %v2242_v50 }
 0x309   : > { %v2246_v54 = vpop.eup %2245  ;;  %2263 = vrcp.f32 %v1558_v51  ;;  %v1559_v55 = vadd.f32 1.0, %v2244_v52 }
 0x30a   : > { %v2248_v56 = vpop.eup %2247  ;;  %v1891_v57 = vpack.c.bf16 %v2246_v54, %v2246_v54  ;;  %2265 = vrcp.f32 %v1561_v53 }
 0x30b   : > { %v2250_v58 = vpop.eup %2249  ;;  %v1889_v59 = vpack.c.bf16 %v2248_v56, %v2248_v56  ;;  %2267 = vrcp.f32 %v1559_v55 }
 0x30c   : > { %v2252_v60 = vpop.eup %2251  ;;  %1669 = vst.msk [vmem:[%s2553_s27 + $0x18] sm:$0xf] %vm1662_vm1, %v1891_v57  ;;  %v1892_v61 = vpack.c.bf16 %v2250_v58, %v2250_v58 }
 0x30d   : > { %v2254_v62 = vpop.eup %2253  ;;  %1667 = vst.msk [vmem:[%s2553_s27 + $0x10] sm:$0xf] %vm1662_vm1, %v1889_v59  ;;  %v1890_v63 = vpack.c.bf16 %v2252_v60, %v2252_v60 }
 0x30e   : > { %v2256_v0 = vpop.eup %2255  ;;  %1670 = vst.msk [vmem:[%s2553_s27 + $0x1c] sm:$0xf] %vm1662_vm1, %v1892_v61  ;;  %v1564_v1 = vadd.f32 1.0, %v2254_v62 }
 0x30f   : > { %v2258_v2 = vpop.eup %2257  ;;  %1668 = vst.msk [vmem:[%s2553_s27 + $0x14] sm:$0xf] %vm1662_vm1, %v1890_v63  ;;  %v1562_v3 = vadd.f32 1.0, %v2256_v0 }
 0x310   : > { %v2260_v4 = vpop.eup %2259  ;;  %2269 = vrcp.f32 %v1564_v1  ;;  %v1565_v5 = vadd.f32 1.0, %v2258_v2 }
 0x311   : > { %2271 = vrcp.f32 %v1562_v3  ;;  %v1563_v6 = vadd.f32 1.0, %v2260_v4 }
 0x312   : > { %v2262_v7 = vpop.eup %2261  ;;  %2273 = vrcp.f32 %v1565_v5 }
 0x313   : > { %v2264_v8 = vpop.eup %2263  ;;  %v1895_v9 = vpack.c.bf16 %v2262_v7, %v2262_v7  ;;  %2275 = vrcp.f32 %v1563_v6 }
 0x314   : > { %v2266_v10 = vpop.eup %2265  ;;  %v1893_v11 = vpack.c.bf16 %v2264_v8, %v2264_v8 }
 0x315   : > { %v2268_v12 = vpop.eup %2267  ;;  %1673 = vst.msk [vmem:[%s2553_s27 + $0x28] sm:$0xf] %vm1662_vm1, %v1895_v9  ;;  %v1896_v13 = vpack.c.bf16 %v2266_v10, %v2266_v10 }
 0x316   : > { %1671 = vst.msk [vmem:[%s2553_s27 + $0x20] sm:$0xf] %vm1662_vm1, %v1893_v11  ;;  %v1894_v14 = vpack.c.bf16 %v2268_v12, %v2268_v12 }
 0x317   : > { %1674 = vst.msk [vmem:[%s2553_s27 + $0x2c] sm:$0xf] %vm1662_vm1, %v1896_v13 }
 0x318   : > { %1672 = vst.msk [vmem:[%s2553_s27 + $0x24] sm:$0xf] %vm1662_vm1, %v1894_v14 }
 0x31a   : > { %v2270_v15 = vpop.eup %2269 }
 0x31b   : > { %v2272_v16 = vpop.eup %2271  ;;  %v1899_v17 = vpack.c.bf16 %v2270_v15, %v2270_v15 }
 0x31c   : > { %v2274_v18 = vpop.eup %2273  ;;  %v1897_v19 = vpack.c.bf16 %v2272_v16, %v2272_v16 }
 0x31d   : > { %v2276_v20 = vpop.eup %2275  ;;  %1677 = vst.msk [vmem:[%s2553_s27 + $0x38] sm:$0xf] %vm1662_vm1, %v1899_v17  ;;  %v1900_v21 = vpack.c.bf16 %v2274_v18, %v2274_v18 }
 0x31e   : > { %1675 = vst.msk [vmem:[%s2553_s27 + $0x30] sm:$0xf] %vm1662_vm1, %v1897_v19  ;;  %v1898_v22 = vpack.c.bf16 %v2276_v20, %v2276_v20 }
 0x31f   : > { %1678 = vst.msk [vmem:[%s2553_s27 + $0x3c] sm:$0xf] %vm1662_vm1, %v1900_v21 }
 0x320   : > { %1676 = vst.msk [vmem:[%s2553_s27 + $0x34] sm:$0xf] %vm1662_vm1, %v1898_v22 }
 0x321 PF: > { %s21_s17 = sadd.s32 1, %s2283_s17  }
 0x322   : > { %p18_p4 = scmp.ge.s32.totalorder %s21_s17, 4  }
 0x324   :  { %20 = sbr.rel (!%p18_p4) target bundleno = 1 (0x1), region = 100 }

// kernel: encode_process_decode.10
= control target key start
LH: loop header
LB: loop body
LE: loop exit
PB: predicated region body
PF: predicated region fallthrough
CT: control target
= control target key end

     0   :  { %s2758_s29 = smov 0   ;;  %s2760_s30 = smov 0   ;;  %s3171_s0 = inlined_call_operand.<no memory space> [shape: s32[1], index: 0, kind: input, shape index: {}]   ;;  %s3172_s1 = inlined_call_operand.<no memory space> [shape: s32[1], index: 1, kind: input, shape index: {}]   ;;  %s3173_s2 = inlined_call_operand.vmem [shape: s32[1,256], index: 2, kind: input, shape index: {}]   ;;  %s3174_s3 = inlined_call_operand.vmem [shape: f32[128,1], index: 3, kind: input, shape index: {}]   ;;  %s3175_s4 = inlined_call_operand.vmem [shape: bf16[256,64], index: 4, kind: input, shape index: {}]   ;;  %s3176_s5 = inlined_call_operand.vmem [shape: bf16[128,64], index: 5, kind: input, shape index: {}]   ;;  %s3177_s6 = inlined_call_operand.vmem [shape: bf16[64,128], index: 6, kind: input, shape index: {}]   ;;  %s3178_s7 = inlined_call_operand.vmem [shape: bf16[64,128], index: 7, kind: input, shape index: {}]   ;;  %s3179_s8 = inlined_call_operand.vmem [shape: f32[1,128], index: 8, kind: input, shape index: {}]   ;;  %s3180_s9 = inlined_call_operand.vmem [shape: bf16[128,128], index: 9, kind: input, shape index: {}]   ;;  %s3181_s10 = inlined_call_operand.vmem [shape: f32[1,128], index: 10, kind: input, shape index: {}]   ;;  %s3182_s11 = inlined_call_operand.vmem [shape: bf16[128,64], index: 11, kind: input, shape index: {}]   ;;  %s3183_s12 = inlined_call_operand.vmem [shape: f32[1,64], index: 12, kind: input, shape index: {}]   ;;  %s3184_s13 = inlined_call_operand.vmem [shape: bf16[128,64], index: 13, kind: output, shape index: {}]  }
   0x1   :  { %18 = sst [smem:[#allocation4]] %s3171_s0  ;;  %s2762_s14 = smov 0  }
   0x2   :  { %19 = sst [smem:[#allocation5]] %s3172_s1 }
   0x3 LB: > { %s34_s0 = sadd.s32 1, %s2673_s30  ;;  %p2106_p0 = scmp.ge.s32.totalorder %s2677_s14, 1  ;;  %s2677_s14 = sphi %s2762_s14, %s25_s14   ;;  %s2673_s30 = sphi %s2760_s30, %s3186_s30   ;;  %s2669_s29 = sphi %s2758_s29, %s3185_s29  }
   0x4   : > { %p35_p1 = scmp.ge.s32.totalorder %s34_s0, 2  ;;  %p448_p2 = scmp.lt.s32.totalorder %s2677_s14, 3 }
   0x6   : > { %s3188_s0 = smov (%p35_p1, %s34_s0), 0  ;;  %p449_p3 = pnand %p2106_p0, %p448_p2 }
   0x7   : > { %s518_s1 = sld [smem:[#allocation5]] (!%p449_p3)  ;;  %p2111_p8 = scmp.ne.s32.totalorder (!%p449_p3), %s2669_s29, 0 }
   0x8   : > { %452 = sbr.rel (%p449_p3) target bundleno = 1181 (0x49d), region = 64  ;;  %s517_s16 = sld [smem:[#allocation4]] (!%p449_p3) }
   0xd   : > { %s2107_s15 = sadd.s32 (!%p449_p3), 4294967295, %s518_s1 }
   0xe   : > { %p520_p4 = scmp.gt.s32.totalorder (!%p449_p3), %s2107_s15, 0 }
   0xf   : > { %vm581_vm0 = vcmask (!%p2111_p8), 523264   ;;  %v2679_v0 = vmov (!%p2111_p8), 0.0  }
  0x10   : > { %s3190_s15 = smov (!%p520_p4, %s2107_s15), 0  ;;  %582 = vst.msk [vmem:[#allocation2] sm:$0xff] (!%p2111_p8), %vm581_vm0, %v2679_v0  ;;  %583 = vst.msk [vmem:[#allocation2 + $0x8] sm:$0xff] (!%p2111_p8), %vm581_vm0, %v2679_v0 }
  0x11   : > { %p522_p5 = scmp.lt.s32.totalorder %s2669_s29, %s3190_s15  ;;  %584 = vst.msk [vmem:[#allocation2 + $0x10] sm:$0xff] (!%p2111_p8), %vm581_vm0, %v2679_v0  ;;  %585 = vst.msk [vmem:[#allocation2 + $0x18] sm:$0xff] (!%p2111_p8), %vm581_vm0, %v2679_v0 }
  0x12   : > { %586 = vst.msk [vmem:[#allocation2 + $0x20] sm:$0xff] (!%p2111_p8), %vm581_vm0, %v2679_v0  ;;  %587 = vst.msk [vmem:[#allocation2 + $0x28] sm:$0xff] (!%p2111_p8), %vm581_vm0, %v2679_v0 }
  0x13   : > { %s523_s17 = scalar_select %p522_p5, %s2669_s29, %s3190_s15 }
  0x14   : > { %588 = vst.msk [vmem:[#allocation2 + $0x30] sm:$0xff] (!%p2111_p8), %vm581_vm0, %v2679_v0  ;;  %589 = vst.msk [vmem:[#allocation2 + $0x38] sm:$0xff] (!%p2111_p8), %vm581_vm0, %v2679_v0 }
  0x15   : > { %s524_s18 = sadd.s32 %s523_s17, %s517_s16  ;;  %580 = sbr.rel (%p2111_p8) target bundleno = 28 (0x1c), region = 68  ;;  %590 = vst.msk [vmem:[#allocation2 + $0x40] sm:$0xff] (!%p2111_p8), %vm581_vm0, %v2679_v0  ;;  %591 = vst.msk [vmem:[#allocation2 + $0x48] sm:$0xff] (!%p2111_p8), %vm581_vm0, %v2679_v0 }
  0x16   : > { %p525_p6 = scmp.lt.s32.totalorder %s524_s18, 1  ;;  %s2109_s19 = sshll.u32 %s524_s18, 4  ;;  %592 = vst.msk [vmem:[#allocation2 + $0x50] sm:$0xff] (!%p2111_p8), %vm581_vm0, %v2679_v0  ;;  %593 = vst.msk [vmem:[#allocation2 + $0x58] sm:$0xff] (!%p2111_p8), %vm581_vm0, %v2679_v0 }
  0x17   : > { %p551_p7 = scmp.lt.s32.totalorder %s2109_s19, 31  ;;  %594 = vst.msk [vmem:[#allocation2 + $0x60] sm:$0xff] (!%p2111_p8), %vm581_vm0, %v2679_v0  ;;  %595 = vst.msk [vmem:[#allocation2 + $0x68] sm:$0xff] (!%p2111_p8), %vm581_vm0, %v2679_v0 }
  0x18   : > { %s3192_s18 = smov (!%p525_p6, %s524_s18), 1  ;;  %596 = vst.msk [vmem:[#allocation2 + $0x70] sm:$0xff] (!%p2111_p8), %vm581_vm0, %v2679_v0  ;;  %597 = vst.msk [vmem:[#allocation2 + $0x78] sm:$0xff] (!%p2111_p8), %vm581_vm0, %v2679_v0 }
  0x19   : > { %s3194_s19 = smov (!%p551_p7, %s2109_s19), 31  ;;  %s527_s22 = scalar_lea.vmem %s3173_s2, %s3192_s18 }
  0x1a   : > { %s2110_s23 = sshll.u32 %s3194_s19, 2 }
  0x1b   : > { %s2789_s26 = scalar_lea.vmem %s3175_s4, %s2110_s23 }
  0x1c PF: > { %s598_s27 = sld [smem:[#allocation5]] }
  0x22   : > { %p2112_p9 = scmp.ge.s32.totalorder %s2669_s29, %s598_s27 }
  0x23   : > { %v2549_v1 = vld [vmem:[%s2789_s26] sm:$0xff] (!%p2112_p9)   ;;  %v604_v2 = vlaneseq (!%p2112_p9)  ;;  %v2550_v3 = vld [vmem:[%s2789_s26 + $0x8] sm:$0xff] (!%p2112_p9)   ;;  %v2551_v5 = vld [vmem:[%s2789_s26 + $0x10] sm:$0xff] (!%p2112_p9)   ;;  %v2680_v12 = vmov (!%p2112_p9), 1.0|1.0  }
  0x24   : > { %602 = sbr.rel (%p2112_p9) target bundleno = 294 (0x126), region = 72  ;;  %2330 = vmatprep.subr.bf16.mxu0 (!%p2112_p9), %v2549_v1  ;;  %2474 = vmatprep.subr.bf16.mxu1 (!%p2112_p9), %v2549_v1  ;;  %v2552_v9 = vld [vmem:[%s2789_s26 + $0x18] sm:$0xff] (!%p2112_p9)   ;;  %v2823_v10 = vld [vmem:[%s527_s22] ss:$0 sm:$0xff] (!%p2112_p9)  ;;  %v2554_v13 = vld [vmem:[%s2789_s26 + $0x28] sm:$0xff] (!%p2112_p9)  }
  0x25   : > { %v2811_v4 = vshrl.u32 (!%p2112_p9), %v604_v2, 7  ;;  %2331 = vmatpush3.bf16.msra.mxu0 (!%p2112_p9), %v2549_v1  ;;  %2482 = vmatpush3.bf16.msra.mxu1 (!%p2112_p9), %v2549_v1  ;;  %v2553_v11 = vld [vmem:[%s2789_s26 + $0x20] sm:$0xff] (!%p2112_p9)   ;;  %v2555_v14 = vld [vmem:[%s2789_s26 + $0x30] sm:$0xff] (!%p2112_p9)   ;;  %v2556_v19 = vld [vmem:[%s2789_s26 + $0x38] sm:$0xff] (!%p2112_p9)  }
  0x26   : > { %2332 = vmatprep.subr.bf16.mxu0 (!%p2112_p9), %v2550_v3  ;;  %2475 = vmatprep.subr.bf16.mxu1 (!%p2112_p9), %v2550_v3  ;;  %v701_v28 = vld [vmem:[#allocation2 + $0x10] sm:$0xff] (!%p2112_p9)  ;;  %v699_v30 = vld [vmem:[#allocation2] sm:$0xff] (!%p2112_p9)  ;;  %v702_v34 = vld [vmem:[#allocation2 + $0x18] sm:$0xff] (!%p2112_p9) }
  0x27   : > { %v606_v6 = vadd.s32 (!%p2112_p9), 8, %v2811_v4  ;;  %v613_v7 = vadd.s32 (!%p2112_p9), 64, %v2811_v4  ;;  %v614_v8 = vadd.s32 (!%p2112_p9), 72, %v2811_v4  ;;  %vm643_vm1 = vcmp.eq.s32.totalorder (!%p2112_p9), %v2811_v4, %v2823_v10  ;;  %v709_v29 = vld [vmem:[#allocation2 + $0x50] sm:$0xff] (!%p2112_p9)  ;;  %v707_v31 = vld [vmem:[#allocation2 + $0x40] sm:$0xff] (!%p2112_p9)  ;;  %v710_v35 = vld [vmem:[#allocation2 + $0x58] sm:$0xff] (!%p2112_p9) }
  0x28   : > { %v607_v15 = vadd.s32 (!%p2112_p9), 16, %v2811_v4  ;;  %v608_v16 = vadd.s32 (!%p2112_p9), 24, %v2811_v4  ;;  %v615_v17 = vadd.s32 (!%p2112_p9), 80, %v2811_v4  ;;  %v616_v18 = vadd.s32 (!%p2112_p9), 88, %v2811_v4  ;;  %v700_v40 = vld [vmem:[#allocation2 + $0x8] sm:$0xff] (!%p2112_p9)  ;;  %v705_v52 = vld [vmem:[#allocation2 + $0x30] sm:$0xff] (!%p2112_p9) }
  0x29   : > { %2333 = vmatpush3.bf16.msra.mxu0 (!%p2112_p9), %v2550_v3  ;;  %2483 = vmatpush3.bf16.msra.mxu1 (!%p2112_p9), %v2550_v3  ;;  %vm644_vm2 = vcmp.eq.s32.totalorder (!%p2112_p9), %v606_v6, %v2823_v10  ;;  %vm651_vm3 = vcmp.eq.s32.totalorder (!%p2112_p9), %v613_v7, %v2823_v10  ;;  %vm652_vm4 = vcmp.eq.s32.totalorder (!%p2112_p9), %v614_v8, %v2823_v10  ;;  %v609_v20 = vadd.s32 (!%p2112_p9), 32, %v2811_v4  ;;  %v708_v41 = vld [vmem:[#allocation2 + $0x48] sm:$0xff] (!%p2112_p9)  ;;  %v713_v53 = vld [vmem:[#allocation2 + $0x70] sm:$0xff] (!%p2112_p9)  ;;  %v703_v54 = vld [vmem:[#allocation2 + $0x20] sm:$0xff] (!%p2112_p9) }
  0x2a   : > { %2334 = vmatprep.subr.bf16.mxu0 (!%p2112_p9), %v2551_v5  ;;  %2476 = vmatprep.subr.bf16.mxu1 (!%p2112_p9), %v2551_v5  ;;  %vm2138_vm5 = vmpackc.low (!%p2112_p9), %vm644_vm2, %vm643_vm1  ;;  %v610_v21 = vadd.s32 (!%p2112_p9), 40, %v2811_v4  ;;  %v617_v22 = vadd.s32 (!%p2112_p9), 96, %v2811_v4  ;;  %v618_v23 = vadd.s32 (!%p2112_p9), 104, %v2811_v4  ;;  %vm645_vm7 = vcmp.eq.s32.totalorder (!%p2112_p9), %v607_v15, %v2823_v10  ;;  %v711_v55 = vld [vmem:[#allocation2 + $0x60] sm:$0xff] (!%p2112_p9)  ;;  %v706_v58 = vld [vmem:[#allocation2 + $0x38] sm:$0xff] (!%p2112_p9) }
  0x2b   : > { %vm2146_vm6 = vmpackc.low %vm652_vm4, %vm651_vm3  ;;  %2346 = vmatprep.mubr.msk.bf16.mxu0 %vm2138_vm5, %v2680_v12  ;;  %vm646_vm8 = vcmp.eq.s32.totalorder %v608_v16, %v2823_v10  ;;  %vm653_vm9 = vcmp.eq.s32.totalorder %v615_v17, %v2823_v10  ;;  %vm654_vm10 = vcmp.eq.s32.totalorder %v616_v18, %v2823_v10  ;;  %vm647_vm11 = vcmp.eq.s32.totalorder %v609_v20, %v2823_v10  ;;  %v714_v59 = vld [vmem:[#allocation2 + $0x78] sm:$0xff]  ;;  %v704_v0 = vld [vmem:[#allocation2 + $0x28] sm:$0xff] }
  0x2c   : > { %2354 = vmatprep.mubr.msk.bf16.mxu1 %vm2146_vm6, %v2680_v12  ;;  %vm648_vm12 = vcmp.eq.s32.totalorder %v610_v21, %v2823_v10  ;;  %vm2140_vm13 = vmpackc.low %vm646_vm8, %vm645_vm7  ;;  %vm655_vm14 = vcmp.eq.s32.totalorder %v617_v22, %v2823_v10  ;;  %vm656_vm15 = vcmp.eq.s32.totalorder %v618_v23, %v2823_v10  ;;  %v611_v24 = vadd.s32 48, %v2811_v4  ;;  %v712_v1 = vld [vmem:[#allocation2 + $0x68] sm:$0xff] }
  0x2d   : > { %2335 = vmatpush3.bf16.msra.mxu0 %v2551_v5  ;;  %2484 = vmatpush3.bf16.msra.mxu1 %v2551_v5  ;;  %vm2148_vm0 = vmpackc.low %vm654_vm10, %vm653_vm9  ;;  %v612_v25 = vadd.s32 56, %v2811_v4  ;;  %v619_v26 = vadd.s32 112, %v2811_v4  ;;  %v620_v27 = vadd.s32 120, %v2811_v4  ;;  %vm892_vm9 = vcmask 523264  }
  0x2e   : > { %2336 = vmatprep.subr.bf16.mxu0 %v2552_v9  ;;  %2477 = vmatprep.subr.bf16.mxu1 %v2552_v9  ;;  %vm2142_vm1 = vmpackc.low %vm648_vm12, %vm647_vm11  ;;  %vm649_vm3 = vcmp.eq.s32.totalorder %v611_v24, %v2823_v10 }
  0x2f   : > { %vm2150_vm2 = vmpackc.low %vm656_vm15, %vm655_vm14  ;;  %vm650_vm4 = vcmp.eq.s32.totalorder %v612_v25, %v2823_v10  ;;  %vm657_vm5 = vcmp.eq.s32.totalorder %v619_v26, %v2823_v10  ;;  %vm658_vm6 = vcmp.eq.s32.totalorder %v620_v27, %v2823_v10 }
  0x30   : > { %vm2144_vm7 = vmpackc.low %vm650_vm4, %vm649_vm3 }
  0x31   : > { %2337 = vmatpush3.bf16.msra.mxu0 %v2552_v9  ;;  %2485 = vmatpush3.bf16.msra.mxu1 %v2552_v9  ;;  %vm2152_vm8 = vmpackc.low %vm658_vm6, %vm657_vm5 }
  0x32   : > { %2338 = vmatprep.subr.bf16.mxu0 %v2553_v11  ;;  %2478 = vmatprep.subr.bf16.mxu1 %v2553_v11 }
  0x35   : > { %2339 = vmatpush3.bf16.msra.mxu0 %v2553_v11  ;;  %2486 = vmatpush3.bf16.msra.mxu1 %v2553_v11 }
  0x36   : > { %2340 = vmatprep.subr.bf16.mxu0 %v2554_v13  ;;  %2479 = vmatprep.subr.bf16.mxu1 %v2554_v13 }
  0x39   : > { %2341 = vmatpush3.bf16.msra.mxu0 %v2554_v13  ;;  %2487 = vmatpush3.bf16.msra.mxu1 %v2554_v13 }
  0x3a   : > { %2342 = vmatprep.subr.bf16.mxu0 %v2555_v14  ;;  %2480 = vmatprep.subr.bf16.mxu1 %v2555_v14 }
  0x3d   : > { %2343 = vmatpush3.bf16.msra.mxu0 %v2555_v14  ;;  %2488 = vmatpush3.bf16.msra.mxu1 %v2555_v14 }
  0x3e   : > { %2344 = vmatprep.subr.bf16.mxu0 %v2556_v19  ;;  %2481 = vmatprep.subr.bf16.mxu1 %v2556_v19 }
  0x41   : > { %2345 = vmatpush3.bf16.msra.mxu0 %v2556_v19  ;;  %2489 = vmatpush3.bf16.msra.mxu1 %v2556_v19 }
  0x44   : > { %2347 = vmatmul.mubr.msk.bf16.vlgmr.msra.gmra.mrb[0].mxu0 %vm2140_vm13, %v2680_v12  ;;  %2355 = vmatmul.mubr.msk.bf16.vlgmr.msra.gmra.mrb[0].mxu1 %vm2148_vm0, %v2680_v12 }
  0x45   : > { %2350 = vmatprep.mubr.msk.bf16.mxu0 %vm2142_vm1, %v2680_v12  ;;  %2358 = vmatprep.mubr.msk.bf16.mxu1 %vm2150_vm2, %v2680_v12 }
  0x4c   : > { %2351 = vmatmul.mubr.msk.bf16.gmra.mrb[4].mxu0 %vm2144_vm7, %v2680_v12  ;;  %2359 = vmatmul.mubr.msk.bf16.gmra.mrb[4].mxu1 %vm2152_vm8, %v2680_v12 }
 0x117   : > { %v2348_v32 = vpop.f32.mrb[0].mxu0  ;;  %v2356_v33 = vpop.f32.mrb[0].mxu1 }
 0x118   : > { %v878_v36 = vadd.f32 %v2348_v32, %v701_v28  ;;  %v886_v37 = vadd.f32 %v2356_v33, %v709_v29  ;;  %v813_v38 = vpop.f32.mrb[1].mxu0  ;;  %v845_v39 = vpop.f32.mrb[1].mxu1 }
 0x119   : > { %v876_v42 = vadd.f32 %v813_v38, %v699_v30  ;;  %v884_v43 = vadd.f32 %v845_v39, %v707_v31  ;;  %v2349_v44 = vpop.f32.mrb[2].mxu0  ;;  %v2357_v45 = vpop.f32.mrb[2].mxu1 }
 0x11a   : > { %895 = vst.msk [vmem:[#allocation2 + $0x10] sm:$0xff] %vm892_vm9, %v878_v36  ;;  %903 = vst.msk [vmem:[#allocation2 + $0x50] sm:$0xff] %vm892_vm9, %v886_v37  ;;  %v879_v46 = vadd.f32 %v2349_v44, %v702_v34  ;;  %v887_v47 = vadd.f32 %v2357_v45, %v710_v35  ;;  %v816_v48 = vpop.f32.mrb[3].mxu0  ;;  %v848_v49 = vpop.f32.mrb[3].mxu1 }
 0x11b   : > { %893 = vst.msk [vmem:[#allocation2] sm:$0xff] %vm892_vm9, %v876_v42  ;;  %901 = vst.msk [vmem:[#allocation2 + $0x40] sm:$0xff] %vm892_vm9, %v884_v43  ;;  %v877_v50 = vadd.f32 %v816_v48, %v700_v40  ;;  %v885_v51 = vadd.f32 %v848_v49, %v708_v41 }
 0x11c   : > { %896 = vst.msk [vmem:[#allocation2 + $0x18] sm:$0xff] %vm892_vm9, %v879_v46  ;;  %904 = vst.msk [vmem:[#allocation2 + $0x58] sm:$0xff] %vm892_vm9, %v887_v47 }
 0x11d   : > { %894 = vst.msk [vmem:[#allocation2 + $0x8] sm:$0xff] %vm892_vm9, %v877_v50  ;;  %902 = vst.msk [vmem:[#allocation2 + $0x48] sm:$0xff] %vm892_vm9, %v885_v51 }
 0x11f   : > { %v2352_v56 = vpop.f32.mrb[4].mxu0  ;;  %v2360_v57 = vpop.f32.mrb[4].mxu1 }
 0x120   : > { %v882_v60 = vadd.f32 %v2352_v56, %v705_v52  ;;  %v890_v61 = vadd.f32 %v2360_v57, %v713_v53  ;;  %v829_v62 = vpop.f32.mrb[5].mxu0  ;;  %v861_v63 = vpop.f32.mrb[5].mxu1 }
 0x121   : > { %v880_v2 = vadd.f32 %v829_v62, %v703_v54  ;;  %v888_v3 = vadd.f32 %v861_v63, %v711_v55  ;;  %v2353_v4 = vpop.f32.mrb[6].mxu0  ;;  %v2361_v5 = vpop.f32.mrb[6].mxu1 }
 0x122   : > { %899 = vst.msk [vmem:[#allocation2 + $0x30] sm:$0xff] %vm892_vm9, %v882_v60  ;;  %907 = vst.msk [vmem:[#allocation2 + $0x70] sm:$0xff] %vm892_vm9, %v890_v61  ;;  %v883_v6 = vadd.f32 %v2353_v4, %v706_v58  ;;  %v891_v7 = vadd.f32 %v2361_v5, %v714_v59  ;;  %v832_v8 = vpop.f32.mrb[7].mxu0  ;;  %v864_v9 = vpop.f32.mrb[7].mxu1 }
 0x123   : > { %897 = vst.msk [vmem:[#allocation2 + $0x20] sm:$0xff] %vm892_vm9, %v880_v2  ;;  %905 = vst.msk [vmem:[#allocation2 + $0x60] sm:$0xff] %vm892_vm9, %v888_v3  ;;  %v881_v10 = vadd.f32 %v832_v8, %v704_v0  ;;  %v889_v11 = vadd.f32 %v864_v9, %v712_v1 }
 0x124   : > { %900 = vst.msk [vmem:[#allocation2 + $0x38] sm:$0xff] %vm892_vm9, %v883_v6  ;;  %908 = vst.msk [vmem:[#allocation2 + $0x78] sm:$0xff] %vm892_vm9, %v891_v7 }
 0x125   : > { %898 = vst.msk [vmem:[#allocation2 + $0x28] sm:$0xff] %vm892_vm9, %v881_v10  ;;  %906 = vst.msk [vmem:[#allocation2 + $0x68] sm:$0xff] %vm892_vm9, %v889_v11 }
 0x126 PF: > { %p2154_p10 = scmp.ne.s32.totalorder %s2669_s29, 1 }
 0x127   : > { %v931_v12 = vld [vmem:[%s3174_s3 + $0x10] sm:$0xff] (!%p2154_p10)  ;;  %v929_v13 = vld [vmem:[%s3174_s3] sm:$0xff] (!%p2154_p10)  ;;  %v2681_v14 = vmov (!%p2154_p10), 0   ;;  %v932_v15 = vld [vmem:[%s3174_s3 + $0x18] sm:$0xff] (!%p2154_p10)  ;;  %vm1105_vm10 = vcmask (!%p2154_p10), 523264   ;;  %vm1979_vm11 = vcmask (!%p2154_p10), 519168  }
 0x128   : > { %912 = sbr.rel (%p2154_p10) target bundleno = 1181 (0x49d), region = 76  ;;  %2558 = vset.pattern.permute.xlu1 (!%p2154_p10), %v2681_v14  ;;  %2557 = vset.pattern.permute.xlu0 (!%p2154_p10), %v2681_v14  ;;  %v930_v16 = vld [vmem:[%s3174_s3 + $0x8] sm:$0xff] (!%p2154_p10)  ;;  %v2559_v17 = vld [vmem:[%s3178_s7] sm:$0xff] (!%p2154_p10)   ;;  %v936_v21 = vld [vmem:[%s3174_s3 + $0x38] sm:$0xff] (!%p2154_p10) }
 0x129   : > { %957 = vperm.xlu1 (!%p2154_p10), %2558, %v931_v12   ;;  %947 = vperm.xlu0 (!%p2154_p10), %2557, %v929_v13   ;;  %v934_v18 = vld [vmem:[%s3174_s3 + $0x28] sm:$0xff] (!%p2154_p10)  ;;  %v933_v19 = vld [vmem:[%s3174_s3 + $0x20] sm:$0xff] (!%p2154_p10)  ;;  %v935_v22 = vld [vmem:[%s3174_s3 + $0x30] sm:$0xff] (!%p2154_p10) }
 0x12a   : > { %v2560_v20 = vld [vmem:[%s3178_s7 + $0x8] sm:$0xff] (!%p2154_p10)   ;;  %2362 = vmatprep.subr.bf16.mxu0 (!%p2154_p10), %v2559_v17  ;;  %v2561_v23 = vld [vmem:[%s3178_s7 + $0x10] sm:$0xff] (!%p2154_p10)   ;;  %v937_v25 = vld [vmem:[%s3174_s3 + $0x40] sm:$0xff] (!%p2154_p10) }
 0x12b   : > { %2363 = vmatpush3.bf16.msra.mxu0 (!%p2154_p10), %v2559_v17  ;;  %v938_v24 = vld [vmem:[%s3174_s3 + $0x48] sm:$0xff] (!%p2154_p10)  ;;  %v2562_v26 = vld [vmem:[%s3178_s7 + $0x18] sm:$0xff] (!%p2154_p10)   ;;  %v939_v28 = vld [vmem:[%s3174_s3 + $0x50] sm:$0xff] (!%p2154_p10) }
 0x12c   : > { %2364 = vmatprep.subr.bf16.mxu0 (!%p2154_p10), %v2560_v20  ;;  %v940_v27 = vld [vmem:[%s3174_s3 + $0x58] sm:$0xff] (!%p2154_p10)  ;;  %v2563_v29 = vld [vmem:[%s3177_s6] sm:$0xff] (!%p2154_p10)   ;;  %v942_v30 = vld [vmem:[%s3174_s3 + $0x68] sm:$0xff] (!%p2154_p10) }
 0x12d   : > { %962 = vperm.xlu1 (!%p2154_p10), %2558, %v932_v15   ;;  %952 = vperm.xlu0 (!%p2154_p10), %2557, %v930_v16   ;;  %v941_v31 = vld [vmem:[%s3174_s3 + $0x60] sm:$0xff] (!%p2154_p10)  ;;  %v944_v32 = vld [vmem:[%s3174_s3 + $0x78] sm:$0xff] (!%p2154_p10)  ;;  %v943_v33 = vld [vmem:[%s3174_s3 + $0x70] sm:$0xff] (!%p2154_p10) }
 0x12e   : > { %v2575_v34 = vld [vmem:[%s3180_s9] sm:$0xff] (!%p2154_p10)   ;;  %v2576_v35 = vld [vmem:[%s3180_s9 + $0x8] sm:$0xff] (!%p2154_p10)   ;;  %v2577_v36 = vld [vmem:[%s3180_s9 + $0x10] sm:$0xff] (!%p2154_p10)  }
 0x12f   : > { %2365 = vmatpush3.bf16.msra.mxu0 %v2560_v20  ;;  %2410 = vmatprep.subr.bf16.mxu1 %v2575_v34  ;;  %v2578_v37 = vld [vmem:[%s3180_s9 + $0x18] sm:$0xff]   ;;  %v2579_v38 = vld [vmem:[%s3180_s9 + $0x20] sm:$0xff]   ;;  %v2580_v39 = vld [vmem:[%s3180_s9 + $0x28] sm:$0xff]  }
 0x130   : > { %2366 = vmatprep.subr.bf16.mxu0 %v2561_v23  ;;  %2411 = vmatpush3.bf16.msra.mxu1 %v2575_v34  ;;  %v915_v42 = vld [vmem:[#allocation2 + $0x10] sm:$0xff]  ;;  %v913_v43 = vld [vmem:[#allocation2] sm:$0xff]  ;;  %v916_v44 = vld [vmem:[#allocation2 + $0x18] sm:$0xff] }
 0x131   : > { %972 = vperm.xlu1 %2558, %v934_v18   ;;  %967 = vperm.xlu0 %2557, %v933_v19   ;;  %v914_v45 = vld [vmem:[#allocation2 + $0x8] sm:$0xff]  ;;  %v917_v53 = vld [vmem:[#allocation2 + $0x20] sm:$0xff]  ;;  %v920_v61 = vld [vmem:[#allocation2 + $0x38] sm:$0xff] }
 0x132   : > { %2412 = vmatprep.subr.bf16.mxu1 %v2576_v35  ;;  %v918_v52 = vld [vmem:[#allocation2 + $0x28] sm:$0xff]  ;;  %v2564_v58 = vld [vmem:[%s3177_s6 + $0x8] sm:$0xff]   ;;  %v919_v62 = vld [vmem:[#allocation2 + $0x30] sm:$0xff] }
 0x133   : > { %2367 = vmatpush3.bf16.msra.mxu0 %v2561_v23  ;;  %v2565_v2 = vld [vmem:[%s3177_s6 + $0x10] sm:$0xff]   ;;  %v921_v6 = vld [vmem:[#allocation2 + $0x40] sm:$0xff]  ;;  %v2566_v10 = vld [vmem:[%s3177_s6 + $0x18] sm:$0xff]  }
 0x134   : > { %2368 = vmatprep.subr.bf16.mxu0 %v2562_v26  ;;  %2413 = vmatpush3.bf16.msra.mxu1 %v2576_v35  ;;  %v922_v5 = vld [vmem:[#allocation2 + $0x48] sm:$0xff]  ;;  %v924_v13 = vld [vmem:[#allocation2 + $0x58] sm:$0xff]  ;;  %v923_v14 = vld [vmem:[#allocation2 + $0x50] sm:$0xff] }
 0x135   : > { %982 = vperm.xlu1 %2558, %v936_v21   ;;  %977 = vperm.xlu0 %2557, %v935_v22   ;;  %v926_v20 = vld [vmem:[#allocation2 + $0x68] sm:$0xff]  ;;  %v925_v21 = vld [vmem:[#allocation2 + $0x60] sm:$0xff]  ;;  %v2567_v35 = vld [vmem:[%s3176_s5] sm:$0xff]  }
 0x136   : > { %2414 = vmatprep.subr.bf16.mxu1 %v2577_v36 }
 0x137   : > { %2369 = vmatpush3.bf16.msra.mxu0 %v2562_v26 }
 0x138   : > { %2386 = vmatprep.subr.bf16.mxu0 %v2563_v29  ;;  %2415 = vmatpush3.bf16.msra.mxu1 %v2577_v36  ;;  %v2568_v36 = vld [vmem:[%s3176_s5 + $0x8] sm:$0xff]  }
 0x139   : > { %992 = vperm.xlu1 %2558, %v938_v24   ;;  %987 = vperm.xlu0 %2557, %v937_v25  }
 0x13a   : > { %2416 = vmatprep.subr.bf16.mxu1 %v2578_v37 }
 0x13c   : > { %2417 = vmatpush3.bf16.msra.mxu1 %v2578_v37  ;;  %v2569_v37 = vld [vmem:[%s3176_s5 + $0x10] sm:$0xff]  }
 0x13d   : > { %1002 = vperm.xlu1 %2558, %v940_v27   ;;  %997 = vperm.xlu0 %2557, %v939_v28   ;;  %v928_v27 = vld [vmem:[#allocation2 + $0x78] sm:$0xff]  ;;  %v927_v28 = vld [vmem:[#allocation2 + $0x70] sm:$0xff] }
 0x13e   : > { %2418 = vmatprep.subr.bf16.mxu1 %v2579_v38 }
 0x140   : > { %2419 = vmatpush3.bf16.msra.mxu1 %v2579_v38  ;;  %v2570_v38 = vld [vmem:[%s3176_s5 + $0x18] sm:$0xff]  }
 0x141   : > { %1012 = vperm.xlu1 %2558, %v942_v30   ;;  %1007 = vperm.xlu0 %2557, %v941_v31  }
 0x142   : > { %2420 = vmatprep.subr.bf16.mxu1 %v2580_v39 }
 0x144   : > { %2421 = vmatpush3.bf16.msra.mxu1 %v2580_v39  ;;  %v2571_v39 = vld [vmem:[%s3176_s5 + $0x20] sm:$0xff]  }
 0x145   : > { %1022 = vperm.xlu1 %2558, %v944_v32   ;;  %1017 = vperm.xlu0 %2557, %v943_v33  }
 0x1a8   : > { %v958_v40 = vpop.permute.xlu1 %957  ;;  %v948_v41 = vpop.permute.xlu0 %947 }
 0x1a9   : > { %v1027_v48 = vmul.f32 %v958_v40, %v915_v42  ;;  %v1025_v49 = vmul.f32 %v948_v41, %v913_v43  ;;  %v2572_v40 = vld [vmem:[%s3176_s5 + $0x28] sm:$0xff]   ;;  %v2573_v41 = vld [vmem:[%s3176_s5 + $0x30] sm:$0xff]   ;;  %v2574_v42 = vld [vmem:[%s3176_s5 + $0x38] sm:$0xff]  }
 0x1aa   : > { %v2581_v43 = vld [vmem:[%s3180_s9 + $0x30] sm:$0xff]  }
 0x1ab   : > { %2422 = vmatprep.subr.bf16.mxu1 %v2581_v43 }
 0x1ac   : > { %v963_v46 = vpop.permute.xlu1 %962  ;;  %v953_v47 = vpop.permute.xlu0 %952  ;;  %2423 = vmatpush3.bf16.msra.mxu1 %v2581_v43 }
 0x1ad   : > { %v1028_v50 = vmul.f32 %v963_v46, %v916_v44  ;;  %v1026_v51 = vmul.f32 %v953_v47, %v914_v45  ;;  %v2582_v44 = vld [vmem:[%s3180_s9 + $0x38] sm:$0xff]   ;;  %v2583_v45 = vld [vmem:[%s3182_s11] sm:$0xff]   ;;  %v2584_v46 = vld [vmem:[%s3182_s11 + $0x8] sm:$0xff]  }
 0x1ae   : > { %2424 = vmatprep.subr.bf16.mxu1 %v2582_v44  ;;  %v2585_v47 = vld [vmem:[%s3182_s11 + $0x10] sm:$0xff]  }
 0x1af   : > { %v1066_v54 = vpack.c.bf16 %v1028_v50, %v1027_v48  ;;  %v1065_v55 = vpack.c.bf16 %v1026_v51, %v1025_v49  ;;  %v3023_v48 = vld [vmem:[%s3182_s11 + $0x18] sm:$0xff]   ;;  %v3029_v49 = vld [vmem:[%s3182_s11 + $0x20] sm:$0xff]   ;;  %v3036_v50 = vld [vmem:[%s3182_s11 + $0x28] sm:$0xff]  }
 0x1b0   : > { %v973_v56 = vpop.permute.xlu1 %972  ;;  %v968_v57 = vpop.permute.xlu0 %967  ;;  %2425 = vmatpush3.bf16.msra.mxu1 %v2582_v44  ;;  %v3044_v51 = vld [vmem:[%s3179_s8] ss:$0 sm:$0xff]  ;;  %v2589_v44 = vld [vmem:[%s3182_s11 + $0x30] sm:$0xff]  }
 0x1b1   : > { %v1030_v59 = vmul.f32 %v973_v56, %v918_v52  ;;  %v1029_v60 = vmul.f32 %v968_v57, %v917_v53  ;;  %2370 = vmatprep.mubr.msk.bf16.mxu0 %vm1105_vm10, %v1065_v55  ;;  %2490 = vmatprep.subr.bf16.mxu1 %v2583_v45 }
 0x1b2   : > { %2371 = vmatmul.mubr.msk.bf16.vlgmr.msra.gmra.mrb[0].mxu0 %vm1105_vm10, %v1066_v54 }
 0x1b3   : > { %v1067_v63 = vpack.c.bf16 %v1030_v59, %v1029_v60  ;;  %2387 = vmatpush3.bf16.msra.mxu0 %v2563_v29 }
 0x1b4   : > { %v983_v0 = vpop.permute.xlu1 %982  ;;  %v978_v1 = vpop.permute.xlu0 %977  ;;  %2388 = vmatprep.subr.bf16.mxu0 %v2564_v58 }
 0x1b5   : > { %v1032_v3 = vmul.f32 %v983_v0, %v920_v61  ;;  %v1031_v4 = vmul.f32 %v978_v1, %v919_v62  ;;  %2374 = vmatprep.mubr.msk.bf16.mxu0 %vm1105_vm10, %v1067_v63 }
 0x1b7   : > { %v1068_v7 = vpack.c.bf16 %v1032_v3, %v1031_v4  ;;  %2389 = vmatpush3.bf16.msra.mxu0 %v2564_v58 }
 0x1b8   : > { %v993_v8 = vpop.permute.xlu1 %992  ;;  %v988_v9 = vpop.permute.xlu0 %987  ;;  %2390 = vmatprep.subr.bf16.mxu0 %v2565_v2 }
 0x1b9   : > { %v1034_v11 = vmul.f32 %v993_v8, %v922_v5  ;;  %v1033_v12 = vmul.f32 %v988_v9, %v921_v6 }
 0x1ba   : > { %2375 = vmatmul.mubr.msk.bf16.gmra.mrb[4].mxu0 %vm1105_vm10, %v1068_v7 }
 0x1bb   : > { %v1069_v15 = vpack.c.bf16 %v1034_v11, %v1033_v12  ;;  %2391 = vmatpush3.bf16.msra.mxu0 %v2565_v2 }
 0x1bc   : > { %v1003_v16 = vpop.permute.xlu1 %1002  ;;  %v998_v17 = vpop.permute.xlu0 %997  ;;  %2392 = vmatprep.subr.bf16.mxu0 %v2566_v10 }
 0x1bd   : > { %v1036_v18 = vmul.f32 %v1003_v16, %v924_v13  ;;  %v1035_v19 = vmul.f32 %v998_v17, %v923_v14  ;;  %2378 = vmatprep.mubr.msk.bf16.mxu0 %vm1105_vm10, %v1069_v15 }
 0x1bf   : > { %v1070_v22 = vpack.c.bf16 %v1036_v18, %v1035_v19  ;;  %2393 = vmatpush3.bf16.msra.mxu0 %v2566_v10 }
 0x1c0   : > { %v1013_v23 = vpop.permute.xlu1 %1012  ;;  %v1008_v24 = vpop.permute.xlu0 %1007  ;;  %2442 = vmatprep.subr.bf16.mxu0 %v2583_v45 }
 0x1c1   : > { %v1038_v25 = vmul.f32 %v1013_v23, %v926_v20  ;;  %v1037_v26 = vmul.f32 %v1008_v24, %v925_v21 }
 0x1c2   : > { %2379 = vmatmul.mubr.msk.bf16.gmra.mrb[8].mxu0 %vm1105_vm10, %v1070_v22 }
 0x1c3   : > { %v1071_v29 = vpack.c.bf16 %v1038_v25, %v1037_v26 }
 0x1c4   : > { %v1023_v30 = vpop.permute.xlu1 %1022  ;;  %v1018_v31 = vpop.permute.xlu0 %1017 }
 0x1c5   : > { %v1040_v32 = vmul.f32 %v1023_v30, %v928_v27  ;;  %v1039_v33 = vmul.f32 %v1018_v31, %v927_v28  ;;  %2382 = vmatprep.mubr.msk.bf16.mxu0 %vm1105_vm10, %v1071_v29 }
 0x1c7   : > { %v1072_v34 = vpack.c.bf16 %v1040_v32, %v1039_v33 }
 0x1ca   : > { %2383 = vmatmul.mubr.msk.bf16.gmra.mrb[12].mxu0 %vm1105_vm10, %v1072_v34 }
 0x1cb   : > { %2394 = vmatprep.mubr.msk.bf16.mxu0 %vm1105_vm10, %v2567_v35 }
 0x1d2   : > { %2395 = vmatmul.mubr.msk.bf16.vlgmr.msra.gmra.mrb[0].mxu0 %vm1105_vm10, %v2568_v36 }
 0x1d3   : > { %2398 = vmatprep.mubr.msk.bf16.mxu0 %vm1105_vm10, %v2569_v37  ;;  %2443 = vmatpush3.bf16.msra.mxu0 %v2583_v45 }
 0x1d4   : > { %2444 = vmatprep.subr.bf16.mxu0 %v2584_v46 }
 0x1d7   : > { %2445 = vmatpush3.bf16.msra.mxu0 %v2584_v46 }
 0x1d8   : > { %2446 = vmatprep.subr.bf16.mxu0 %v2585_v47 }
 0x1da   : > { %2399 = vmatmul.mubr.msk.bf16.gmra.mrb[4].mxu0 %vm1105_vm10, %v2570_v38 }
 0x1db   : > { %2402 = vmatprep.mubr.msk.bf16.mxu0 %vm1105_vm10, %v2571_v39  ;;  %2447 = vmatpush3.bf16.msra.mxu0 %v2585_v47 }
 0x1dc   : > { %2448 = vmatprep.subr.bf16.mxu0 %v3023_v48 }
 0x1df   : > { %2449 = vmatpush3.bf16.msra.mxu0 %v3023_v48 }
 0x1e0   : > { %2450 = vmatprep.subr.bf16.mxu0 %v3029_v49 }
 0x1e2   : > { %2403 = vmatmul.mubr.msk.bf16.gmra.mrb[8].mxu0 %vm1105_vm10, %v2572_v40 }
 0x1e3   : > { %2406 = vmatprep.mubr.msk.bf16.mxu0 %vm1105_vm10, %v2573_v41  ;;  %2451 = vmatpush3.bf16.msra.mxu0 %v3029_v49 }
 0x1e4   : > { %2452 = vmatprep.subr.bf16.mxu0 %v3036_v50 }
 0x1e7   : > { %2453 = vmatpush3.bf16.msra.mxu0 %v3036_v50 }
 0x1e8   : > { %2454 = vmatprep.subr.bf16.mxu0 %v2589_v44 }
 0x1ea   : > { %2407 = vmatmul.mubr.msk.bf16.gmra.mrb[12].mxu0 %vm1105_vm10, %v2574_v42 }
 0x1eb   : > { %2455 = vmatpush3.bf16.msra.mxu0 %v2589_v44 }
 0x2a5   : > { %v2396_v52 = vpop.f32.mrb[0].mxu0 }
 0x2a6   : > { %v1421_v53 = vadd.f32 %v2396_v52, %v3044_v51  ;;  %v1349_v54 = vpop.f32.mrb[1].mxu0 }
 0x2a7   : > { %v1419_v55 = vadd.f32 %v3044_v51, %v1349_v54  ;;  %v2397_v56 = vpop.f32.mrb[2].mxu0 }
 0x2a8   : > { %v1422_v57 = vadd.f32 %v2397_v56, %v3044_v51  ;;  %v1352_v58 = vpop.f32.mrb[3].mxu0  ;;  %v1437_v60 = vmax.f32 %v1421_v53, 0.0 }
 0x2a9   : > { %v1420_v59 = vadd.f32 %v3044_v51, %v1352_v58  ;;  %v1435_v62 = vmax.f32 %v1419_v55, 0.0 }
 0x2aa   : > { %v1438_v61 = vmax.f32 %v1422_v57, 0.0 }
 0x2ab   : > { %v1436_v63 = vmax.f32 %v1420_v59, 0.0 }
 0x2ac   : > { %v1452_v0 = vpack.c.bf16 %v1438_v61, %v1437_v60 }
 0x2ad   : > { %v2400_v1 = vpop.f32.mrb[4].mxu0  ;;  %v1451_v2 = vpack.c.bf16 %v1436_v63, %v1435_v62 }
 0x2ae   : > { %v1425_v3 = vadd.f32 %v2400_v1, %v3044_v51  ;;  %v1365_v4 = vpop.f32.mrb[5].mxu0 }
 0x2af   : > { %v1423_v5 = vadd.f32 %v3044_v51, %v1365_v4  ;;  %v2401_v6 = vpop.f32.mrb[6].mxu0  ;;  %2426 = vmatprep.mubr.bf16.mxu1 %v1451_v2 }
 0x2b0   : > { %v1426_v7 = vadd.f32 %v2401_v6, %v3044_v51  ;;  %v1368_v8 = vpop.f32.mrb[7].mxu0  ;;  %2427 = vmatmul.mubr.bf16.vlgmr.msra.gmra.mrb[0].mxu1 %v1452_v0  ;;  %v1441_v10 = vmax.f32 %v1425_v3, 0.0 }
 0x2b1   : > { %v1424_v9 = vadd.f32 %v3044_v51, %v1368_v8  ;;  %2498 = vmatpush3.bf16.msra.mxu1 %v2583_v45  ;;  %v1439_v12 = vmax.f32 %v1423_v5, 0.0  ;;  %v2590_v45 = vld [vmem:[%s3182_s11 + $0x38] sm:$0xff]  }
 0x2b2   : > { %v1442_v11 = vmax.f32 %v1426_v7, 0.0  ;;  %2491 = vmatprep.subr.bf16.mxu1 %v2584_v46  ;;  %2456 = vmatprep.subr.bf16.mxu0 %v2590_v45 }
 0x2b3   : > { %v1440_v13 = vmax.f32 %v1424_v9, 0.0  ;;  %2457 = vmatpush3.bf16.msra.mxu0 %v2590_v45 }
 0x2b4   : > { %v1454_v14 = vpack.c.bf16 %v1442_v11, %v1441_v10 }
 0x2b5   : > { %v1453_v15 = vpack.c.bf16 %v1440_v13, %v1439_v12  ;;  %v2404_v16 = vpop.f32.mrb[8].mxu0  ;;  %2499 = vmatpush3.bf16.msra.mxu1 %v2584_v46  ;;  %v2188_v46 = vld [vmem:[%s3181_s10] ss:$0 sm:$0xff] }
 0x2b6   : > { %v1429_v17 = vadd.f32 %v2404_v16, %v3044_v51  ;;  %v1381_v18 = vpop.f32.mrb[9].mxu0  ;;  %2492 = vmatprep.subr.bf16.mxu1 %v2585_v47 }
 0x2b7   : > { %v1427_v19 = vadd.f32 %v3044_v51, %v1381_v18  ;;  %v2405_v20 = vpop.f32.mrb[10].mxu0  ;;  %2430 = vmatprep.mubr.bf16.mxu1 %v1453_v15 }
 0x2b8   : > { %v1430_v21 = vadd.f32 %v2405_v20, %v3044_v51  ;;  %v1384_v22 = vpop.f32.mrb[11].mxu0  ;;  %2431 = vmatmul.mubr.bf16.gmra.mrb[4].mxu1 %v1454_v14  ;;  %v1445_v24 = vmax.f32 %v1429_v17, 0.0 }
 0x2b9   : > { %v1428_v23 = vadd.f32 %v3044_v51, %v1384_v22  ;;  %2500 = vmatpush3.bf16.msra.mxu1 %v2585_v47  ;;  %v1443_v26 = vmax.f32 %v1427_v19, 0.0 }
 0x2ba   : > { %v1446_v25 = vmax.f32 %v1430_v21, 0.0  ;;  %2493 = vmatprep.subr.bf16.mxu1 %v3023_v48 }
 0x2bb   : > { %v1444_v27 = vmax.f32 %v1428_v23, 0.0 }
 0x2bc   : > { %v1456_v28 = vpack.c.bf16 %v1446_v25, %v1445_v24 }
 0x2bd   : > { %v1455_v29 = vpack.c.bf16 %v1444_v27, %v1443_v26  ;;  %v2408_v30 = vpop.f32.mrb[12].mxu0  ;;  %2501 = vmatpush3.bf16.msra.mxu1 %v3023_v48 }
 0x2be   : > { %v1433_v31 = vadd.f32 %v2408_v30, %v3044_v51  ;;  %v1397_v32 = vpop.f32.mrb[13].mxu0  ;;  %2494 = vmatprep.subr.bf16.mxu1 %v3029_v49 }
 0x2bf   : > { %v1431_v33 = vadd.f32 %v3044_v51, %v1397_v32  ;;  %v2409_v34 = vpop.f32.mrb[14].mxu0  ;;  %2434 = vmatprep.mubr.bf16.mxu1 %v1455_v29 }
 0x2c0   : > { %v1434_v35 = vadd.f32 %v2409_v34, %v3044_v51  ;;  %v1400_v36 = vpop.f32.mrb[15].mxu0  ;;  %2435 = vmatmul.mubr.bf16.gmra.mrb[8].mxu1 %v1456_v28  ;;  %v1449_v38 = vmax.f32 %v1433_v31, 0.0 }
 0x2c1   : > { %v1432_v37 = vadd.f32 %v3044_v51, %v1400_v36  ;;  %2502 = vmatpush3.bf16.msra.mxu1 %v3029_v49  ;;  %v1447_v40 = vmax.f32 %v1431_v33, 0.0 }
 0x2c2   : > { %v1450_v39 = vmax.f32 %v1434_v35, 0.0  ;;  %2495 = vmatprep.subr.bf16.mxu1 %v3036_v50 }
 0x2c3   : > { %v1448_v41 = vmax.f32 %v1432_v37, 0.0 }
 0x2c4   : > { %v1458_v42 = vpack.c.bf16 %v1450_v39, %v1449_v38  ;;  %v3080_v39 = vld [vmem:[%s3183_s12] ss:$0 sm:$0xff] }
 0x2c5   : > { %v1457_v43 = vpack.c.bf16 %v1448_v41, %v1447_v40  ;;  %2503 = vmatpush3.bf16.msra.mxu1 %v3036_v50 }
 0x2c6   : > { %2496 = vmatprep.subr.bf16.mxu1 %v2589_v44 }
 0x2c7   : > { %2438 = vmatprep.mubr.bf16.mxu1 %v1457_v43 }
 0x2c8   : > { %2439 = vmatmul.mubr.bf16.gmra.mrb[12].mxu1 %v1458_v42 }
 0x2c9   : > { %2504 = vmatpush3.bf16.msra.mxu1 %v2589_v44 }
 0x2ca   : > { %2497 = vmatprep.subr.bf16.mxu1 %v2590_v45 }
 0x2cd   : > { %2505 = vmatpush3.bf16.msra.mxu1 %v2590_v45 }
 0x383   : > { %v2428_v47 = vpop.f32.mrb[0].mxu1 }
 0x384   : > { %v1573_v48 = vadd.f32 %v2428_v47, %v2188_v46  ;;  %v1564_v49 = vpop.f32.mrb[1].mxu1 }
 0x385   : > { %v1565_v50 = vadd.f32 %v2188_v46, %v1564_v49  ;;  %v2429_v51 = vpop.f32.mrb[2].mxu1 }
 0x386   : > { %v1576_v52 = vadd.f32 %v2429_v51, %v2188_v46  ;;  %v1567_v53 = vpop.f32.mrb[3].mxu1  ;;  %v1629_v55 = vmax.f32 %v1573_v48, 0.0 }
 0x387   : > { %v1568_v54 = vadd.f32 %v2188_v46, %v1567_v53  ;;  %v1627_v57 = vmax.f32 %v1565_v50, 0.0 }
 0x388   : > { %v1630_v56 = vmax.f32 %v1576_v52, 0.0 }
 0x389   : > { %v1628_v58 = vmax.f32 %v1568_v54, 0.0 }
 0x38a   : > { %v1644_v59 = vpack.c.bf16 %v1630_v56, %v1629_v55 }
 0x38b   : > { %v1643_v60 = vpack.c.bf16 %v1628_v58, %v1627_v57  ;;  %v2432_v61 = vpop.f32.mrb[4].mxu1 }
 0x38c   : > { %v1589_v62 = vadd.f32 %v2432_v61, %v2188_v46  ;;  %v1580_v63 = vpop.f32.mrb[5].mxu1 }
 0x38d   : > { %v1581_v0 = vadd.f32 %v2188_v46, %v1580_v63  ;;  %v2433_v1 = vpop.f32.mrb[6].mxu1  ;;  %2458 = vmatprep.mubr.bf16.mxu0 %v1643_v60 }
 0x38e   : > { %v1592_v2 = vadd.f32 %v2433_v1, %v2188_v46  ;;  %v1583_v3 = vpop.f32.mrb[7].mxu1  ;;  %2459 = vmatmul.mubr.bf16.vlgmr.msra.gmra.mrb[16].mxu0 %v1644_v59  ;;  %v1633_v5 = vmax.f32 %v1589_v62, 0.0 }
 0x38f   : > { %v1584_v4 = vadd.f32 %v2188_v46, %v1583_v3  ;;  %v1631_v7 = vmax.f32 %v1581_v0, 0.0 }
 0x390   : > { %v1634_v6 = vmax.f32 %v1592_v2, 0.0 }
 0x391   : > { %v1632_v8 = vmax.f32 %v1584_v4, 0.0 }
 0x392   : > { %v1646_v9 = vpack.c.bf16 %v1634_v6, %v1633_v5 }
 0x393   : > { %v1645_v10 = vpack.c.bf16 %v1632_v8, %v1631_v7  ;;  %v2436_v11 = vpop.f32.mrb[8].mxu1 }
 0x394   : > { %v1605_v12 = vadd.f32 %v2436_v11, %v2188_v46  ;;  %v1596_v13 = vpop.f32.mrb[9].mxu1 }
 0x395   : > { %v1597_v14 = vadd.f32 %v2188_v46, %v1596_v13  ;;  %v2437_v15 = vpop.f32.mrb[10].mxu1  ;;  %2462 = vmatprep.mubr.bf16.mxu1 %v1645_v10 }
 0x396   : > { %v1608_v16 = vadd.f32 %v2437_v15, %v2188_v46  ;;  %v1599_v17 = vpop.f32.mrb[11].mxu1  ;;  %2463 = vmatmul.mubr.bf16.vlgmr.msra.gmra.mrb[16].mxu1 %v1646_v9  ;;  %v1637_v19 = vmax.f32 %v1605_v12, 0.0 }
 0x397   : > { %v1600_v18 = vadd.f32 %v2188_v46, %v1599_v17  ;;  %v1635_v21 = vmax.f32 %v1597_v14, 0.0 }
 0x398   : > { %v1638_v20 = vmax.f32 %v1608_v16, 0.0 }
 0x399   : > { %v1636_v22 = vmax.f32 %v1600_v18, 0.0 }
 0x39a   : > { %v1648_v23 = vpack.c.bf16 %v1638_v20, %v1637_v19 }
 0x39b   : > { %v1647_v24 = vpack.c.bf16 %v1636_v22, %v1635_v21  ;;  %v2440_v25 = vpop.f32.mrb[12].mxu1 }
 0x39c   : > { %v1621_v26 = vadd.f32 %v2440_v25, %v2188_v46  ;;  %v1612_v27 = vpop.f32.mrb[13].mxu1 }
 0x39d   : > { %v1613_v28 = vadd.f32 %v2188_v46, %v1612_v27  ;;  %v2441_v29 = vpop.f32.mrb[14].mxu1  ;;  %2466 = vmatprep.mubr.bf16.mxu1 %v1647_v24 }
 0x39e   : > { %v1624_v30 = vadd.f32 %v2441_v29, %v2188_v46  ;;  %v1615_v31 = vpop.f32.mrb[15].mxu1  ;;  %2467 = vmatmul.mubr.bf16.gmra.mrb[20].mxu1 %v1648_v23  ;;  %v1641_v33 = vmax.f32 %v1621_v26, 0.0 }
 0x39f   : > { %v1616_v32 = vadd.f32 %v2188_v46, %v1615_v31  ;;  %v1639_v35 = vmax.f32 %v1613_v28, 0.0 }
 0x3a0   : > { %v1642_v34 = vmax.f32 %v1624_v30, 0.0 }
 0x3a1   : > { %v1640_v36 = vmax.f32 %v1616_v32, 0.0 }
 0x3a2   : > { %v1650_v37 = vpack.c.bf16 %v1642_v34, %v1641_v33 }
 0x3a3   : > { %v1649_v38 = vpack.c.bf16 %v1640_v36, %v1639_v35 }
 0x3a5   : > { %2470 = vmatprep.mubr.bf16.mxu1 %v1649_v38 }
 0x3a6   : > { %2471 = vmatmul.mubr.bf16.gmra.mrb[24].mxu1 %v1650_v37 }
 0x461   : > { %v2460_v40 = vpop.f32.mrb[16].mxu0 }
 0x462   : > { %v1765_v41 = vadd.f32 %v2460_v40, %v3080_v39  ;;  %v1756_v42 = vpop.f32.mrb[17].mxu0 }
 0x463   : > { %v1757_v43 = vadd.f32 %v3080_v39, %v1756_v42  ;;  %v2461_v44 = vpop.f32.mrb[18].mxu0 }
 0x464   : > { %v2208_v45 = vmul.f32 -1.442695, %v1765_v41  ;;  %v1768_v46 = vadd.f32 %v2461_v44, %v3080_v39  ;;  %v1759_v47 = vpop.f32.mrb[19].mxu0 }
 0x465   : > { %v2206_v48 = vmul.f32 -1.442695, %v1757_v43  ;;  %v1760_v49 = vadd.f32 %v3080_v39, %v1759_v47 }
 0x466   : > { %2591 = vpow2.f32 %v2208_v45  ;;  %v2209_v50 = vmul.f32 -1.442695, %v1768_v46 }
 0x467   : > { %2593 = vpow2.f32 %v2206_v48  ;;  %v2207_v51 = vmul.f32 -1.442695, %v1760_v49 }
 0x468   : > { %2595 = vpow2.f32 %v2209_v50 }
 0x469   : > { %2597 = vpow2.f32 %v2207_v51  ;;  %v2464_v52 = vpop.f32.mrb[16].mxu1 }
 0x46a   : > { %v1781_v53 = vadd.f32 %v2464_v52, %v3080_v39  ;;  %v1772_v54 = vpop.f32.mrb[17].mxu1 }
 0x46b   : > { %v1773_v55 = vadd.f32 %v3080_v39, %v1772_v54  ;;  %v2465_v56 = vpop.f32.mrb[18].mxu1 }
 0x46c   : > { %v2212_v57 = vmul.f32 -1.442695, %v1781_v53  ;;  %v1784_v58 = vadd.f32 %v2465_v56, %v3080_v39  ;;  %v1775_v59 = vpop.f32.mrb[19].mxu1 }
 0x46d   : > { %v2210_v60 = vmul.f32 -1.442695, %v1773_v55  ;;  %v1776_v61 = vadd.f32 %v3080_v39, %v1775_v59 }
 0x46e   : > { %2599 = vpow2.f32 %v2212_v57  ;;  %v2213_v62 = vmul.f32 -1.442695, %v1784_v58 }
 0x46f   : > { %2601 = vpow2.f32 %v2210_v60  ;;  %v2211_v63 = vmul.f32 -1.442695, %v1776_v61 }
 0x470   : > { %v2592_v0 = vpop.eup %2591  ;;  %2603 = vpow2.f32 %v2213_v62 }
 0x471   : > { %v2594_v1 = vpop.eup %2593  ;;  %v1869_v2 = vadd.f32 1.0, %v2592_v0  ;;  %2605 = vpow2.f32 %v2211_v63  ;;  %v2468_v3 = vpop.f32.mrb[20].mxu1 }
 0x472   : > { %v2596_v4 = vpop.eup %2595  ;;  %v1867_v5 = vadd.f32 1.0, %v2594_v1  ;;  %v1797_v6 = vadd.f32 %v2468_v3, %v3080_v39  ;;  %v1788_v7 = vpop.f32.mrb[21].mxu1 }
 0x473   : > { %v2598_v8 = vpop.eup %2597  ;;  %2607 = vrcp.f32 %v1869_v2  ;;  %v1870_v9 = vadd.f32 1.0, %v2596_v4  ;;  %v1789_v10 = vadd.f32 %v3080_v39, %v1788_v7  ;;  %v2469_v11 = vpop.f32.mrb[22].mxu1 }
 0x474   : > { %2609 = vrcp.f32 %v1867_v5  ;;  %v1868_v12 = vadd.f32 1.0, %v2598_v8  ;;  %v2216_v13 = vmul.f32 -1.442695, %v1797_v6  ;;  %v1800_v14 = vadd.f32 %v2469_v11, %v3080_v39  ;;  %v1791_v15 = vpop.f32.mrb[23].mxu1 }
 0x475   : > { %2611 = vrcp.f32 %v1870_v9  ;;  %v2214_v16 = vmul.f32 -1.442695, %v1789_v10  ;;  %v1792_v17 = vadd.f32 %v3080_v39, %v1791_v15 }
 0x476   : > { %2613 = vrcp.f32 %v1868_v12  ;;  %v2217_v18 = vmul.f32 -1.442695, %v1800_v14 }
 0x477   : > { %2615 = vpow2.f32 %v2216_v13  ;;  %v2215_v19 = vmul.f32 -1.442695, %v1792_v17 }
 0x478   : > { %v2600_v20 = vpop.eup %2599  ;;  %2617 = vpow2.f32 %v2214_v16 }
 0x479   : > { %v2602_v21 = vpop.eup %2601  ;;  %v1873_v22 = vadd.f32 1.0, %v2600_v20  ;;  %2619 = vpow2.f32 %v2217_v18  ;;  %v2472_v23 = vpop.f32.mrb[24].mxu1 }
 0x47a   : > { %v2604_v24 = vpop.eup %2603  ;;  %v1871_v25 = vadd.f32 1.0, %v2602_v21  ;;  %2621 = vpow2.f32 %v2215_v19  ;;  %v1813_v26 = vadd.f32 %v2472_v23, %v3080_v39  ;;  %v1804_v27 = vpop.f32.mrb[25].mxu1 }
 0x47b   : > { %v2606_v28 = vpop.eup %2605  ;;  %2623 = vrcp.f32 %v1873_v22  ;;  %v1874_v29 = vadd.f32 1.0, %v2604_v24  ;;  %v1805_v30 = vadd.f32 %v3080_v39, %v1804_v27  ;;  %v2473_v31 = vpop.f32.mrb[26].mxu1 }
 0x47c   : > { %2625 = vrcp.f32 %v1871_v25  ;;  %v1872_v32 = vadd.f32 1.0, %v2606_v28  ;;  %v2220_v33 = vmul.f32 -1.442695, %v1813_v26  ;;  %v1816_v34 = vadd.f32 %v2473_v31, %v3080_v39  ;;  %v1807_v35 = vpop.f32.mrb[27].mxu1 }
 0x47d   : > { %v2608_v36 = vpop.eup %2607  ;;  %2627 = vrcp.f32 %v1874_v29  ;;  %v2218_v37 = vmul.f32 -1.442695, %v1805_v30  ;;  %v1808_v38 = vadd.f32 %v3080_v39, %v1807_v35 }
 0x47e   : > { %v2610_v40 = vpop.eup %2609  ;;  %v2244_v41 = vpack.c.bf16 %v2608_v36, %v2608_v36  ;;  %2629 = vrcp.f32 %v1872_v32  ;;  %v2221_v42 = vmul.f32 -1.442695, %v1816_v34 }
 0x47f   : > { %v2612_v43 = vpop.eup %2611  ;;  %v2242_v44 = vpack.c.bf16 %v2610_v40, %v2610_v40  ;;  %2631 = vpow2.f32 %v2220_v33  ;;  %v2219_v45 = vmul.f32 -1.442695, %v1808_v38 }
 0x480   : > { %v2614_v46 = vpop.eup %2613  ;;  %1982 = vst.msk [vmem:[%s3184_s13 + $0x8] sm:$0xf] %vm1979_vm11, %v2244_v41  ;;  %v2245_v47 = vpack.c.bf16 %v2612_v43, %v2612_v43  ;;  %2633 = vpow2.f32 %v2218_v37 }
 0x481   : > { %v2616_v48 = vpop.eup %2615  ;;  %1980 = vst.msk [vmem:[%s3184_s13] sm:$0xf] %vm1979_vm11, %v2242_v44  ;;  %v2243_v39 = vpack.c.bf16 %v2614_v46, %v2614_v46  ;;  %2635 = vpow2.f32 %v2221_v42 }
 0x482   : > { %v2618_v49 = vpop.eup %2617  ;;  %1983 = vst.msk [vmem:[%s3184_s13 + $0xc] sm:$0xf] %vm1979_vm11, %v2245_v47  ;;  %v1877_v50 = vadd.f32 1.0, %v2616_v48  ;;  %2637 = vpow2.f32 %v2219_v45 }
 0x483   : > { %v2620_v51 = vpop.eup %2619  ;;  %1981 = vst.msk [vmem:[%s3184_s13 + $0x4] sm:$0xf] %vm1979_vm11, %v2243_v39  ;;  %v1875_v52 = vadd.f32 1.0, %v2618_v49 }
 0x484   : > { %v2622_v53 = vpop.eup %2621  ;;  %2639 = vrcp.f32 %v1877_v50  ;;  %v1878_v54 = vadd.f32 1.0, %v2620_v51 }
 0x485   : > { %v2624_v55 = vpop.eup %2623  ;;  %2641 = vrcp.f32 %v1875_v52  ;;  %v1876_v56 = vadd.f32 1.0, %v2622_v53 }
 0x486   : > { %v2626_v57 = vpop.eup %2625  ;;  %v2248_v58 = vpack.c.bf16 %v2624_v55, %v2624_v55  ;;  %2643 = vrcp.f32 %v1878_v54 }
 0x487   : > { %v2628_v59 = vpop.eup %2627  ;;  %v2246_v60 = vpack.c.bf16 %v2626_v57, %v2626_v57  ;;  %2645 = vrcp.f32 %v1876_v56 }
 0x488   : > { %v2630_v61 = vpop.eup %2629  ;;  %1986 = vst.msk [vmem:[%s3184_s13 + $0x18] sm:$0xf] %vm1979_vm11, %v2248_v58  ;;  %v2249_v62 = vpack.c.bf16 %v2628_v59, %v2628_v59 }
 0x489   : > { %v2632_v63 = vpop.eup %2631  ;;  %1984 = vst.msk [vmem:[%s3184_s13 + $0x10] sm:$0xf] %vm1979_vm11, %v2246_v60  ;;  %v2247_v0 = vpack.c.bf16 %v2630_v61, %v2630_v61 }
 0x48a   : > { %v2634_v1 = vpop.eup %2633  ;;  %1987 = vst.msk [vmem:[%s3184_s13 + $0x1c] sm:$0xf] %vm1979_vm11, %v2249_v62  ;;  %v1881_v2 = vadd.f32 1.0, %v2632_v63 }
 0x48b   : > { %v2636_v3 = vpop.eup %2635  ;;  %1985 = vst.msk [vmem:[%s3184_s13 + $0x14] sm:$0xf] %vm1979_vm11, %v2247_v0  ;;  %v1879_v4 = vadd.f32 1.0, %v2634_v1 }
 0x48c   : > { %v2638_v5 = vpop.eup %2637  ;;  %2647 = vrcp.f32 %v1881_v2  ;;  %v1882_v6 = vadd.f32 1.0, %v2636_v3 }
 0x48d   : > { %2649 = vrcp.f32 %v1879_v4  ;;  %v1880_v7 = vadd.f32 1.0, %v2638_v5 }
 0x48e   : > { %v2640_v8 = vpop.eup %2639  ;;  %2651 = vrcp.f32 %v1882_v6 }
 0x48f   : > { %v2642_v9 = vpop.eup %2641  ;;  %v2252_v10 = vpack.c.bf16 %v2640_v8, %v2640_v8  ;;  %2653 = vrcp.f32 %v1880_v7 }
 0x490   : > { %v2644_v11 = vpop.eup %2643  ;;  %v2250_v12 = vpack.c.bf16 %v2642_v9, %v2642_v9 }
 0x491   : > { %v2646_v13 = vpop.eup %2645  ;;  %1990 = vst.msk [vmem:[%s3184_s13 + $0x28] sm:$0xf] %vm1979_vm11, %v2252_v10  ;;  %v2253_v14 = vpack.c.bf16 %v2644_v11, %v2644_v11 }
 0x492   : > { %1988 = vst.msk [vmem:[%s3184_s13 + $0x20] sm:$0xf] %vm1979_vm11, %v2250_v12  ;;  %v2251_v15 = vpack.c.bf16 %v2646_v13, %v2646_v13 }
 0x493   : > { %1991 = vst.msk [vmem:[%s3184_s13 + $0x2c] sm:$0xf] %vm1979_vm11, %v2253_v14 }
 0x494   : > { %1989 = vst.msk [vmem:[%s3184_s13 + $0x24] sm:$0xf] %vm1979_vm11, %v2251_v15 }
 0x496   : > { %v2648_v16 = vpop.eup %2647 }
 0x497   : > { %v2650_v17 = vpop.eup %2649  ;;  %v2256_v18 = vpack.c.bf16 %v2648_v16, %v2648_v16 }
 0x498   : > { %v2652_v19 = vpop.eup %2651  ;;  %v2254_v20 = vpack.c.bf16 %v2650_v17, %v2650_v17 }
 0x499   : > { %v2654_v21 = vpop.eup %2653  ;;  %1994 = vst.msk [vmem:[%s3184_s13 + $0x38] sm:$0xf] %vm1979_vm11, %v2256_v18  ;;  %v2257_v22 = vpack.c.bf16 %v2652_v19, %v2652_v19 }
 0x49a   : > { %1992 = vst.msk [vmem:[%s3184_s13 + $0x30] sm:$0xf] %vm1979_vm11, %v2254_v20  ;;  %v2255_v23 = vpack.c.bf16 %v2654_v21, %v2654_v21 }
 0x49b   : > { %1995 = vst.msk [vmem:[%s3184_s13 + $0x3c] sm:$0xf] %vm1979_vm11, %v2257_v22 }
 0x49c   : > { %1993 = vst.msk [vmem:[%s3184_s13 + $0x34] sm:$0xf] %vm1979_vm11, %v2255_v23 }
 0x49d PF: > { %s25_s14 = sadd.s32 1, %s2677_s14   ;;  %s3185_s29 = smov %s2673_s30 }
 0x49e   : > { %p22_p11 = scmp.ge.s32.totalorder %s25_s14, 4   ;;  %s3186_s30 = smov %s3188_s0 }
 0x4a0   :  { %24 = sbr.rel (!%p22_p11) target bundleno = 3 (0x3), region = 115 }

// kernel: encode_process_decode.13
= control target key start
LH: loop header
LB: loop body
LE: loop exit
PB: predicated region body
PF: predicated region fallthrough
CT: control target
= control target key end

     0   :  { %s2254_s19 = smov 0   ;;  %s2495_s0 = inlined_call_operand.vmem [shape: bf16[256,64], index: 0, kind: input, shape index: {}]   ;;  %s2496_s1 = inlined_call_operand.vmem [shape: bf16[256,64], index: 1, kind: input, shape index: {}]   ;;  %s2497_s2 = inlined_call_operand.vmem [shape: bf16[256,64], index: 2, kind: input, shape index: {}]   ;;  %s2498_s3 = inlined_call_operand.vmem [shape: bf16[64,128], index: 3, kind: input, shape index: {}]   ;;  %s2499_s4 = inlined_call_operand.vmem [shape: bf16[64,128], index: 4, kind: input, shape index: {}]   ;;  %s2500_s5 = inlined_call_operand.vmem [shape: bf16[64,128], index: 5, kind: input, shape index: {}]   ;;  %s2501_s6 = inlined_call_operand.vmem [shape: f32[1,128], index: 6, kind: input, shape index: {}]   ;;  %s2502_s7 = inlined_call_operand.vmem [shape: bf16[128,128], index: 7, kind: input, shape index: {}]   ;;  %s2503_s8 = inlined_call_operand.vmem [shape: f32[1,128], index: 8, kind: input, shape index: {}]   ;;  %s2504_s9 = inlined_call_operand.vmem [shape: bf16[128,1], index: 9, kind: input, shape index: {}]   ;;  %s2505_s10 = inlined_call_operand.<no memory space> [shape: f32[1,1], index: 10, kind: input, shape index: {}]   ;;  %s2506_s11 = inlined_call_operand.vmem [shape: f32[256,1], index: 11, kind: output, shape index: {}]  }
   0x1   :  { %v16_v0 = vstv %s2505_s10 }
   0x2   :  { %17 = vst [vmem:[#allocation2] sm:$0x1] %v16_v0 }
   0x3 LB: > { %s1697_s20 = sadd.s32 4294967295, %s2189_s19   ;;  %p1701_p0 = scmp.ge.s32.totalorder %s2189_s19, 1  ;;  %s2189_s19 = sphi %s2254_s19, %s23_s19  }
   0x4   : > { %p362_p1 = scmp.lt.s32.totalorder %s2189_s19, 3 }
   0x6   : > { %p363_p2 = pnand %p1701_p0, %p362_p1 }
   0x7   : > { %v2067_v1 = vld [vmem:[%s2498_s3] sm:$0xff] (!%p363_p2)   ;;  %s1702_s10 = sshll.u32 (!%p363_p2), %s1697_s20, 4  ;;  %v2068_v2 = vld [vmem:[%s2498_s3 + $0x8] sm:$0xff] (!%p363_p2)   ;;  %v2069_v3 = vld [vmem:[%s2498_s3 + $0x10] sm:$0xff] (!%p363_p2)   ;;  %vm526_vm0 = vcmask (!%p363_p2), 523264   ;;  %vm1600_vm1 = vcmask (!%p363_p2), 7168  }
   0x8   : > { %366 = sbr.rel (%p363_p2) target bundleno = 801 (0x321), region = 64  ;;  %p413_p3 = scmp.lt.s32.totalorder (!%p363_p2), %s1702_s10, 31  ;;  %1875 = vmatprep.subr.bf16.mxu0 (!%p363_p2), %v2067_v1  ;;  %v2070_v5 = vld [vmem:[%s2498_s3 + $0x18] sm:$0xff] (!%p363_p2)   ;;  %v2073_v6 = vld [vmem:[%s2499_s4] sm:$0xff] (!%p363_p2)   ;;  %v2076_v9 = vld [vmem:[%s2499_s4 + $0x8] sm:$0xff] (!%p363_p2)  }
   0x9   : > { %1876 = vmatpush3.bf16.msra.mxu0 (!%p363_p2), %v2067_v1  ;;  %v2079_v10 = vld [vmem:[%s2499_s4 + $0x10] sm:$0xff] (!%p363_p2)   ;;  %v2082_v13 = vld [vmem:[%s2499_s4 + $0x18] sm:$0xff] (!%p363_p2)   ;;  %v2085_v14 = vld [vmem:[%s2500_s5] sm:$0xff] (!%p363_p2)  }
   0xa   : > { %1877 = vmatprep.subr.bf16.mxu0 (!%p363_p2), %v2068_v2  ;;  %v2103_v18 = vld [vmem:[%s2502_s7] sm:$0xff] (!%p363_p2)   ;;  %v2104_v19 = vld [vmem:[%s2502_s7 + $0x8] sm:$0xff] (!%p363_p2)   ;;  %v2105_v21 = vld [vmem:[%s2502_s7 + $0x10] sm:$0xff] (!%p363_p2)  }
   0xb   : > { %1947 = vmatprep.subr.bf16.mxu1 (!%p363_p2), %v2103_v18  ;;  %v2106_v22 = vld [vmem:[%s2502_s7 + $0x18] sm:$0xff] (!%p363_p2)   ;;  %v2088_v25 = vld [vmem:[%s2500_s5 + $0x8] sm:$0xff] (!%p363_p2)   ;;  %v2107_v26 = vld [vmem:[%s2502_s7 + $0x20] sm:$0xff] (!%p363_p2)  }
   0xc   : > { %1948 = vmatpush3.bf16.msra.mxu1 (!%p363_p2), %v2103_v18  ;;  %v2091_v27 = vld [vmem:[%s2500_s5 + $0x10] sm:$0xff] (!%p363_p2)   ;;  %v2108_v28 = vld [vmem:[%s2502_s7 + $0x28] sm:$0xff] (!%p363_p2)   ;;  %v2094_v31 = vld [vmem:[%s2500_s5 + $0x18] sm:$0xff] (!%p363_p2)  }
   0xd   : > { %1878 = vmatpush3.bf16.msra.mxu0 (!%p363_p2), %v2068_v2  ;;  %1949 = vmatprep.subr.bf16.mxu1 (!%p363_p2), %v2104_v19  ;;  %v2109_v43 = vld [vmem:[%s2502_s7 + $0x30] sm:$0xff] (!%p363_p2)   ;;  %v2110_v44 = vld [vmem:[%s2502_s7 + $0x38] sm:$0xff] (!%p363_p2)   ;;  %v2111_v45 = vld [vmem:[%s2504_s9] sm:$0xff] (!%p363_p2)  }
   0xe   : > { %1879 = vmatprep.subr.bf16.mxu0 (!%p363_p2), %v2069_v3  ;;  %v2394_v46 = vld [vmem:[%s2501_s6] ss:$0 sm:$0xff] (!%p363_p2)  ;;  %v2112_v0 = vld [vmem:[%s2504_s9 + $0x8] sm:$0xff] (!%p363_p2)  }
   0xf   : > { %s2508_s10 = smov (!%p413_p3, %s1702_s10), 31 }
  0x10   : > { %s1703_s27 = sshll.u32 %s2508_s10, 2  ;;  %1950 = vmatpush3.bf16.msra.mxu1 %v2104_v19 }
  0x11   : > { %s2277_s30 = scalar_lea.vmem %s2495_s0, %s1703_s27  ;;  %1880 = vmatpush3.bf16.msra.mxu0 %v2069_v3  ;;  %s2291_s18 = scalar_lea.vmem %s2496_s1, %s1703_s27  ;;  %1951 = vmatprep.subr.bf16.mxu1 %v2105_v21 }
  0x12   : > { %v2071_v4 = vld [vmem:[%s2277_s30] sm:$0xff]   ;;  %1881 = vmatprep.subr.bf16.mxu0 %v2070_v5  ;;  %v2072_v7 = vld [vmem:[%s2277_s30 + $0x8] sm:$0xff]   ;;  %v2074_v8 = vld [vmem:[%s2277_s30 + $0x10] sm:$0xff]   ;;  %s2311_s29 = scalar_lea.vmem %s2497_s2, %s1703_s27 }
  0x13   : > { %1883 = vmatprep.mubr.msk.bf16.mxu0 %vm526_vm0, %v2071_v4  ;;  %v2075_v11 = vld [vmem:[%s2277_s30 + $0x18] sm:$0xff]   ;;  %v2077_v12 = vld [vmem:[%s2277_s30 + $0x20] sm:$0xff]   ;;  %v2078_v15 = vld [vmem:[%s2277_s30 + $0x28] sm:$0xff]  }
  0x14   : > { %v2080_v16 = vld [vmem:[%s2277_s30 + $0x30] sm:$0xff]   ;;  %v2081_v17 = vld [vmem:[%s2277_s30 + $0x38] sm:$0xff]   ;;  %v2083_v20 = vld [vmem:[%s2291_s18] sm:$0xff]   ;;  %1952 = vmatpush3.bf16.msra.mxu1 %v2105_v21 }
  0x15   : > { %1882 = vmatpush3.bf16.msra.mxu0 %v2070_v5  ;;  %v2084_v23 = vld [vmem:[%s2291_s18 + $0x8] sm:$0xff]   ;;  %v2086_v24 = vld [vmem:[%s2291_s18 + $0x10] sm:$0xff]   ;;  %1953 = vmatprep.subr.bf16.mxu1 %v2106_v22  ;;  %v2087_v29 = vld [vmem:[%s2291_s18 + $0x18] sm:$0xff]  }
  0x16   : > { %1899 = vmatprep.subr.bf16.mxu0 %v2073_v6  ;;  %v2089_v30 = vld [vmem:[%s2291_s18 + $0x20] sm:$0xff]   ;;  %v2090_v32 = vld [vmem:[%s2291_s18 + $0x28] sm:$0xff]   ;;  %v2092_v33 = vld [vmem:[%s2291_s18 + $0x30] sm:$0xff]  }
  0x17   : > { %v2093_v34 = vld [vmem:[%s2291_s18 + $0x38] sm:$0xff]   ;;  %v2095_v35 = vld [vmem:[%s2311_s29] sm:$0xff]   ;;  %v2096_v36 = vld [vmem:[%s2311_s29 + $0x8] sm:$0xff]  }
  0x18   : > { %1884 = vmatmul.mubr.msk.bf16.vlgmr.msra.gmra.mrb[0].mxu0 %vm526_vm0, %v2072_v7  ;;  %1954 = vmatpush3.bf16.msra.mxu1 %v2106_v22  ;;  %v2097_v37 = vld [vmem:[%s2311_s29 + $0x10] sm:$0xff]   ;;  %v2098_v38 = vld [vmem:[%s2311_s29 + $0x18] sm:$0xff]   ;;  %v2099_v39 = vld [vmem:[%s2311_s29 + $0x20] sm:$0xff]  }
  0x19   : > { %1900 = vmatpush3.bf16.msra.mxu0 %v2073_v6  ;;  %1887 = vmatprep.mubr.msk.bf16.mxu0 %vm526_vm0, %v2074_v8  ;;  %v2100_v40 = vld [vmem:[%s2311_s29 + $0x28] sm:$0xff]   ;;  %v2101_v41 = vld [vmem:[%s2311_s29 + $0x30] sm:$0xff]   ;;  %v2102_v42 = vld [vmem:[%s2311_s29 + $0x38] sm:$0xff]   ;;  %s1709_s29 = sshll.u32 %s2508_s10, 3 }
  0x1a   : > { %1901 = vmatprep.subr.bf16.mxu0 %v2076_v9  ;;  %1955 = vmatprep.subr.bf16.mxu1 %v2107_v26  ;;  %v2113_v8 = vld [vmem:[%s2504_s9 + $0x10] sm:$0xff]   ;;  %s2455_s23 = scalar_lea.vmem %s2506_s11, %s1709_s29 }
  0x1c   : > { %1956 = vmatpush3.bf16.msra.mxu1 %v2107_v26 }
  0x1d   : > { %1902 = vmatpush3.bf16.msra.mxu0 %v2076_v9  ;;  %1957 = vmatprep.subr.bf16.mxu1 %v2108_v28 }
  0x1e   : > { %1903 = vmatprep.subr.bf16.mxu0 %v2079_v10 }
  0x20   : > { %1888 = vmatmul.mubr.msk.bf16.gmra.mrb[4].mxu0 %vm526_vm0, %v2075_v11  ;;  %1958 = vmatpush3.bf16.msra.mxu1 %v2108_v28 }
  0x21   : > { %1891 = vmatprep.mubr.msk.bf16.mxu0 %vm526_vm0, %v2077_v12  ;;  %1904 = vmatpush3.bf16.msra.mxu0 %v2079_v10 }
  0x22   : > { %1905 = vmatprep.subr.bf16.mxu0 %v2082_v13  ;;  %1959 = vmatprep.subr.bf16.mxu1 %v2109_v43 }
  0x24   : > { %1960 = vmatpush3.bf16.msra.mxu1 %v2109_v43 }
  0x25   : > { %1906 = vmatpush3.bf16.msra.mxu0 %v2082_v13  ;;  %1961 = vmatprep.subr.bf16.mxu1 %v2110_v44 }
  0x26   : > { %1923 = vmatprep.subr.bf16.mxu0 %v2085_v14 }
  0x28   : > { %1892 = vmatmul.mubr.msk.bf16.gmra.mrb[8].mxu0 %vm526_vm0, %v2078_v15  ;;  %1962 = vmatpush3.bf16.msra.mxu1 %v2110_v44  ;;  %v2117_v44 = vld [vmem:[%s2504_s9 + $0x30] sm:$0xff]  }
  0x29   : > { %1895 = vmatprep.mubr.msk.bf16.mxu0 %vm526_vm0, %v2080_v16  ;;  %1979 = vmatprep.subr.bf16.mxu1 %v2111_v45  ;;  %v2114_v16 = vld [vmem:[%s2504_s9 + $0x18] sm:$0xff]  }
  0x30   : > { %1896 = vmatmul.mubr.msk.bf16.gmra.mrb[12].mxu0 %vm526_vm0, %v2081_v17 }
  0x31   : > { %1907 = vmatprep.mubr.msk.bf16.mxu0 %vm526_vm0, %v2083_v20 }
  0x38   : > { %1908 = vmatmul.mubr.msk.bf16.vlgmr.msra.gmra.mrb[0].mxu0 %vm526_vm0, %v2084_v23 }
  0x39   : > { %1924 = vmatpush3.bf16.msra.mxu0 %v2085_v14  ;;  %1911 = vmatprep.mubr.msk.bf16.mxu0 %vm526_vm0, %v2086_v24  ;;  %v2115_v24 = vld [vmem:[%s2504_s9 + $0x20] sm:$0xff]  }
  0x3a   : > { %1925 = vmatprep.subr.bf16.mxu0 %v2088_v25 }
  0x3d   : > { %1926 = vmatpush3.bf16.msra.mxu0 %v2088_v25 }
  0x3e   : > { %1927 = vmatprep.subr.bf16.mxu0 %v2091_v27 }
  0x40   : > { %1912 = vmatmul.mubr.msk.bf16.gmra.mrb[4].mxu0 %vm526_vm0, %v2087_v29 }
  0x41   : > { %1915 = vmatprep.mubr.msk.bf16.mxu0 %vm526_vm0, %v2089_v30  ;;  %1928 = vmatpush3.bf16.msra.mxu0 %v2091_v27 }
  0x42   : > { %1929 = vmatprep.subr.bf16.mxu0 %v2094_v31 }
  0x45   : > { %1930 = vmatpush3.bf16.msra.mxu0 %v2094_v31 }
  0x48   : > { %1916 = vmatmul.mubr.msk.bf16.gmra.mrb[8].mxu0 %vm526_vm0, %v2090_v32  ;;  %v2116_v32 = vld [vmem:[%s2504_s9 + $0x28] sm:$0xff]  }
  0x49   : > { %1919 = vmatprep.mubr.msk.bf16.mxu0 %vm526_vm0, %v2092_v33 }
  0x50   : > { %1920 = vmatmul.mubr.msk.bf16.gmra.mrb[12].mxu0 %vm526_vm0, %v2093_v34 }
  0x51   : > { %1931 = vmatprep.mubr.msk.bf16.mxu0 %vm526_vm0, %v2095_v35 }
  0x58   : > { %1932 = vmatmul.mubr.msk.bf16.vlgmr.msra.gmra.mrb[0].mxu0 %vm526_vm0, %v2096_v36 }
  0x59   : > { %1935 = vmatprep.mubr.msk.bf16.mxu0 %vm526_vm0, %v2097_v37 }
  0x60   : > { %1936 = vmatmul.mubr.msk.bf16.gmra.mrb[4].mxu0 %vm526_vm0, %v2098_v38 }
  0x61   : > { %1939 = vmatprep.mubr.msk.bf16.mxu0 %vm526_vm0, %v2099_v39 }
  0x68   : > { %1940 = vmatmul.mubr.msk.bf16.gmra.mrb[8].mxu0 %vm526_vm0, %v2100_v40 }
  0x69   : > { %1943 = vmatprep.mubr.msk.bf16.mxu0 %vm526_vm0, %v2101_v41 }
  0x70   : > { %1944 = vmatmul.mubr.msk.bf16.gmra.mrb[12].mxu0 %vm526_vm0, %v2102_v42 }
 0x12b   : > { %v1933_v47 = vpop.f32.mrb[0].mxu0 }
 0x12c   : > { %v2011_v48 = vadd.f32 %v1933_v47, %v2394_v46  ;;  %v1041_v49 = vpop.f32.mrb[1].mxu0 }
 0x12d   : > { %v2012_v50 = vadd.f32 %v2394_v46, %v1041_v49  ;;  %v1934_v51 = vpop.f32.mrb[2].mxu0 }
 0x12e   : > { %v2013_v52 = vadd.f32 %v1934_v51, %v2394_v46  ;;  %v1044_v53 = vpop.f32.mrb[3].mxu0  ;;  %v1122_v55 = vmax.f32 %v2011_v48, 0.0 }
 0x12f   : > { %v2014_v54 = vadd.f32 %v2394_v46, %v1044_v53  ;;  %v1120_v57 = vmax.f32 %v2012_v50, 0.0 }
 0x130   : > { %v1123_v56 = vmax.f32 %v2013_v52, 0.0 }
 0x131   : > { %v1121_v58 = vmax.f32 %v2014_v54, 0.0 }
 0x132   : > { %v1137_v59 = vpack.c.bf16 %v1123_v56, %v1122_v55 }
 0x133   : > { %v1937_v60 = vpop.f32.mrb[4].mxu0  ;;  %v1136_v61 = vpack.c.bf16 %v1121_v58, %v1120_v57 }
 0x134   : > { %v2015_v62 = vadd.f32 %v1937_v60, %v2394_v46  ;;  %v1057_v63 = vpop.f32.mrb[5].mxu0 }
 0x135   : > { %v2016_v1 = vadd.f32 %v2394_v46, %v1057_v63  ;;  %v1938_v2 = vpop.f32.mrb[6].mxu0  ;;  %1963 = vmatprep.mubr.bf16.mxu1 %v1136_v61 }
 0x136   : > { %v2017_v3 = vadd.f32 %v1938_v2, %v2394_v46  ;;  %v1060_v4 = vpop.f32.mrb[7].mxu0  ;;  %1964 = vmatmul.mubr.bf16.vlgmr.msra.gmra.mrb[0].mxu1 %v1137_v59  ;;  %v1126_v6 = vmax.f32 %v2015_v62, 0.0 }
 0x137   : > { %v2018_v5 = vadd.f32 %v2394_v46, %v1060_v4  ;;  %1980 = vmatpush3.bf16.msra.mxu1 %v2111_v45  ;;  %v1124_v9 = vmax.f32 %v2016_v1, 0.0  ;;  %v2118_v45 = vld [vmem:[%s2504_s9 + $0x38] sm:$0xff]  }
 0x138   : > { %v1127_v7 = vmax.f32 %v2017_v3, 0.0  ;;  %1981 = vmatprep.subr.bf16.mxu1 %v2112_v0 }
 0x139   : > { %v1125_v10 = vmax.f32 %v2018_v5, 0.0 }
 0x13a   : > { %v1139_v11 = vpack.c.bf16 %v1127_v7, %v1126_v6 }
 0x13b   : > { %v1138_v12 = vpack.c.bf16 %v1125_v10, %v1124_v9  ;;  %v1941_v13 = vpop.f32.mrb[8].mxu0  ;;  %1982 = vmatpush3.bf16.msra.mxu1 %v2112_v0 }
 0x13c   : > { %v2019_v14 = vadd.f32 %v1941_v13, %v2394_v46  ;;  %v1073_v15 = vpop.f32.mrb[9].mxu0  ;;  %1983 = vmatprep.subr.bf16.mxu1 %v2113_v8 }
 0x13d   : > { %v2020_v17 = vadd.f32 %v2394_v46, %v1073_v15  ;;  %v1942_v18 = vpop.f32.mrb[10].mxu0  ;;  %1967 = vmatprep.mubr.bf16.mxu1 %v1138_v12 }
 0x13e   : > { %v2021_v19 = vadd.f32 %v1942_v18, %v2394_v46  ;;  %v1076_v20 = vpop.f32.mrb[11].mxu0  ;;  %1968 = vmatmul.mubr.bf16.gmra.mrb[4].mxu1 %v1139_v11  ;;  %v1130_v22 = vmax.f32 %v2019_v14, 0.0 }
 0x13f   : > { %v2022_v21 = vadd.f32 %v2394_v46, %v1076_v20  ;;  %1984 = vmatpush3.bf16.msra.mxu1 %v2113_v8  ;;  %v1128_v25 = vmax.f32 %v2020_v17, 0.0 }
 0x140   : > { %v1131_v23 = vmax.f32 %v2021_v19, 0.0  ;;  %1985 = vmatprep.subr.bf16.mxu1 %v2114_v16 }
 0x141   : > { %v1129_v26 = vmax.f32 %v2022_v21, 0.0 }
 0x142   : > { %v1141_v27 = vpack.c.bf16 %v1131_v23, %v1130_v22 }
 0x143   : > { %v1140_v28 = vpack.c.bf16 %v1129_v26, %v1128_v25  ;;  %v1945_v29 = vpop.f32.mrb[12].mxu0  ;;  %1986 = vmatpush3.bf16.msra.mxu1 %v2114_v16 }
 0x144   : > { %v2023_v30 = vadd.f32 %v1945_v29, %v2394_v46  ;;  %v1089_v31 = vpop.f32.mrb[13].mxu0  ;;  %1987 = vmatprep.subr.bf16.mxu1 %v2115_v24 }
 0x145   : > { %v2024_v33 = vadd.f32 %v2394_v46, %v1089_v31  ;;  %v1946_v34 = vpop.f32.mrb[14].mxu0  ;;  %1971 = vmatprep.mubr.bf16.mxu1 %v1140_v28 }
 0x146   : > { %v2025_v35 = vadd.f32 %v1946_v34, %v2394_v46  ;;  %v1092_v36 = vpop.f32.mrb[15].mxu0  ;;  %1972 = vmatmul.mubr.bf16.gmra.mrb[8].mxu1 %v1141_v27  ;;  %v1134_v38 = vmax.f32 %v2023_v30, 0.0 }
 0x147   : > { %v2026_v37 = vadd.f32 %v2394_v46, %v1092_v36  ;;  %1988 = vmatpush3.bf16.msra.mxu1 %v2115_v24  ;;  %v1132_v40 = vmax.f32 %v2024_v33, 0.0  ;;  %v1771_v46 = vld [vmem:[%s2503_s8] ss:$0 sm:$0xff] }
 0x148   : > { %v1135_v39 = vmax.f32 %v2025_v35, 0.0  ;;  %1989 = vmatprep.subr.bf16.mxu1 %v2116_v32 }
 0x149   : > { %v1133_v41 = vmax.f32 %v2026_v37, 0.0 }
 0x14a   : > { %v1143_v42 = vpack.c.bf16 %v1135_v39, %v1134_v38  ;;  %v2436_v39 = vld [vmem:[#allocation2] ss:$0 sm:$0xff] }
 0x14b   : > { %v1142_v43 = vpack.c.bf16 %v1133_v41, %v1132_v40  ;;  %1990 = vmatpush3.bf16.msra.mxu1 %v2116_v32 }
 0x14c   : > { %1991 = vmatprep.subr.bf16.mxu1 %v2117_v44 }
 0x14d   : > { %1975 = vmatprep.mubr.bf16.mxu1 %v1142_v43 }
 0x14e   : > { %1976 = vmatmul.mubr.bf16.gmra.mrb[12].mxu1 %v1143_v42 }
 0x14f   : > { %1992 = vmatpush3.bf16.msra.mxu1 %v2117_v44 }
 0x150   : > { %1993 = vmatprep.subr.bf16.mxu1 %v2118_v45 }
 0x153   : > { %1994 = vmatpush3.bf16.msra.mxu1 %v2118_v45 }
 0x209   : > { %v1965_v47 = vpop.f32.mrb[0].mxu1 }
 0x20a   : > { %v1258_v48 = vadd.f32 %v1965_v47, %v1771_v46  ;;  %v1249_v49 = vpop.f32.mrb[1].mxu1 }
 0x20b   : > { %v1250_v50 = vadd.f32 %v1771_v46, %v1249_v49  ;;  %v1966_v51 = vpop.f32.mrb[2].mxu1 }
 0x20c   : > { %v1261_v52 = vadd.f32 %v1966_v51, %v1771_v46  ;;  %v1252_v53 = vpop.f32.mrb[3].mxu1  ;;  %v1314_v55 = vmax.f32 %v1258_v48, 0.0 }
 0x20d   : > { %v1253_v54 = vadd.f32 %v1771_v46, %v1252_v53  ;;  %v1312_v57 = vmax.f32 %v1250_v50, 0.0 }
 0x20e   : > { %v1315_v56 = vmax.f32 %v1261_v52, 0.0 }
 0x20f   : > { %v1313_v58 = vmax.f32 %v1253_v54, 0.0 }
 0x210   : > { %v1329_v59 = vpack.c.bf16 %v1315_v56, %v1314_v55 }
 0x211   : > { %v1328_v60 = vpack.c.bf16 %v1313_v58, %v1312_v57  ;;  %v1969_v61 = vpop.f32.mrb[4].mxu1 }
 0x212   : > { %v1274_v62 = vadd.f32 %v1969_v61, %v1771_v46  ;;  %v1265_v63 = vpop.f32.mrb[5].mxu1 }
 0x213   : > { %v1266_v0 = vadd.f32 %v1771_v46, %v1265_v63  ;;  %v1970_v1 = vpop.f32.mrb[6].mxu1  ;;  %1995 = vmatprep.mubr.bf16.mxu1 %v1328_v60 }
 0x214   : > { %v1277_v2 = vadd.f32 %v1970_v1, %v1771_v46  ;;  %v1268_v3 = vpop.f32.mrb[7].mxu1  ;;  %1996 = vmatmul.mubr.bf16.vlgmr.msra.gmra.mrb[16].mxu1 %v1329_v59  ;;  %v1318_v5 = vmax.f32 %v1274_v62, 0.0 }
 0x215   : > { %v1269_v4 = vadd.f32 %v1771_v46, %v1268_v3  ;;  %v1316_v7 = vmax.f32 %v1266_v0, 0.0 }
 0x216   : > { %v1319_v6 = vmax.f32 %v1277_v2, 0.0 }
 0x217   : > { %v1317_v8 = vmax.f32 %v1269_v4, 0.0 }
 0x218   : > { %v1331_v9 = vpack.c.bf16 %v1319_v6, %v1318_v5 }
 0x219   : > { %v1330_v10 = vpack.c.bf16 %v1317_v8, %v1316_v7  ;;  %v1973_v11 = vpop.f32.mrb[8].mxu1 }
 0x21a   : > { %v1290_v12 = vadd.f32 %v1973_v11, %v1771_v46  ;;  %v1281_v13 = vpop.f32.mrb[9].mxu1 }
 0x21b   : > { %v1282_v14 = vadd.f32 %v1771_v46, %v1281_v13  ;;  %v1974_v15 = vpop.f32.mrb[10].mxu1  ;;  %1999 = vmatprep.mubr.bf16.mxu1 %v1330_v10 }
 0x21c   : > { %v1293_v16 = vadd.f32 %v1974_v15, %v1771_v46  ;;  %v1284_v17 = vpop.f32.mrb[11].mxu1  ;;  %2000 = vmatmul.mubr.bf16.gmra.mrb[20].mxu1 %v1331_v9  ;;  %v1322_v19 = vmax.f32 %v1290_v12, 0.0 }
 0x21d   : > { %v1285_v18 = vadd.f32 %v1771_v46, %v1284_v17  ;;  %v1320_v21 = vmax.f32 %v1282_v14, 0.0 }
 0x21e   : > { %v1323_v20 = vmax.f32 %v1293_v16, 0.0 }
 0x21f   : > { %v1321_v22 = vmax.f32 %v1285_v18, 0.0 }
 0x220   : > { %v1333_v23 = vpack.c.bf16 %v1323_v20, %v1322_v19 }
 0x221   : > { %v1332_v24 = vpack.c.bf16 %v1321_v22, %v1320_v21  ;;  %v1977_v25 = vpop.f32.mrb[12].mxu1 }
 0x222   : > { %v1306_v26 = vadd.f32 %v1977_v25, %v1771_v46  ;;  %v1297_v27 = vpop.f32.mrb[13].mxu1 }
 0x223   : > { %v1298_v28 = vadd.f32 %v1771_v46, %v1297_v27  ;;  %v1978_v29 = vpop.f32.mrb[14].mxu1  ;;  %2003 = vmatprep.mubr.bf16.mxu1 %v1332_v24 }
 0x224   : > { %v1309_v30 = vadd.f32 %v1978_v29, %v1771_v46  ;;  %v1300_v31 = vpop.f32.mrb[15].mxu1  ;;  %2004 = vmatmul.mubr.bf16.gmra.mrb[24].mxu1 %v1333_v23  ;;  %v1326_v33 = vmax.f32 %v1306_v26, 0.0 }
 0x225   : > { %v1301_v32 = vadd.f32 %v1771_v46, %v1300_v31  ;;  %v1324_v35 = vmax.f32 %v1298_v28, 0.0 }
 0x226   : > { %v1327_v34 = vmax.f32 %v1309_v30, 0.0 }
 0x227   : > { %v1325_v36 = vmax.f32 %v1301_v32, 0.0 }
 0x228   : > { %v1335_v37 = vpack.c.bf16 %v1327_v34, %v1326_v33 }
 0x229   : > { %v1334_v38 = vpack.c.bf16 %v1325_v36, %v1324_v35 }
 0x22b   : > { %2007 = vmatprep.mubr.bf16.mxu1 %v1334_v38 }
 0x22c   : > { %2008 = vmatmul.mubr.bf16.gmra.mrb[28].mxu1 %v1335_v37 }
 0x2e7   : > { %v1997_v40 = vpop.f32.mrb[16].mxu1 }
 0x2e8   : > { %v1450_v41 = vadd.f32 %v1997_v40, %v2436_v39  ;;  %v1441_v42 = vpop.f32.mrb[17].mxu1 }
 0x2e9   : > { %v1442_v43 = vadd.f32 %v2436_v39, %v1441_v42  ;;  %v1998_v44 = vpop.f32.mrb[18].mxu1 }
 0x2ea   : > { %v1791_v45 = vmul.f32 -1.442695, %v1450_v41  ;;  %v1453_v46 = vadd.f32 %v1998_v44, %v2436_v39  ;;  %v1444_v47 = vpop.f32.mrb[19].mxu1 }
 0x2eb   : > { %v1789_v48 = vmul.f32 -1.442695, %v1442_v43  ;;  %v1445_v49 = vadd.f32 %v2436_v39, %v1444_v47 }
 0x2ec   : > { %2119 = vpow2.f32 %v1791_v45  ;;  %v1792_v50 = vmul.f32 -1.442695, %v1453_v46 }
 0x2ed   : > { %2121 = vpow2.f32 %v1789_v48  ;;  %v1790_v51 = vmul.f32 -1.442695, %v1445_v49 }
 0x2ee   : > { %2123 = vpow2.f32 %v1792_v50 }
 0x2ef   : > { %2125 = vpow2.f32 %v1790_v51  ;;  %v2001_v52 = vpop.f32.mrb[20].mxu1 }
 0x2f0   : > { %v1466_v53 = vadd.f32 %v2001_v52, %v2436_v39  ;;  %v1457_v54 = vpop.f32.mrb[21].mxu1 }
 0x2f1   : > { %v1458_v55 = vadd.f32 %v2436_v39, %v1457_v54  ;;  %v2002_v56 = vpop.f32.mrb[22].mxu1 }
 0x2f2   : > { %v1795_v57 = vmul.f32 -1.442695, %v1466_v53  ;;  %v1469_v58 = vadd.f32 %v2002_v56, %v2436_v39  ;;  %v1460_v59 = vpop.f32.mrb[23].mxu1 }
 0x2f3   : > { %v1793_v60 = vmul.f32 -1.442695, %v1458_v55  ;;  %v1461_v61 = vadd.f32 %v2436_v39, %v1460_v59 }
 0x2f4   : > { %2127 = vpow2.f32 %v1795_v57  ;;  %v1796_v62 = vmul.f32 -1.442695, %v1469_v58 }
 0x2f5   : > { %2129 = vpow2.f32 %v1793_v60  ;;  %v1794_v63 = vmul.f32 -1.442695, %v1461_v61 }
 0x2f6   : > { %v2120_v0 = vpop.eup %2119  ;;  %2131 = vpow2.f32 %v1796_v62 }
 0x2f7   : > { %v2122_v1 = vpop.eup %2121  ;;  %v1554_v2 = vadd.f32 1.0, %v2120_v0  ;;  %2133 = vpow2.f32 %v1794_v63  ;;  %v2005_v3 = vpop.f32.mrb[24].mxu1 }
 0x2f8   : > { %v2124_v4 = vpop.eup %2123  ;;  %v1552_v5 = vadd.f32 1.0, %v2122_v1  ;;  %v1482_v6 = vadd.f32 %v2005_v3, %v2436_v39  ;;  %v1473_v7 = vpop.f32.mrb[25].mxu1 }
 0x2f9   : > { %v2126_v8 = vpop.eup %2125  ;;  %2135 = vrcp.f32 %v1554_v2  ;;  %v1555_v9 = vadd.f32 1.0, %v2124_v4  ;;  %v1474_v10 = vadd.f32 %v2436_v39, %v1473_v7  ;;  %v2006_v11 = vpop.f32.mrb[26].mxu1 }
 0x2fa   : > { %2137 = vrcp.f32 %v1552_v5  ;;  %v1553_v12 = vadd.f32 1.0, %v2126_v8  ;;  %v1799_v13 = vmul.f32 -1.442695, %v1482_v6  ;;  %v1485_v14 = vadd.f32 %v2006_v11, %v2436_v39  ;;  %v1476_v15 = vpop.f32.mrb[27].mxu1 }
 0x2fb   : > { %2139 = vrcp.f32 %v1555_v9  ;;  %v1797_v16 = vmul.f32 -1.442695, %v1474_v10  ;;  %v1477_v17 = vadd.f32 %v2436_v39, %v1476_v15 }
 0x2fc   : > { %2141 = vrcp.f32 %v1553_v12  ;;  %v1800_v18 = vmul.f32 -1.442695, %v1485_v14 }
 0x2fd   : > { %2143 = vpow2.f32 %v1799_v13  ;;  %v1798_v19 = vmul.f32 -1.442695, %v1477_v17 }
 0x2fe   : > { %v2128_v20 = vpop.eup %2127  ;;  %2145 = vpow2.f32 %v1797_v16 }
 0x2ff   : > { %v2130_v21 = vpop.eup %2129  ;;  %v1558_v22 = vadd.f32 1.0, %v2128_v20  ;;  %2147 = vpow2.f32 %v1800_v18  ;;  %v2009_v23 = vpop.f32.mrb[28].mxu1 }
 0x300   : > { %v2132_v24 = vpop.eup %2131  ;;  %v1556_v25 = vadd.f32 1.0, %v2130_v21  ;;  %2149 = vpow2.f32 %v1798_v19  ;;  %v1498_v26 = vadd.f32 %v2009_v23, %v2436_v39  ;;  %v1489_v27 = vpop.f32.mrb[29].mxu1 }
 0x301   : > { %v2134_v28 = vpop.eup %2133  ;;  %2151 = vrcp.f32 %v1558_v22  ;;  %v1559_v29 = vadd.f32 1.0, %v2132_v24  ;;  %v1490_v30 = vadd.f32 %v2436_v39, %v1489_v27  ;;  %v2010_v31 = vpop.f32.mrb[30].mxu1 }
 0x302   : > { %2153 = vrcp.f32 %v1556_v25  ;;  %v1557_v32 = vadd.f32 1.0, %v2134_v28  ;;  %v1803_v33 = vmul.f32 -1.442695, %v1498_v26  ;;  %v1501_v34 = vadd.f32 %v2010_v31, %v2436_v39  ;;  %v1492_v35 = vpop.f32.mrb[31].mxu1 }
 0x303   : > { %v2136_v36 = vpop.eup %2135  ;;  %2155 = vrcp.f32 %v1559_v29  ;;  %v1801_v37 = vmul.f32 -1.442695, %v1490_v30  ;;  %v1493_v38 = vadd.f32 %v2436_v39, %v1492_v35 }
 0x304   : > { %v2138_v40 = vpop.eup %2137  ;;  %1603 = vst.msk [vmem:[%s2455_s23 + $0x10] sm:$0xff] %vm1600_vm1, %v2136_v36  ;;  %2157 = vrcp.f32 %v1557_v32  ;;  %v1804_v41 = vmul.f32 -1.442695, %v1501_v34 }
 0x305   : > { %v2140_v42 = vpop.eup %2139  ;;  %1601 = vst.msk [vmem:[%s2455_s23] sm:$0xff] %vm1600_vm1, %v2138_v40  ;;  %2159 = vpow2.f32 %v1803_v33  ;;  %v1802_v43 = vmul.f32 -1.442695, %v1493_v38 }
 0x306   : > { %v2142_v44 = vpop.eup %2141  ;;  %1604 = vst.msk [vmem:[%s2455_s23 + $0x18] sm:$0xff] %vm1600_vm1, %v2140_v42  ;;  %2161 = vpow2.f32 %v1801_v37 }
 0x307   : > { %v2144_v45 = vpop.eup %2143  ;;  %1602 = vst.msk [vmem:[%s2455_s23 + $0x8] sm:$0xff] %vm1600_vm1, %v2142_v44  ;;  %2163 = vpow2.f32 %v1804_v41 }
 0x308   : > { %v2146_v39 = vpop.eup %2145  ;;  %v1562_v46 = vadd.f32 1.0, %v2144_v45  ;;  %2165 = vpow2.f32 %v1802_v43 }
 0x309   : > { %v2148_v47 = vpop.eup %2147  ;;  %v1560_v48 = vadd.f32 1.0, %v2146_v39 }
 0x30a   : > { %v2150_v49 = vpop.eup %2149  ;;  %2167 = vrcp.f32 %v1562_v46  ;;  %v1563_v50 = vadd.f32 1.0, %v2148_v47 }
 0x30b   : > { %v2152_v51 = vpop.eup %2151  ;;  %2169 = vrcp.f32 %v1560_v48  ;;  %v1561_v52 = vadd.f32 1.0, %v2150_v49 }
 0x30c   : > { %v2154_v53 = vpop.eup %2153  ;;  %1607 = vst.msk [vmem:[%s2455_s23 + $0x30] sm:$0xff] %vm1600_vm1, %v2152_v51  ;;  %2171 = vrcp.f32 %v1563_v50 }
 0x30d   : > { %v2156_v54 = vpop.eup %2155  ;;  %1605 = vst.msk [vmem:[%s2455_s23 + $0x20] sm:$0xff] %vm1600_vm1, %v2154_v53  ;;  %2173 = vrcp.f32 %v1561_v52 }
 0x30e   : > { %v2158_v55 = vpop.eup %2157  ;;  %1608 = vst.msk [vmem:[%s2455_s23 + $0x38] sm:$0xff] %vm1600_vm1, %v2156_v54 }
 0x30f   : > { %v2160_v56 = vpop.eup %2159  ;;  %1606 = vst.msk [vmem:[%s2455_s23 + $0x28] sm:$0xff] %vm1600_vm1, %v2158_v55 }
 0x310   : > { %v2162_v57 = vpop.eup %2161  ;;  %v1566_v58 = vadd.f32 1.0, %v2160_v56 }
 0x311   : > { %v2164_v59 = vpop.eup %2163  ;;  %v1564_v60 = vadd.f32 1.0, %v2162_v57 }
 0x312   : > { %v2166_v61 = vpop.eup %2165  ;;  %2175 = vrcp.f32 %v1566_v58  ;;  %v1567_v62 = vadd.f32 1.0, %v2164_v59 }
 0x313   : > { %2177 = vrcp.f32 %v1564_v60  ;;  %v1565_v63 = vadd.f32 1.0, %v2166_v61 }
 0x314   : > { %v2168_v0 = vpop.eup %2167  ;;  %2179 = vrcp.f32 %v1567_v62 }
 0x315   : > { %v2170_v1 = vpop.eup %2169  ;;  %1611 = vst.msk [vmem:[%s2455_s23 + $0x50] sm:$0xff] %vm1600_vm1, %v2168_v0  ;;  %2181 = vrcp.f32 %v1565_v63 }
 0x316   : > { %v2172_v2 = vpop.eup %2171  ;;  %1609 = vst.msk [vmem:[%s2455_s23 + $0x40] sm:$0xff] %vm1600_vm1, %v2170_v1 }
 0x317   : > { %v2174_v3 = vpop.eup %2173  ;;  %1612 = vst.msk [vmem:[%s2455_s23 + $0x58] sm:$0xff] %vm1600_vm1, %v2172_v2 }
 0x318   : > { %1610 = vst.msk [vmem:[%s2455_s23 + $0x48] sm:$0xff] %vm1600_vm1, %v2174_v3 }
 0x31c   : > { %v2176_v4 = vpop.eup %2175 }
 0x31d   : > { %v2178_v5 = vpop.eup %2177  ;;  %1615 = vst.msk [vmem:[%s2455_s23 + $0x70] sm:$0xff] %vm1600_vm1, %v2176_v4 }
 0x31e   : > { %v2180_v6 = vpop.eup %2179  ;;  %1613 = vst.msk [vmem:[%s2455_s23 + $0x60] sm:$0xff] %vm1600_vm1, %v2178_v5 }
 0x31f   : > { %v2182_v7 = vpop.eup %2181  ;;  %1616 = vst.msk [vmem:[%s2455_s23 + $0x78] sm:$0xff] %vm1600_vm1, %v2180_v6 }
 0x320   : > { %1614 = vst.msk [vmem:[%s2455_s23 + $0x68] sm:$0xff] %vm1600_vm1, %v2182_v7 }
 0x321 PF: > { %s23_s19 = sadd.s32 1, %s2189_s19  }
 0x322   : > { %p20_p4 = scmp.ge.s32.totalorder %s23_s19, 4  }
 0x324   :  { %22 = sbr.rel (!%p20_p4) target bundleno = 3 (0x3), region = 100 }

</bundles_post_ra>
